<compile_context>
chip_gen: v7x
topology: tpu7x:2x2x1
jax: 0.10.0
libtpu: 0.0.40
codegen_flags: <defaults>
</compile_context>

<pallas_src>
import numpy as np
import jax
import jax.numpy as jnp
from jax.experimental import pallas as pl
from jax.experimental.pallas import tpu as pltpu


# ----------------------------------------------------------------------------
# Fused Pallas kernel: 5 x (3x3 conv via tap-shift matmuls + bias + ReLU)
# ----------------------------------------------------------------------------
def _features_fused_kernel(x0_ref,
                           t1_ref, t3_ref, t4_ref, t5_ref,
                           w1_ref, b1_ref, w2_ref, b2_ref, w3_ref, b3_ref,
                           w4_ref, b4_ref, w5_ref, b5_ref,
                           x1_ref, x2_ref, x3_ref):
    def conv_bn_relu(x, t_ref, w_ref, b_ref):
        # x: (M_in, Cin_pad) bf16 ; t_ref: (9, M_out, M_in) bf16 (0/1 shifts)
        # w_ref: (9, Cin_pad, Cout_pad) bf16 (BN scale folded in)
        # b_ref: (1, Cout_pad) f32
        m_out = t_ref.shape[1]
        c_out = w_ref.shape[2]
        acc = jnp.zeros((m_out, c_out), jnp.float32)
        for t in range(9):  # static, unrolled loop over the 3x3 taps
            # shift/stride the activation rows (exact 0/1 selection), MXU op
            xs = jnp.dot(t_ref[t], x, preferred_element_type=jnp.float32)
            # channel matmul with f32 accumulation
            acc = acc + jnp.dot(xs.astype(jnp.bfloat16), w_ref[t],
                                preferred_element_type=jnp.float32)
        return jnp.maximum(acc + b_ref[...], 0.0)          # f32 epilogue

    x = x0_ref[0]                                                        # (64,128) bf16
    y = conv_bn_relu(x, t1_ref, w1_ref, b1_ref).astype(jnp.bfloat16)     # layer1
    y = conv_bn_relu(y, t1_ref, w2_ref, b2_ref).astype(jnp.bfloat16)     # layer2
    y1 = conv_bn_relu(y, t3_ref, w3_ref, b3_ref)                         # layer3 -> x1
    x1_ref[0] = y1.astype(x1_ref.dtype)
    y2 = conv_bn_relu(y1.astype(jnp.bfloat16), t4_ref, w4_ref, b4_ref)   # layer4 -> x2
    x2_ref[0] = y2.astype(x2_ref.dtype)
    y3 = conv_bn_relu(y2.astype(jnp.bfloat16), t5_ref, w5_ref, b5_ref)   # layer5 -> x3
    x3_ref[0] = y3.astype(x3_ref.dtype)


# ----------------------------------------------------------------------------
# Host-side constant construction (shift matrices, folded weights)
# ----------------------------------------------------------------------------
def make_shift_mats(H, W, stride, m_out_pad, m_in_pad):
    """T[t] (m_out_pad, m_in_pad) 0/1: tap t=(kh*3+kw) of a 3x3/pad=1 conv.

    Row r_out = oh*Wo+ow reads row r_in = ih*W+iw with ih=oh*s+kh-1,
    iw=ow*s+kw-1 (zero row if out of bounds).  Padded rows/cols stay zero.
    """
    Ho = (H + 2 - 3) // stride + 1
    Wo = (W + 2 - 3) // stride + 1
    T = np.zeros((9, m_out_pad, m_in_pad), np.float32)
    for kh in range(3):
        for kw in range(3):
            t = kh * 3 + kw
            for oh in range(Ho):
                ih = oh * stride + kh - 1
                if not (0 <= ih < H):
                    continue
                for ow in range(Wo):
                    iw = ow * stride + kw - 1
                    if not (0 <= iw < W):
                        continue
                    T[t, oh * Wo + ow, ih * W + iw] = 1.0
    return jnp.asarray(T, jnp.bfloat16), Ho, Wo


def prep_layer(p, cin_pad, cout_pad, eps=1e-5):
    """PyTorch conv weight + BN(eval) -> per-tap (Cin_pad, Cout_pad) bf16 mats
    with BN scale folded in, plus (1, Cout_pad) f32 bias."""
    w = np.asarray(p["w"])                     # (Cout, Cin, 3, 3)
    gamma, beta = np.asarray(p["gamma"]), np.asarray(p["beta"])
    mean, var = np.asarray(p["mean"]), np.asarray(p["var"])
    cout, cin = w.shape[0], w.shape[1]
    scale = gamma / np.sqrt(var + eps)
    bias = beta - mean * scale
    wt = np.zeros((9, cin_pad, cout_pad), np.float32)
    for kh in range(3):
        for kw in range(3):
            t = kh * 3 + kw
            wt[t, :cin, :cout] = w[:, :, kh, kw].T * scale[None, :]
    b = np.zeros((1, cout_pad), np.float32)
    b[0, :cout] = bias
    return jnp.asarray(wt, jnp.bfloat16), jnp.asarray(b, jnp.float32)


# ----------------------------------------------------------------------------
# JAX glue (layout only)
# ----------------------------------------------------------------------------
def space_to_depth_nhwc(x, bs):
    N, H, W, C = x.shape
    x = x.reshape(N, H // bs, bs, W // bs, bs, C)
    x = x.transpose(0, 1, 3, 2, 4, 5)
    return x.reshape(N, H // bs, W // bs, bs * bs * C)


def features_forward_pallas(x_nchw, params):
    N = x_nchw.shape[0]
    x = jnp.transpose(x_nchw, (0, 2, 3, 1))          # NCHW -> NHWC
    x = space_to_depth_nhwc(x, 2)                    # net_layer_0: (N,8,8,16)
    _, H, W, C = x.shape
    CP = 128                                         # lane-padded channel width

    # flatten spatial to rows, zero-pad channels to 128 lanes, cast to bf16
    x0 = jnp.zeros((N, H * W, CP), jnp.bfloat16)
    x0 = x0.at[:, :, :C].set(x.reshape(N, H * W, C).astype(jnp.bfloat16))

    # per-layer shift/stride matrices (row dims padded to multiples of 8)
    t1, H1, W1 = make_shift_mats(H, W, 1, 64, 64)    # 8x8 -> 8x8 (layers 1,2)
    t3, H3, W3 = make_shift_mats(H1, W1, 2, 16, 64)  # 8x8 -> 4x4
    t4, H4, W4 = make_shift_mats(H3, W3, 2, 8, 16)   # 4x4 -> 2x2
    t5, H5, W5 = make_shift_mats(H4, W4, 2, 8, 8)    # 2x2 -> 1x1

    # BN-folded, channel-padded weights (bf16) + f32 biases
    w1, b1 = prep_layer(params["l1"], CP, 128)
    w2, b2 = prep_layer(params["l2"], CP, 128)
    w3, b3 = prep_layer(params["l3"], CP, 128)
    w4, b4 = prep_layer(params["l4"], CP, 128)
    w5, b5 = prep_layer(params["l5"], CP, 256)

    out_shapes = (
        jax.ShapeDtypeStruct((N, 16, 128), jnp.float32),   # x1 (rows 0..15, ch 0..63)
        jax.ShapeDtypeStruct((N, 8, 128), jnp.float32),    # x2 (rows 0..3,  ch 0..127)
        jax.ShapeDtypeStruct((N, 8, 256), jnp.float32),    # x3 (row  0,     ch 0..255)
    )

    def const_spec(a):
        if a.ndim == 3:
            return pl.BlockSpec(a.shape, lambda n: (0, 0, 0))
        return pl.BlockSpec(a.shape, lambda n: (0, 0))

    in_specs = [
        pl.BlockSpec((1, H * W, CP), lambda n: (n, 0, 0)),      # x0 (per image)
        const_spec(t1), const_spec(t3), const_spec(t4), const_spec(t5),
        const_spec(w1), const_spec(b1),
        const_spec(w2), const_spec(b2),
        const_spec(w3), const_spec(b3),
        const_spec(w4), const_spec(b4),
        const_spec(w5), const_spec(b5),
    ]
    out_specs = (
        pl.BlockSpec((1, 16, 128), lambda n: (n, 0, 0)),
        pl.BlockSpec((1, 8, 128), lambda n: (n, 0, 0)),
        pl.BlockSpec((1, 8, 256), lambda n: (n, 0, 0)),
    )

    x1p, x2p, x3p = pl.pallas_call(
        _features_fused_kernel,
        out_shape=out_shapes,
        grid_spec=pltpu.PrefetchScalarGridSpec(
            num_scalar_prefetch=0,
            grid=(N,),                                  # one image per grid step
            in_specs=in_specs,
            out_specs=out_specs,
        ),
        compiler_params=pltpu.CompilerParams(
            dimension_semantics=("parallel",),          # megacore-sharded on v7x
        ),
    )(x0, t1, t3, t4, t5, w1, b1, w2, b2, w3, b3, w4, b4, w5, b5)

    # un-pad + back to NCHW (layout glue only)
    x1 = jnp.transpose(x1p[:, : H3 * W3, :64].reshape(N, H3, W3, 64), (0, 3, 1, 2))
    x2 = jnp.transpose(x2p[:, : H4 * W4, :128].reshape(N, H4, W4, 128), (0, 3, 1, 2))
    x3 = jnp.transpose(x3p[:, : H5 * W5, :256].reshape(N, H5, W5, 256), (0, 3, 1, 2))
    return x1, x2, x3


# ----------------------------------------------------------------------------
# Pure-JAX f32 reference (XLA conv) for the sanity check
# ----------------------------------------------------------------------------
def fold_bn(gamma, beta, mean, var, eps=1e-5):
    scale = gamma / jnp.sqrt(var + eps)
    return scale, beta - mean * scale


def conv_block_ref(x, p, stride):
    w_hwio = jnp.transpose(p["w"], (2, 3, 1, 0))
    y = jax.lax.conv_general_dilated(
        x, w_hwio, (stride, stride), ((1, 1), (1, 1)),
        dimension_numbers=("NHWC", "HWIO", "NHWC"))
    scale, bias = fold_bn(p["gamma"], p["beta"], p["mean"], p["var"])
    return jnp.maximum(y * scale + bias, 0.0)


def features_forward_ref(x_nchw, params):
    x = jnp.transpose(x_nchw, (0, 2, 3, 1))
    x = space_to_depth_nhwc(x, 2)
    x = conv_block_ref(x, params["l1"], 1)
    x = conv_block_ref(x, params["l2"], 1)
    x1 = conv_block_ref(x, params["l3"], 2)
    x2 = conv_block_ref(x1, params["l4"], 2)
    x3 = conv_block_ref(x2, params["l5"], 2)
    to_nchw = lambda t: jnp.transpose(t, (0, 3, 1, 2))
    return to_nchw(x1), to_nchw(x2), to_nchw(x3)


# ----------------------------------------------------------------------------
# Deterministic synthetic parameters
# ----------------------------------------------------------------------------
def init_conv_bn(key, cin, cout):
    kw, km, kv = jax.random.split(key, 3)
    w = jax.random.normal(kw, (cout, cin, 3, 3), jnp.float32) / np.sqrt(cin * 9)
    return dict(
        w=w,
        gamma=jnp.ones((cout,), jnp.float32),
        beta=jnp.zeros((cout,), jnp.float32),
        mean=0.1 * jax.random.normal(km, (cout,), jnp.float32),
        var=1.0 + 0.1 * jnp.abs(jax.random.normal(kv, (cout,), jnp.float32)),
    )


def init_params(key):
    ks = jax.random.split(key, 5)
    return {
        "l1": init_conv_bn(ks[0], 16, 32),
        "l2": init_conv_bn(ks[1], 32, 32),
        "l3": init_conv_bn(ks[2], 32, 64),
        "l4": init_conv_bn(ks[3], 64, 128),
        "l5": init_conv_bn(ks[4], 128, 256),
    }


if __name__ == "__main__":
    key = jax.random.PRNGKey(0)
    kx, kp = jax.random.split(key)
    x = jax.random.normal(kx, (2, 4, 16, 16), jnp.float32)   # NCHW input
    params = init_params(kp)

    x1, x2, x3 = features_forward_pallas(x, params)
    jax.block_until_ready((x1, x2, x3))

    r1, r2, r3 = features_forward_ref(x, params)
    jax.block_until_ready((r1, r2, r3))

    assert x1.shape == (2, 64, 4, 4) and x2.shape == (2, 128, 2, 2) and x3.shape == (2, 256, 1, 1)
    for a, b in ((x1, r1), (x2, r2), (x3, r3)):
        np.testing.assert_allclose(np.asarray(a), np.asarray(b), rtol=5e-2, atol=5e-2)

    print("KERNEL_OK")
</pallas_src>

<mosaic_0001>
module attributes {stable_mosaic.version = 11 : i64} {
  func.func @_features_fused_kernel(%arg0: i32, %arg1: memref<1x64x128xbf16, #tpu.memory_space<vmem>>, %arg2: memref<9x64x64xbf16, #tpu.memory_space<vmem>>, %arg3: memref<9x16x64xbf16, #tpu.memory_space<vmem>>, %arg4: memref<9x8x16xbf16, #tpu.memory_space<vmem>>, %arg5: memref<9x8x8xbf16, #tpu.memory_space<vmem>>, %arg6: memref<9x128x128xbf16, #tpu.memory_space<vmem>>, %arg7: memref<1x128xf32, #tpu.memory_space<vmem>>, %arg8: memref<9x128x128xbf16, #tpu.memory_space<vmem>>, %arg9: memref<1x128xf32, #tpu.memory_space<vmem>>, %arg10: memref<9x128x128xbf16, #tpu.memory_space<vmem>>, %arg11: memref<1x128xf32, #tpu.memory_space<vmem>>, %arg12: memref<9x128x128xbf16, #tpu.memory_space<vmem>>, %arg13: memref<1x128xf32, #tpu.memory_space<vmem>>, %arg14: memref<9x128x256xbf16, #tpu.memory_space<vmem>>, %arg15: memref<1x256xf32, #tpu.memory_space<vmem>>, %arg16: memref<1x16x128xf32, #tpu.memory_space<vmem>>, %arg17: memref<1x8x128xf32, #tpu.memory_space<vmem>>, %arg18: memref<1x8x256xf32, #tpu.memory_space<vmem>>) attributes {dimension_semantics = [#tpu.dimension_semantics<parallel>], iteration_bounds = array<i64: 2>, scalar_prefetch = 0 : i64, scratch_operands = 0 : i64, tpu.core_type = #tpu.core_type<tc>, window_params = [{transform_indices = @transform_0, window_bounds = array<i64: 1, 64, 128>}, {pipeline_mode = #tpu.pipeline_mode<synchronous>, transform_indices = @transform_1, window_bounds = array<i64: 9, 64, 64>}, {pipeline_mode = #tpu.pipeline_mode<synchronous>, transform_indices = @transform_2, window_bounds = array<i64: 9, 16, 64>}, {pipeline_mode = #tpu.pipeline_mode<synchronous>, transform_indices = @transform_3, window_bounds = array<i64: 9, 8, 16>}, {pipeline_mode = #tpu.pipeline_mode<synchronous>, transform_indices = @transform_4, window_bounds = array<i64: 9, 8, 8>}, {pipeline_mode = #tpu.pipeline_mode<synchronous>, transform_indices = @transform_5, window_bounds = array<i64: 9, 128, 128>}, {pipeline_mode = #tpu.pipeline_mode<synchronous>, transform_indices = @transform_6, window_bounds = array<i64: 1, 128>}, {pipeline_mode = #tpu.pipeline_mode<synchronous>, transform_indices = @transform_7, window_bounds = array<i64: 9, 128, 128>}, {pipeline_mode = #tpu.pipeline_mode<synchronous>, transform_indices = @transform_8, window_bounds = array<i64: 1, 128>}, {pipeline_mode = #tpu.pipeline_mode<synchronous>, transform_indices = @transform_9, window_bounds = array<i64: 9, 128, 128>}, {pipeline_mode = #tpu.pipeline_mode<synchronous>, transform_indices = @transform_10, window_bounds = array<i64: 1, 128>}, {pipeline_mode = #tpu.pipeline_mode<synchronous>, transform_indices = @transform_11, window_bounds = array<i64: 9, 128, 128>}, {pipeline_mode = #tpu.pipeline_mode<synchronous>, transform_indices = @transform_12, window_bounds = array<i64: 1, 128>}, {pipeline_mode = #tpu.pipeline_mode<synchronous>, transform_indices = @transform_13, window_bounds = array<i64: 9, 128, 256>}, {pipeline_mode = #tpu.pipeline_mode<synchronous>, transform_indices = @transform_14, window_bounds = array<i64: 1, 256>}, {transform_indices = @transform_15, window_bounds = array<i64: 1, 16, 128>}, {transform_indices = @transform_16, window_bounds = array<i64: 1, 8, 128>}, {transform_indices = @transform_17, window_bounds = array<i64: 1, 8, 256>}]} {
    %c0 = arith.constant 0 : index
    %c0_0 = arith.constant 0 : index
    %c0_1 = arith.constant 0 : index
    %0 = vector.load %arg1[%c0, %c0_0, %c0_1] : memref<1x64x128xbf16, #tpu.memory_space<vmem>>, vector<1x64x128xbf16>
    %1 = vector.shape_cast %0 : vector<1x64x128xbf16> to vector<64x128xbf16>
    %cst = arith.constant 0.000000e+00 : f32
    %2 = vector.broadcast %cst : f32 to vector<64x128xf32>
    %c0_2 = arith.constant 0 : index
    %c0_3 = arith.constant 0 : index
    %c0_4 = arith.constant 0 : index
    %3 = vector.load %arg2[%c0_2, %c0_3, %c0_4] : memref<9x64x64xbf16, #tpu.memory_space<vmem>>, vector<1x64x64xbf16>
    %4 = vector.shape_cast %3 : vector<1x64x64xbf16> to vector<64x64xbf16>
    %cst_5 = arith.constant dense<0.000000e+00> : vector<64x128xf32>
    %5 = tpu.matmul %4, %1, %cst_5 {dimension_numbers = #tpu.dot_dimension_numbers<[1], [0], [0], [1], [0, 0, 1, 1], [], []>} : vector<64x64xbf16>, vector<64x128xbf16>, vector<64x128xf32> -> vector<64x128xf32>
    %6 = arith.truncf %5 : vector<64x128xf32> to vector<64x128xbf16>
    %c0_6 = arith.constant 0 : index
    %c0_7 = arith.constant 0 : index
    %c0_8 = arith.constant 0 : index
    %7 = vector.load %arg6[%c0_6, %c0_7, %c0_8] : memref<9x128x128xbf16, #tpu.memory_space<vmem>>, vector<1x128x128xbf16>
    %8 = vector.shape_cast %7 : vector<1x128x128xbf16> to vector<128x128xbf16>
    %cst_9 = arith.constant dense<0.000000e+00> : vector<64x128xf32>
    %9 = tpu.matmul %6, %8, %cst_9 {dimension_numbers = #tpu.dot_dimension_numbers<[1], [0], [0], [1], [0, 0, 1, 1], [], []>} : vector<64x128xbf16>, vector<128x128xbf16>, vector<64x128xf32> -> vector<64x128xf32>
    %10 = arith.addf %2, %9 : vector<64x128xf32>
    %c1 = arith.constant 1 : index
    %c0_10 = arith.constant 0 : index
    %c0_11 = arith.constant 0 : index
    %11 = vector.load %arg2[%c1, %c0_10, %c0_11] : memref<9x64x64xbf16, #tpu.memory_space<vmem>>, vector<1x64x64xbf16>
    %12 = vector.shape_cast %11 : vector<1x64x64xbf16> to vector<64x64xbf16>
    %cst_12 = arith.constant dense<0.000000e+00> : vector<64x128xf32>
    %13 = tpu.matmul %12, %1, %cst_12 {dimension_numbers = #tpu.dot_dimension_numbers<[1], [0], [0], [1], [0, 0, 1, 1], [], []>} : vector<64x64xbf16>, vector<64x128xbf16>, vector<64x128xf32> -> vector<64x128xf32>
    %14 = arith.truncf %13 : vector<64x128xf32> to vector<64x128xbf16>
    %c1_13 = arith.constant 1 : index
    %c0_14 = arith.constant 0 : index
    %c0_15 = arith.constant 0 : index
    %15 = vector.load %arg6[%c1_13, %c0_14, %c0_15] : memref<9x128x128xbf16, #tpu.memory_space<vmem>>, vector<1x128x128xbf16>
    %16 = vector.shape_cast %15 : vector<1x128x128xbf16> to vector<128x128xbf16>
    %cst_16 = arith.constant dense<0.000000e+00> : vector<64x128xf32>
    %17 = tpu.matmul %14, %16, %cst_16 {dimension_numbers = #tpu.dot_dimension_numbers<[1], [0], [0], [1], [0, 0, 1, 1], [], []>} : vector<64x128xbf16>, vector<128x128xbf16>, vector<64x128xf32> -> vector<64x128xf32>
    %18 = arith.addf %10, %17 : vector<64x128xf32>
    %c2 = arith.constant 2 : index
    %c0_17 = arith.constant 0 : index
    %c0_18 = arith.constant 0 : index
    %19 = vector.load %arg2[%c2, %c0_17, %c0_18] : memref<9x64x64xbf16, #tpu.memory_space<vmem>>, vector<1x64x64xbf16>
    %20 = vector.shape_cast %19 : vector<1x64x64xbf16> to vector<64x64xbf16>
    %cst_19 = arith.constant dense<0.000000e+00> : vector<64x128xf32>
    %21 = tpu.matmul %20, %1, %cst_19 {dimension_numbers = #tpu.dot_dimension_numbers<[1], [0], [0], [1], [0, 0, 1, 1], [], []>} : vector<64x64xbf16>, vector<64x128xbf16>, vector<64x128xf32> -> vector<64x128xf32>
    %22 = arith.truncf %21 : vector<64x128xf32> to vector<64x128xbf16>
    %c2_20 = arith.constant 2 : index
    %c0_21 = arith.constant 0 : index
    %c0_22 = arith.constant 0 : index
    %23 = vector.load %arg6[%c2_20, %c0_21, %c0_22] : memref<9x128x128xbf16, #tpu.memory_space<vmem>>, vector<1x128x128xbf16>
    %24 = vector.shape_cast %23 : vector<1x128x128xbf16> to vector<128x128xbf16>
    %cst_23 = arith.constant dense<0.000000e+00> : vector<64x128xf32>
    %25 = tpu.matmul %22, %24, %cst_23 {dimension_numbers = #tpu.dot_dimension_numbers<[1], [0], [0], [1], [0, 0, 1, 1], [], []>} : vector<64x128xbf16>, vector<128x128xbf16>, vector<64x128xf32> -> vector<64x128xf32>
    %26 = arith.addf %18, %25 : vector<64x128xf32>
    %c3 = arith.constant 3 : index
    %c0_24 = arith.constant 0 : index
    %c0_25 = arith.constant 0 : index
    %27 = vector.load %arg2[%c3, %c0_24, %c0_25] : memref<9x64x64xbf16, #tpu.memory_space<vmem>>, vector<1x64x64xbf16>
    %28 = vector.shape_cast %27 : vector<1x64x64xbf16> to vector<64x64xbf16>
    %cst_26 = arith.constant dense<0.000000e+00> : vector<64x128xf32>
    %29 = tpu.matmul %28, %1, %cst_26 {dimension_numbers = #tpu.dot_dimension_numbers<[1], [0], [0], [1], [0, 0, 1, 1], [], []>} : vector<64x64xbf16>, vector<64x128xbf16>, vector<64x128xf32> -> vector<64x128xf32>
    %30 = arith.truncf %29 : vector<64x128xf32> to vector<64x128xbf16>
    %c3_27 = arith.constant 3 : index
    %c0_28 = arith.constant 0 : index
    %c0_29 = arith.constant 0 : index
    %31 = vector.load %arg6[%c3_27, %c0_28, %c0_29] : memref<9x128x128xbf16, #tpu.memory_space<vmem>>, vector<1x128x128xbf16>
    %32 = vector.shape_cast %31 : vector<1x128x128xbf16> to vector<128x128xbf16>
    %cst_30 = arith.constant dense<0.000000e+00> : vector<64x128xf32>
    %33 = tpu.matmul %30, %32, %cst_30 {dimension_numbers = #tpu.dot_dimension_numbers<[1], [0], [0], [1], [0, 0, 1, 1], [], []>} : vector<64x128xbf16>, vector<128x128xbf16>, vector<64x128xf32> -> vector<64x128xf32>
    %34 = arith.addf %26, %33 : vector<64x128xf32>
    %c4 = arith.constant 4 : index
    %c0_31 = arith.constant 0 : index
    %c0_32 = arith.constant 0 : index
    %35 = vector.load %arg2[%c4, %c0_31, %c0_32] : memref<9x64x64xbf16, #tpu.memory_space<vmem>>, vector<1x64x64xbf16>
    %36 = vector.shape_cast %35 : vector<1x64x64xbf16> to vector<64x64xbf16>
    %cst_33 = arith.constant dense<0.000000e+00> : vector<64x128xf32>
    %37 = tpu.matmul %36, %1, %cst_33 {dimension_numbers = #tpu.dot_dimension_numbers<[1], [0], [0], [1], [0, 0, 1, 1], [], []>} : vector<64x64xbf16>, vector<64x128xbf16>, vector<64x128xf32> -> vector<64x128xf32>
    %38 = arith.truncf %37 : vector<64x128xf32> to vector<64x128xbf16>
    %c4_34 = arith.constant 4 : index
    %c0_35 = arith.constant 0 : index
    %c0_36 = arith.constant 0 : index
    %39 = vector.load %arg6[%c4_34, %c0_35, %c0_36] : memref<9x128x128xbf16, #tpu.memory_space<vmem>>, vector<1x128x128xbf16>
    %40 = vector.shape_cast %39 : vector<1x128x128xbf16> to vector<128x128xbf16>
    %cst_37 = arith.constant dense<0.000000e+00> : vector<64x128xf32>
    %41 = tpu.matmul %38, %40, %cst_37 {dimension_numbers = #tpu.dot_dimension_numbers<[1], [0], [0], [1], [0, 0, 1, 1], [], []>} : vector<64x128xbf16>, vector<128x128xbf16>, vector<64x128xf32> -> vector<64x128xf32>
    %42 = arith.addf %34, %41 : vector<64x128xf32>
    %c5 = arith.constant 5 : index
    %c0_38 = arith.constant 0 : index
    %c0_39 = arith.constant 0 : index
    %43 = vector.load %arg2[%c5, %c0_38, %c0_39] : memref<9x64x64xbf16, #tpu.memory_space<vmem>>, vector<1x64x64xbf16>
    %44 = vector.shape_cast %43 : vector<1x64x64xbf16> to vector<64x64xbf16>
    %cst_40 = arith.constant dense<0.000000e+00> : vector<64x128xf32>
    %45 = tpu.matmul %44, %1, %cst_40 {dimension_numbers = #tpu.dot_dimension_numbers<[1], [0], [0], [1], [0, 0, 1, 1], [], []>} : vector<64x64xbf16>, vector<64x128xbf16>, vector<64x128xf32> -> vector<64x128xf32>
    %46 = arith.truncf %45 : vector<64x128xf32> to vector<64x128xbf16>
    %c5_41 = arith.constant 5 : index
    %c0_42 = arith.constant 0 : index
    %c0_43 = arith.constant 0 : index
    %47 = vector.load %arg6[%c5_41, %c0_42, %c0_43] : memref<9x128x128xbf16, #tpu.memory_space<vmem>>, vector<1x128x128xbf16>
    %48 = vector.shape_cast %47 : vector<1x128x128xbf16> to vector<128x128xbf16>
    %cst_44 = arith.constant dense<0.000000e+00> : vector<64x128xf32>
    %49 = tpu.matmul %46, %48, %cst_44 {dimension_numbers = #tpu.dot_dimension_numbers<[1], [0], [0], [1], [0, 0, 1, 1], [], []>} : vector<64x128xbf16>, vector<128x128xbf16>, vector<64x128xf32> -> vector<64x128xf32>
    %50 = arith.addf %42, %49 : vector<64x128xf32>
    %c6 = arith.constant 6 : index
    %c0_45 = arith.constant 0 : index
    %c0_46 = arith.constant 0 : index
    %51 = vector.load %arg2[%c6, %c0_45, %c0_46] : memref<9x64x64xbf16, #tpu.memory_space<vmem>>, vector<1x64x64xbf16>
    %52 = vector.shape_cast %51 : vector<1x64x64xbf16> to vector<64x64xbf16>
    %cst_47 = arith.constant dense<0.000000e+00> : vector<64x128xf32>
    %53 = tpu.matmul %52, %1, %cst_47 {dimension_numbers = #tpu.dot_dimension_numbers<[1], [0], [0], [1], [0, 0, 1, 1], [], []>} : vector<64x64xbf16>, vector<64x128xbf16>, vector<64x128xf32> -> vector<64x128xf32>
    %54 = arith.truncf %53 : vector<64x128xf32> to vector<64x128xbf16>
    %c6_48 = arith.constant 6 : index
    %c0_49 = arith.constant 0 : index
    %c0_50 = arith.constant 0 : index
    %55 = vector.load %arg6[%c6_48, %c0_49, %c0_50] : memref<9x128x128xbf16, #tpu.memory_space<vmem>>, vector<1x128x128xbf16>
    %56 = vector.shape_cast %55 : vector<1x128x128xbf16> to vector<128x128xbf16>
    %cst_51 = arith.constant dense<0.000000e+00> : vector<64x128xf32>
    %57 = tpu.matmul %54, %56, %cst_51 {dimension_numbers = #tpu.dot_dimension_numbers<[1], [0], [0], [1], [0, 0, 1, 1], [], []>} : vector<64x128xbf16>, vector<128x128xbf16>, vector<64x128xf32> -> vector<64x128xf32>
    %58 = arith.addf %50, %57 : vector<64x128xf32>
    %c7 = arith.constant 7 : index
    %c0_52 = arith.constant 0 : index
    %c0_53 = arith.constant 0 : index
    %59 = vector.load %arg2[%c7, %c0_52, %c0_53] : memref<9x64x64xbf16, #tpu.memory_space<vmem>>, vector<1x64x64xbf16>
    %60 = vector.shape_cast %59 : vector<1x64x64xbf16> to vector<64x64xbf16>
    %cst_54 = arith.constant dense<0.000000e+00> : vector<64x128xf32>
    %61 = tpu.matmul %60, %1, %cst_54 {dimension_numbers = #tpu.dot_dimension_numbers<[1], [0], [0], [1], [0, 0, 1, 1], [], []>} : vector<64x64xbf16>, vector<64x128xbf16>, vector<64x128xf32> -> vector<64x128xf32>
    %62 = arith.truncf %61 : vector<64x128xf32> to vector<64x128xbf16>
    %c7_55 = arith.constant 7 : index
    %c0_56 = arith.constant 0 : index
    %c0_57 = arith.constant 0 : index
    %63 = vector.load %arg6[%c7_55, %c0_56, %c0_57] : memref<9x128x128xbf16, #tpu.memory_space<vmem>>, vector<1x128x128xbf16>
    %64 = vector.shape_cast %63 : vector<1x128x128xbf16> to vector<128x128xbf16>
    %cst_58 = arith.constant dense<0.000000e+00> : vector<64x128xf32>
    %65 = tpu.matmul %62, %64, %cst_58 {dimension_numbers = #tpu.dot_dimension_numbers<[1], [0], [0], [1], [0, 0, 1, 1], [], []>} : vector<64x128xbf16>, vector<128x128xbf16>, vector<64x128xf32> -> vector<64x128xf32>
    %66 = arith.addf %58, %65 : vector<64x128xf32>
    %c8 = arith.constant 8 : index
    %c0_59 = arith.constant 0 : index
    %c0_60 = arith.constant 0 : index
    %67 = vector.load %arg2[%c8, %c0_59, %c0_60] : memref<9x64x64xbf16, #tpu.memory_space<vmem>>, vector<1x64x64xbf16>
    %68 = vector.shape_cast %67 : vector<1x64x64xbf16> to vector<64x64xbf16>
    %cst_61 = arith.constant dense<0.000000e+00> : vector<64x128xf32>
    %69 = tpu.matmul %68, %1, %cst_61 {dimension_numbers = #tpu.dot_dimension_numbers<[1], [0], [0], [1], [0, 0, 1, 1], [], []>} : vector<64x64xbf16>, vector<64x128xbf16>, vector<64x128xf32> -> vector<64x128xf32>
    %70 = arith.truncf %69 : vector<64x128xf32> to vector<64x128xbf16>
    %c8_62 = arith.constant 8 : index
    %c0_63 = arith.constant 0 : index
    %c0_64 = arith.constant 0 : index
    %71 = vector.load %arg6[%c8_62, %c0_63, %c0_64] : memref<9x128x128xbf16, #tpu.memory_space<vmem>>, vector<1x128x128xbf16>
    %72 = vector.shape_cast %71 : vector<1x128x128xbf16> to vector<128x128xbf16>
    %cst_65 = arith.constant dense<0.000000e+00> : vector<64x128xf32>
    %73 = tpu.matmul %70, %72, %cst_65 {dimension_numbers = #tpu.dot_dimension_numbers<[1], [0], [0], [1], [0, 0, 1, 1], [], []>} : vector<64x128xbf16>, vector<128x128xbf16>, vector<64x128xf32> -> vector<64x128xf32>
    %74 = arith.addf %66, %73 : vector<64x128xf32>
    %c0_66 = arith.constant 0 : index
    %c0_67 = arith.constant 0 : index
    %75 = vector.load %arg7[%c0_66, %c0_67] : memref<1x128xf32, #tpu.memory_space<vmem>>, vector<1x128xf32>
    %76 = vector.broadcast %75 : vector<1x128xf32> to vector<64x128xf32>
    %77 = arith.addf %74, %76 : vector<64x128xf32>
    %cst_68 = arith.constant 0.000000e+00 : f32
    %78 = vector.broadcast %cst_68 : f32 to vector<64x128xf32>
    %79 = arith.maximumf %77, %78 : vector<64x128xf32>
    %80 = arith.truncf %79 : vector<64x128xf32> to vector<64x128xbf16>
    %cst_69 = arith.constant 0.000000e+00 : f32
    %81 = vector.broadcast %cst_69 : f32 to vector<64x128xf32>
    %c0_70 = arith.constant 0 : index
    %c0_71 = arith.constant 0 : index
    %c0_72 = arith.constant 0 : index
    %82 = vector.load %arg2[%c0_70, %c0_71, %c0_72] : memref<9x64x64xbf16, #tpu.memory_space<vmem>>, vector<1x64x64xbf16>
    %83 = vector.shape_cast %82 : vector<1x64x64xbf16> to vector<64x64xbf16>
    %cst_73 = arith.constant dense<0.000000e+00> : vector<64x128xf32>
    %84 = tpu.matmul %83, %80, %cst_73 {dimension_numbers = #tpu.dot_dimension_numbers<[1], [0], [0], [1], [0, 0, 1, 1], [], []>} : vector<64x64xbf16>, vector<64x128xbf16>, vector<64x128xf32> -> vector<64x128xf32>
    %85 = arith.truncf %84 : vector<64x128xf32> to vector<64x128xbf16>
    %c0_74 = arith.constant 0 : index
    %c0_75 = arith.constant 0 : index
    %c0_76 = arith.constant 0 : index
    %86 = vector.load %arg8[%c0_74, %c0_75, %c0_76] : memref<9x128x128xbf16, #tpu.memory_space<vmem>>, vector<1x128x128xbf16>
    %87 = vector.shape_cast %86 : vector<1x128x128xbf16> to vector<128x128xbf16>
    %cst_77 = arith.constant dense<0.000000e+00> : vector<64x128xf32>
    %88 = tpu.matmul %85, %87, %cst_77 {dimension_numbers = #tpu.dot_dimension_numbers<[1], [0], [0], [1], [0, 0, 1, 1], [], []>} : vector<64x128xbf16>, vector<128x128xbf16>, vector<64x128xf32> -> vector<64x128xf32>
    %89 = arith.addf %81, %88 : vector<64x128xf32>
    %c1_78 = arith.constant 1 : index
    %c0_79 = arith.constant 0 : index
    %c0_80 = arith.constant 0 : index
    %90 = vector.load %arg2[%c1_78, %c0_79, %c0_80] : memref<9x64x64xbf16, #tpu.memory_space<vmem>>, vector<1x64x64xbf16>
    %91 = vector.shape_cast %90 : vector<1x64x64xbf16> to vector<64x64xbf16>
    %cst_81 = arith.constant dense<0.000000e+00> : vector<64x128xf32>
    %92 = tpu.matmul %91, %80, %cst_81 {dimension_numbers = #tpu.dot_dimension_numbers<[1], [0], [0], [1], [0, 0, 1, 1], [], []>} : vector<64x64xbf16>, vector<64x128xbf16>, vector<64x128xf32> -> vector<64x128xf32>
    %93 = arith.truncf %92 : vector<64x128xf32> to vector<64x128xbf16>
    %c1_82 = arith.constant 1 : index
    %c0_83 = arith.constant 0 : index
    %c0_84 = arith.constant 0 : index
    %94 = vector.load %arg8[%c1_82, %c0_83, %c0_84] : memref<9x128x128xbf16, #tpu.memory_space<vmem>>, vector<1x128x128xbf16>
    %95 = vector.shape_cast %94 : vector<1x128x128xbf16> to vector<128x128xbf16>
    %cst_85 = arith.constant dense<0.000000e+00> : vector<64x128xf32>
    %96 = tpu.matmul %93, %95, %cst_85 {dimension_numbers = #tpu.dot_dimension_numbers<[1], [0], [0], [1], [0, 0, 1, 1], [], []>} : vector<64x128xbf16>, vector<128x128xbf16>, vector<64x128xf32> -> vector<64x128xf32>
    %97 = arith.addf %89, %96 : vector<64x128xf32>
    %c2_86 = arith.constant 2 : index
    %c0_87 = arith.constant 0 : index
    %c0_88 = arith.constant 0 : index
    %98 = vector.load %arg2[%c2_86, %c0_87, %c0_88] : memref<9x64x64xbf16, #tpu.memory_space<vmem>>, vector<1x64x64xbf16>
    %99 = vector.shape_cast %98 : vector<1x64x64xbf16> to vector<64x64xbf16>
    %cst_89 = arith.constant dense<0.000000e+00> : vector<64x128xf32>
    %100 = tpu.matmul %99, %80, %cst_89 {dimension_numbers = #tpu.dot_dimension_numbers<[1], [0], [0], [1], [0, 0, 1, 1], [], []>} : vector<64x64xbf16>, vector<64x128xbf16>, vector<64x128xf32> -> vector<64x128xf32>
    %101 = arith.truncf %100 : vector<64x128xf32> to vector<64x128xbf16>
    %c2_90 = arith.constant 2 : index
    %c0_91 = arith.constant 0 : index
    %c0_92 = arith.constant 0 : index
    %102 = vector.load %arg8[%c2_90, %c0_91, %c0_92] : memref<9x128x128xbf16, #tpu.memory_space<vmem>>, vector<1x128x128xbf16>
    %103 = vector.shape_cast %102 : vector<1x128x128xbf16> to vector<128x128xbf16>
    %cst_93 = arith.constant dense<0.000000e+00> : vector<64x128xf32>
    %104 = tpu.matmul %101, %103, %cst_93 {dimension_numbers = #tpu.dot_dimension_numbers<[1], [0], [0], [1], [0, 0, 1, 1], [], []>} : vector<64x128xbf16>, vector<128x128xbf16>, vector<64x128xf32> -> vector<64x128xf32>
    %105 = arith.addf %97, %104 : vector<64x128xf32>
    %c3_94 = arith.constant 3 : index
    %c0_95 = arith.constant 0 : index
    %c0_96 = arith.constant 0 : index
    %106 = vector.load %arg2[%c3_94, %c0_95, %c0_96] : memref<9x64x64xbf16, #tpu.memory_space<vmem>>, vector<1x64x64xbf16>
    %107 = vector.shape_cast %106 : vector<1x64x64xbf16> to vector<64x64xbf16>
    %cst_97 = arith.constant dense<0.000000e+00> : vector<64x128xf32>
    %108 = tpu.matmul %107, %80, %cst_97 {dimension_numbers = #tpu.dot_dimension_numbers<[1], [0], [0], [1], [0, 0, 1, 1], [], []>} : vector<64x64xbf16>, vector<64x128xbf16>, vector<64x128xf32> -> vector<64x128xf32>
    %109 = arith.truncf %108 : vector<64x128xf32> to vector<64x128xbf16>
    %c3_98 = arith.constant 3 : index
    %c0_99 = arith.constant 0 : index
    %c0_100 = arith.constant 0 : index
    %110 = vector.load %arg8[%c3_98, %c0_99, %c0_100] : memref<9x128x128xbf16, #tpu.memory_space<vmem>>, vector<1x128x128xbf16>
    %111 = vector.shape_cast %110 : vector<1x128x128xbf16> to vector<128x128xbf16>
    %cst_101 = arith.constant dense<0.000000e+00> : vector<64x128xf32>
    %112 = tpu.matmul %109, %111, %cst_101 {dimension_numbers = #tpu.dot_dimension_numbers<[1], [0], [0], [1], [0, 0, 1, 1], [], []>} : vector<64x128xbf16>, vector<128x128xbf16>, vector<64x128xf32> -> vector<64x128xf32>
    %113 = arith.addf %105, %112 : vector<64x128xf32>
    %c4_102 = arith.constant 4 : index
    %c0_103 = arith.constant 0 : index
    %c0_104 = arith.constant 0 : index
    %114 = vector.load %arg2[%c4_102, %c0_103, %c0_104] : memref<9x64x64xbf16, #tpu.memory_space<vmem>>, vector<1x64x64xbf16>
    %115 = vector.shape_cast %114 : vector<1x64x64xbf16> to vector<64x64xbf16>
    %cst_105 = arith.constant dense<0.000000e+00> : vector<64x128xf32>
    %116 = tpu.matmul %115, %80, %cst_105 {dimension_numbers = #tpu.dot_dimension_numbers<[1], [0], [0], [1], [0, 0, 1, 1], [], []>} : vector<64x64xbf16>, vector<64x128xbf16>, vector<64x128xf32> -> vector<64x128xf32>
    %117 = arith.truncf %116 : vector<64x128xf32> to vector<64x128xbf16>
    %c4_106 = arith.constant 4 : index
    %c0_107 = arith.constant 0 : index
    %c0_108 = arith.constant 0 : index
    %118 = vector.load %arg8[%c4_106, %c0_107, %c0_108] : memref<9x128x128xbf16, #tpu.memory_space<vmem>>, vector<1x128x128xbf16>
    %119 = vector.shape_cast %118 : vector<1x128x128xbf16> to vector<128x128xbf16>
    %cst_109 = arith.constant dense<0.000000e+00> : vector<64x128xf32>
    %120 = tpu.matmul %117, %119, %cst_109 {dimension_numbers = #tpu.dot_dimension_numbers<[1], [0], [0], [1], [0, 0, 1, 1], [], []>} : vector<64x128xbf16>, vector<128x128xbf16>, vector<64x128xf32> -> vector<64x128xf32>
    %121 = arith.addf %113, %120 : vector<64x128xf32>
    %c5_110 = arith.constant 5 : index
    %c0_111 = arith.constant 0 : index
    %c0_112 = arith.constant 0 : index
    %122 = vector.load %arg2[%c5_110, %c0_111, %c0_112] : memref<9x64x64xbf16, #tpu.memory_space<vmem>>, vector<1x64x64xbf16>
    %123 = vector.shape_cast %122 : vector<1x64x64xbf16> to vector<64x64xbf16>
    %cst_113 = arith.constant dense<0.000000e+00> : vector<64x128xf32>
    %124 = tpu.matmul %123, %80, %cst_113 {dimension_numbers = #tpu.dot_dimension_numbers<[1], [0], [0], [1], [0, 0, 1, 1], [], []>} : vector<64x64xbf16>, vector<64x128xbf16>, vector<64x128xf32> -> vector<64x128xf32>
    %125 = arith.truncf %124 : vector<64x128xf32> to vector<64x128xbf16>
    %c5_114 = arith.constant 5 : index
    %c0_115 = arith.constant 0 : index
    %c0_116 = arith.constant 0 : index
    %126 = vector.load %arg8[%c5_114, %c0_115, %c0_116] : memref<9x128x128xbf16, #tpu.memory_space<vmem>>, vector<1x128x128xbf16>
    %127 = vector.shape_cast %126 : vector<1x128x128xbf16> to vector<128x128xbf16>
    %cst_117 = arith.constant dense<0.000000e+00> : vector<64x128xf32>
    %128 = tpu.matmul %125, %127, %cst_117 {dimension_numbers = #tpu.dot_dimension_numbers<[1], [0], [0], [1], [0, 0, 1, 1], [], []>} : vector<64x128xbf16>, vector<128x128xbf16>, vector<64x128xf32> -> vector<64x128xf32>
    %129 = arith.addf %121, %128 : vector<64x128xf32>
    %c6_118 = arith.constant 6 : index
    %c0_119 = arith.constant 0 : index
    %c0_120 = arith.constant 0 : index
    %130 = vector.load %arg2[%c6_118, %c0_119, %c0_120] : memref<9x64x64xbf16, #tpu.memory_space<vmem>>, vector<1x64x64xbf16>
    %131 = vector.shape_cast %130 : vector<1x64x64xbf16> to vector<64x64xbf16>
    %cst_121 = arith.constant dense<0.000000e+00> : vector<64x128xf32>
    %132 = tpu.matmul %131, %80, %cst_121 {dimension_numbers = #tpu.dot_dimension_numbers<[1], [0], [0], [1], [0, 0, 1, 1], [], []>} : vector<64x64xbf16>, vector<64x128xbf16>, vector<64x128xf32> -> vector<64x128xf32>
    %133 = arith.truncf %132 : vector<64x128xf32> to vector<64x128xbf16>
    %c6_122 = arith.constant 6 : index
    %c0_123 = arith.constant 0 : index
    %c0_124 = arith.constant 0 : index
    %134 = vector.load %arg8[%c6_122, %c0_123, %c0_124] : memref<9x128x128xbf16, #tpu.memory_space<vmem>>, vector<1x128x128xbf16>
    %135 = vector.shape_cast %134 : vector<1x128x128xbf16> to vector<128x128xbf16>
    %cst_125 = arith.constant dense<0.000000e+00> : vector<64x128xf32>
    %136 = tpu.matmul %133, %135, %cst_125 {dimension_numbers = #tpu.dot_dimension_numbers<[1], [0], [0], [1], [0, 0, 1, 1], [], []>} : vector<64x128xbf16>, vector<128x128xbf16>, vector<64x128xf32> -> vector<64x128xf32>
    %137 = arith.addf %129, %136 : vector<64x128xf32>
    %c7_126 = arith.constant 7 : index
    %c0_127 = arith.constant 0 : index
    %c0_128 = arith.constant 0 : index
    %138 = vector.load %arg2[%c7_126, %c0_127, %c0_128] : memref<9x64x64xbf16, #tpu.memory_space<vmem>>, vector<1x64x64xbf16>
    %139 = vector.shape_cast %138 : vector<1x64x64xbf16> to vector<64x64xbf16>
    %cst_129 = arith.constant dense<0.000000e+00> : vector<64x128xf32>
    %140 = tpu.matmul %139, %80, %cst_129 {dimension_numbers = #tpu.dot_dimension_numbers<[1], [0], [0], [1], [0, 0, 1, 1], [], []>} : vector<64x64xbf16>, vector<64x128xbf16>, vector<64x128xf32> -> vector<64x128xf32>
    %141 = arith.truncf %140 : vector<64x128xf32> to vector<64x128xbf16>
    %c7_130 = arith.constant 7 : index
    %c0_131 = arith.constant 0 : index
    %c0_132 = arith.constant 0 : index
    %142 = vector.load %arg8[%c7_130, %c0_131, %c0_132] : memref<9x128x128xbf16, #tpu.memory_space<vmem>>, vector<1x128x128xbf16>
    %143 = vector.shape_cast %142 : vector<1x128x128xbf16> to vector<128x128xbf16>
    %cst_133 = arith.constant dense<0.000000e+00> : vector<64x128xf32>
    %144 = tpu.matmul %141, %143, %cst_133 {dimension_numbers = #tpu.dot_dimension_numbers<[1], [0], [0], [1], [0, 0, 1, 1], [], []>} : vector<64x128xbf16>, vector<128x128xbf16>, vector<64x128xf32> -> vector<64x128xf32>
    %145 = arith.addf %137, %144 : vector<64x128xf32>
    %c8_134 = arith.constant 8 : index
    %c0_135 = arith.constant 0 : index
    %c0_136 = arith.constant 0 : index
    %146 = vector.load %arg2[%c8_134, %c0_135, %c0_136] : memref<9x64x64xbf16, #tpu.memory_space<vmem>>, vector<1x64x64xbf16>
    %147 = vector.shape_cast %146 : vector<1x64x64xbf16> to vector<64x64xbf16>
    %cst_137 = arith.constant dense<0.000000e+00> : vector<64x128xf32>
    %148 = tpu.matmul %147, %80, %cst_137 {dimension_numbers = #tpu.dot_dimension_numbers<[1], [0], [0], [1], [0, 0, 1, 1], [], []>} : vector<64x64xbf16>, vector<64x128xbf16>, vector<64x128xf32> -> vector<64x128xf32>
    %149 = arith.truncf %148 : vector<64x128xf32> to vector<64x128xbf16>
    %c8_138 = arith.constant 8 : index
    %c0_139 = arith.constant 0 : index
    %c0_140 = arith.constant 0 : index
    %150 = vector.load %arg8[%c8_138, %c0_139, %c0_140] : memref<9x128x128xbf16, #tpu.memory_space<vmem>>, vector<1x128x128xbf16>
    %151 = vector.shape_cast %150 : vector<1x128x128xbf16> to vector<128x128xbf16>
    %cst_141 = arith.constant dense<0.000000e+00> : vector<64x128xf32>
    %152 = tpu.matmul %149, %151, %cst_141 {dimension_numbers = #tpu.dot_dimension_numbers<[1], [0], [0], [1], [0, 0, 1, 1], [], []>} : vector<64x128xbf16>, vector<128x128xbf16>, vector<64x128xf32> -> vector<64x128xf32>
    %153 = arith.addf %145, %152 : vector<64x128xf32>
    %c0_142 = arith.constant 0 : index
    %c0_143 = arith.constant 0 : index
    %154 = vector.load %arg9[%c0_142, %c0_143] : memref<1x128xf32, #tpu.memory_space<vmem>>, vector<1x128xf32>
    %155 = vector.broadcast %154 : vector<1x128xf32> to vector<64x128xf32>
    %156 = arith.addf %153, %155 : vector<64x128xf32>
    %cst_144 = arith.constant 0.000000e+00 : f32
    %157 = vector.broadcast %cst_144 : f32 to vector<64x128xf32>
    %158 = arith.maximumf %156, %157 : vector<64x128xf32>
    %159 = arith.truncf %158 : vector<64x128xf32> to vector<64x128xbf16>
    %cst_145 = arith.constant 0.000000e+00 : f32
    %160 = vector.broadcast %cst_145 : f32 to vector<16x128xf32>
    %c0_146 = arith.constant 0 : index
    %c0_147 = arith.constant 0 : index
    %c0_148 = arith.constant 0 : index
    %161 = vector.load %arg3[%c0_146, %c0_147, %c0_148] : memref<9x16x64xbf16, #tpu.memory_space<vmem>>, vector<1x16x64xbf16>
    %162 = vector.shape_cast %161 : vector<1x16x64xbf16> to vector<16x64xbf16>
    %cst_149 = arith.constant dense<0.000000e+00> : vector<16x128xf32>
    %163 = tpu.matmul %162, %159, %cst_149 {dimension_numbers = #tpu.dot_dimension_numbers<[1], [0], [0], [1], [0, 0, 1, 1], [], []>} : vector<16x64xbf16>, vector<64x128xbf16>, vector<16x128xf32> -> vector<16x128xf32>
    %164 = arith.truncf %163 : vector<16x128xf32> to vector<16x128xbf16>
    %c0_150 = arith.constant 0 : index
    %c0_151 = arith.constant 0 : index
    %c0_152 = arith.constant 0 : index
    %165 = vector.load %arg10[%c0_150, %c0_151, %c0_152] : memref<9x128x128xbf16, #tpu.memory_space<vmem>>, vector<1x128x128xbf16>
    %166 = vector.shape_cast %165 : vector<1x128x128xbf16> to vector<128x128xbf16>
    %cst_153 = arith.constant dense<0.000000e+00> : vector<16x128xf32>
    %167 = tpu.matmul %164, %166, %cst_153 {dimension_numbers = #tpu.dot_dimension_numbers<[1], [0], [0], [1], [0, 0, 1, 1], [], []>} : vector<16x128xbf16>, vector<128x128xbf16>, vector<16x128xf32> -> vector<16x128xf32>
    %168 = arith.addf %160, %167 : vector<16x128xf32>
    %c1_154 = arith.constant 1 : index
    %c0_155 = arith.constant 0 : index
    %c0_156 = arith.constant 0 : index
    %169 = vector.load %arg3[%c1_154, %c0_155, %c0_156] : memref<9x16x64xbf16, #tpu.memory_space<vmem>>, vector<1x16x64xbf16>
    %170 = vector.shape_cast %169 : vector<1x16x64xbf16> to vector<16x64xbf16>
    %cst_157 = arith.constant dense<0.000000e+00> : vector<16x128xf32>
    %171 = tpu.matmul %170, %159, %cst_157 {dimension_numbers = #tpu.dot_dimension_numbers<[1], [0], [0], [1], [0, 0, 1, 1], [], []>} : vector<16x64xbf16>, vector<64x128xbf16>, vector<16x128xf32> -> vector<16x128xf32>
    %172 = arith.truncf %171 : vector<16x128xf32> to vector<16x128xbf16>
    %c1_158 = arith.constant 1 : index
    %c0_159 = arith.constant 0 : index
    %c0_160 = arith.constant 0 : index
    %173 = vector.load %arg10[%c1_158, %c0_159, %c0_160] : memref<9x128x128xbf16, #tpu.memory_space<vmem>>, vector<1x128x128xbf16>
    %174 = vector.shape_cast %173 : vector<1x128x128xbf16> to vector<128x128xbf16>
    %cst_161 = arith.constant dense<0.000000e+00> : vector<16x128xf32>
    %175 = tpu.matmul %172, %174, %cst_161 {dimension_numbers = #tpu.dot_dimension_numbers<[1], [0], [0], [1], [0, 0, 1, 1], [], []>} : vector<16x128xbf16>, vector<128x128xbf16>, vector<16x128xf32> -> vector<16x128xf32>
    %176 = arith.addf %168, %175 : vector<16x128xf32>
    %c2_162 = arith.constant 2 : index
    %c0_163 = arith.constant 0 : index
    %c0_164 = arith.constant 0 : index
    %177 = vector.load %arg3[%c2_162, %c0_163, %c0_164] : memref<9x16x64xbf16, #tpu.memory_space<vmem>>, vector<1x16x64xbf16>
    %178 = vector.shape_cast %177 : vector<1x16x64xbf16> to vector<16x64xbf16>
    %cst_165 = arith.constant dense<0.000000e+00> : vector<16x128xf32>
    %179 = tpu.matmul %178, %159, %cst_165 {dimension_numbers = #tpu.dot_dimension_numbers<[1], [0], [0], [1], [0, 0, 1, 1], [], []>} : vector<16x64xbf16>, vector<64x128xbf16>, vector<16x128xf32> -> vector<16x128xf32>
    %180 = arith.truncf %179 : vector<16x128xf32> to vector<16x128xbf16>
    %c2_166 = arith.constant 2 : index
    %c0_167 = arith.constant 0 : index
    %c0_168 = arith.constant 0 : index
    %181 = vector.load %arg10[%c2_166, %c0_167, %c0_168] : memref<9x128x128xbf16, #tpu.memory_space<vmem>>, vector<1x128x128xbf16>
    %182 = vector.shape_cast %181 : vector<1x128x128xbf16> to vector<128x128xbf16>
    %cst_169 = arith.constant dense<0.000000e+00> : vector<16x128xf32>
    %183 = tpu.matmul %180, %182, %cst_169 {dimension_numbers = #tpu.dot_dimension_numbers<[1], [0], [0], [1], [0, 0, 1, 1], [], []>} : vector<16x128xbf16>, vector<128x128xbf16>, vector<16x128xf32> -> vector<16x128xf32>
    %184 = arith.addf %176, %183 : vector<16x128xf32>
    %c3_170 = arith.constant 3 : index
    %c0_171 = arith.constant 0 : index
    %c0_172 = arith.constant 0 : index
    %185 = vector.load %arg3[%c3_170, %c0_171, %c0_172] : memref<9x16x64xbf16, #tpu.memory_space<vmem>>, vector<1x16x64xbf16>
    %186 = vector.shape_cast %185 : vector<1x16x64xbf16> to vector<16x64xbf16>
    %cst_173 = arith.constant dense<0.000000e+00> : vector<16x128xf32>
    %187 = tpu.matmul %186, %159, %cst_173 {dimension_numbers = #tpu.dot_dimension_numbers<[1], [0], [0], [1], [0, 0, 1, 1], [], []>} : vector<16x64xbf16>, vector<64x128xbf16>, vector<16x128xf32> -> vector<16x128xf32>
    %188 = arith.truncf %187 : vector<16x128xf32> to vector<16x128xbf16>
    %c3_174 = arith.constant 3 : index
    %c0_175 = arith.constant 0 : index
    %c0_176 = arith.constant 0 : index
    %189 = vector.load %arg10[%c3_174, %c0_175, %c0_176] : memref<9x128x128xbf16, #tpu.memory_space<vmem>>, vector<1x128x128xbf16>
    %190 = vector.shape_cast %189 : vector<1x128x128xbf16> to vector<128x128xbf16>
    %cst_177 = arith.constant dense<0.000000e+00> : vector<16x128xf32>
    %191 = tpu.matmul %188, %190, %cst_177 {dimension_numbers = #tpu.dot_dimension_numbers<[1], [0], [0], [1], [0, 0, 1, 1], [], []>} : vector<16x128xbf16>, vector<128x128xbf16>, vector<16x128xf32> -> vector<16x128xf32>
    %192 = arith.addf %184, %191 : vector<16x128xf32>
    %c4_178 = arith.constant 4 : index
    %c0_179 = arith.constant 0 : index
    %c0_180 = arith.constant 0 : index
    %193 = vector.load %arg3[%c4_178, %c0_179, %c0_180] : memref<9x16x64xbf16, #tpu.memory_space<vmem>>, vector<1x16x64xbf16>
    %194 = vector.shape_cast %193 : vector<1x16x64xbf16> to vector<16x64xbf16>
    %cst_181 = arith.constant dense<0.000000e+00> : vector<16x128xf32>
    %195 = tpu.matmul %194, %159, %cst_181 {dimension_numbers = #tpu.dot_dimension_numbers<[1], [0], [0], [1], [0, 0, 1, 1], [], []>} : vector<16x64xbf16>, vector<64x128xbf16>, vector<16x128xf32> -> vector<16x128xf32>
    %196 = arith.truncf %195 : vector<16x128xf32> to vector<16x128xbf16>
    %c4_182 = arith.constant 4 : index
    %c0_183 = arith.constant 0 : index
    %c0_184 = arith.constant 0 : index
    %197 = vector.load %arg10[%c4_182, %c0_183, %c0_184] : memref<9x128x128xbf16, #tpu.memory_space<vmem>>, vector<1x128x128xbf16>
    %198 = vector.shape_cast %197 : vector<1x128x128xbf16> to vector<128x128xbf16>
    %cst_185 = arith.constant dense<0.000000e+00> : vector<16x128xf32>
    %199 = tpu.matmul %196, %198, %cst_185 {dimension_numbers = #tpu.dot_dimension_numbers<[1], [0], [0], [1], [0, 0, 1, 1], [], []>} : vector<16x128xbf16>, vector<128x128xbf16>, vector<16x128xf32> -> vector<16x128xf32>
    %200 = arith.addf %192, %199 : vector<16x128xf32>
    %c5_186 = arith.constant 5 : index
    %c0_187 = arith.constant 0 : index
    %c0_188 = arith.constant 0 : index
    %201 = vector.load %arg3[%c5_186, %c0_187, %c0_188] : memref<9x16x64xbf16, #tpu.memory_space<vmem>>, vector<1x16x64xbf16>
    %202 = vector.shape_cast %201 : vector<1x16x64xbf16> to vector<16x64xbf16>
    %cst_189 = arith.constant dense<0.000000e+00> : vector<16x128xf32>
    %203 = tpu.matmul %202, %159, %cst_189 {dimension_numbers = #tpu.dot_dimension_numbers<[1], [0], [0], [1], [0, 0, 1, 1], [], []>} : vector<16x64xbf16>, vector<64x128xbf16>, vector<16x128xf32> -> vector<16x128xf32>
    %204 = arith.truncf %203 : vector<16x128xf32> to vector<16x128xbf16>
    %c5_190 = arith.constant 5 : index
    %c0_191 = arith.constant 0 : index
    %c0_192 = arith.constant 0 : index
    %205 = vector.load %arg10[%c5_190, %c0_191, %c0_192] : memref<9x128x128xbf16, #tpu.memory_space<vmem>>, vector<1x128x128xbf16>
    %206 = vector.shape_cast %205 : vector<1x128x128xbf16> to vector<128x128xbf16>
    %cst_193 = arith.constant dense<0.000000e+00> : vector<16x128xf32>
    %207 = tpu.matmul %204, %206, %cst_193 {dimension_numbers = #tpu.dot_dimension_numbers<[1], [0], [0], [1], [0, 0, 1, 1], [], []>} : vector<16x128xbf16>, vector<128x128xbf16>, vector<16x128xf32> -> vector<16x128xf32>
    %208 = arith.addf %200, %207 : vector<16x128xf32>
    %c6_194 = arith.constant 6 : index
    %c0_195 = arith.constant 0 : index
    %c0_196 = arith.constant 0 : index
    %209 = vector.load %arg3[%c6_194, %c0_195, %c0_196] : memref<9x16x64xbf16, #tpu.memory_space<vmem>>, vector<1x16x64xbf16>
    %210 = vector.shape_cast %209 : vector<1x16x64xbf16> to vector<16x64xbf16>
    %cst_197 = arith.constant dense<0.000000e+00> : vector<16x128xf32>
    %211 = tpu.matmul %210, %159, %cst_197 {dimension_numbers = #tpu.dot_dimension_numbers<[1], [0], [0], [1], [0, 0, 1, 1], [], []>} : vector<16x64xbf16>, vector<64x128xbf16>, vector<16x128xf32> -> vector<16x128xf32>
    %212 = arith.truncf %211 : vector<16x128xf32> to vector<16x128xbf16>
    %c6_198 = arith.constant 6 : index
    %c0_199 = arith.constant 0 : index
    %c0_200 = arith.constant 0 : index
    %213 = vector.load %arg10[%c6_198, %c0_199, %c0_200] : memref<9x128x128xbf16, #tpu.memory_space<vmem>>, vector<1x128x128xbf16>
    %214 = vector.shape_cast %213 : vector<1x128x128xbf16> to vector<128x128xbf16>
    %cst_201 = arith.constant dense<0.000000e+00> : vector<16x128xf32>
    %215 = tpu.matmul %212, %214, %cst_201 {dimension_numbers = #tpu.dot_dimension_numbers<[1], [0], [0], [1], [0, 0, 1, 1], [], []>} : vector<16x128xbf16>, vector<128x128xbf16>, vector<16x128xf32> -> vector<16x128xf32>
    %216 = arith.addf %208, %215 : vector<16x128xf32>
    %c7_202 = arith.constant 7 : index
    %c0_203 = arith.constant 0 : index
    %c0_204 = arith.constant 0 : index
    %217 = vector.load %arg3[%c7_202, %c0_203, %c0_204] : memref<9x16x64xbf16, #tpu.memory_space<vmem>>, vector<1x16x64xbf16>
    %218 = vector.shape_cast %217 : vector<1x16x64xbf16> to vector<16x64xbf16>
    %cst_205 = arith.constant dense<0.000000e+00> : vector<16x128xf32>
    %219 = tpu.matmul %218, %159, %cst_205 {dimension_numbers = #tpu.dot_dimension_numbers<[1], [0], [0], [1], [0, 0, 1, 1], [], []>} : vector<16x64xbf16>, vector<64x128xbf16>, vector<16x128xf32> -> vector<16x128xf32>
    %220 = arith.truncf %219 : vector<16x128xf32> to vector<16x128xbf16>
    %c7_206 = arith.constant 7 : index
    %c0_207 = arith.constant 0 : index
    %c0_208 = arith.constant 0 : index
    %221 = vector.load %arg10[%c7_206, %c0_207, %c0_208] : memref<9x128x128xbf16, #tpu.memory_space<vmem>>, vector<1x128x128xbf16>
    %222 = vector.shape_cast %221 : vector<1x128x128xbf16> to vector<128x128xbf16>
    %cst_209 = arith.constant dense<0.000000e+00> : vector<16x128xf32>
    %223 = tpu.matmul %220, %222, %cst_209 {dimension_numbers = #tpu.dot_dimension_numbers<[1], [0], [0], [1], [0, 0, 1, 1], [], []>} : vector<16x128xbf16>, vector<128x128xbf16>, vector<16x128xf32> -> vector<16x128xf32>
    %224 = arith.addf %216, %223 : vector<16x128xf32>
    %c8_210 = arith.constant 8 : index
    %c0_211 = arith.constant 0 : index
    %c0_212 = arith.constant 0 : index
    %225 = vector.load %arg3[%c8_210, %c0_211, %c0_212] : memref<9x16x64xbf16, #tpu.memory_space<vmem>>, vector<1x16x64xbf16>
    %226 = vector.shape_cast %225 : vector<1x16x64xbf16> to vector<16x64xbf16>
    %cst_213 = arith.constant dense<0.000000e+00> : vector<16x128xf32>
    %227 = tpu.matmul %226, %159, %cst_213 {dimension_numbers = #tpu.dot_dimension_numbers<[1], [0], [0], [1], [0, 0, 1, 1], [], []>} : vector<16x64xbf16>, vector<64x128xbf16>, vector<16x128xf32> -> vector<16x128xf32>
    %228 = arith.truncf %227 : vector<16x128xf32> to vector<16x128xbf16>
    %c8_214 = arith.constant 8 : index
    %c0_215 = arith.constant 0 : index
    %c0_216 = arith.constant 0 : index
    %229 = vector.load %arg10[%c8_214, %c0_215, %c0_216] : memref<9x128x128xbf16, #tpu.memory_space<vmem>>, vector<1x128x128xbf16>
    %230 = vector.shape_cast %229 : vector<1x128x128xbf16> to vector<128x128xbf16>
    %cst_217 = arith.constant dense<0.000000e+00> : vector<16x128xf32>
    %231 = tpu.matmul %228, %230, %cst_217 {dimension_numbers = #tpu.dot_dimension_numbers<[1], [0], [0], [1], [0, 0, 1, 1], [], []>} : vector<16x128xbf16>, vector<128x128xbf16>, vector<16x128xf32> -> vector<16x128xf32>
    %232 = arith.addf %224, %231 : vector<16x128xf32>
    %c0_218 = arith.constant 0 : index
    %c0_219 = arith.constant 0 : index
    %233 = vector.load %arg11[%c0_218, %c0_219] : memref<1x128xf32, #tpu.memory_space<vmem>>, vector<1x128xf32>
    %234 = vector.broadcast %233 : vector<1x128xf32> to vector<16x128xf32>
    %235 = arith.addf %232, %234 : vector<16x128xf32>
    %cst_220 = arith.constant 0.000000e+00 : f32
    %236 = vector.broadcast %cst_220 : f32 to vector<16x128xf32>
    %237 = arith.maximumf %235, %236 : vector<16x128xf32>
    %c0_221 = arith.constant 0 : index
    %c0_222 = arith.constant 0 : index
    %c0_223 = arith.constant 0 : index
    %238 = vector.load %arg16[%c0_221, %c0_222, %c0_223] : memref<1x16x128xf32, #tpu.memory_space<vmem>>, vector<1x16x128xf32>
    %239 = vector.shape_cast %238 : vector<1x16x128xf32> to vector<16x128xf32>
    %240 = vector.shape_cast %237 : vector<16x128xf32> to vector<1x16x128xf32>
    tpu.vector_store %arg16[%c0_221, %c0_222, %c0_223], %240 {strides = array<i32>} : memref<1x16x128xf32, #tpu.memory_space<vmem>>, vector<1x16x128xf32>,
    %241 = arith.truncf %237 : vector<16x128xf32> to vector<16x128xbf16>
    %cst_224 = arith.constant 0.000000e+00 : f32
    %242 = vector.broadcast %cst_224 : f32 to vector<8x128xf32>
    %c0_225 = arith.constant 0 : index
    %c0_226 = arith.constant 0 : index
    %c0_227 = arith.constant 0 : index
    %243 = vector.load %arg4[%c0_225, %c0_226, %c0_227] : memref<9x8x16xbf16, #tpu.memory_space<vmem>>, vector<1x8x16xbf16>
    %244 = vector.shape_cast %243 : vector<1x8x16xbf16> to vector<8x16xbf16>
    %cst_228 = arith.constant dense<0.000000e+00> : vector<8x128xf32>
    %245 = tpu.matmul %244, %241, %cst_228 {dimension_numbers = #tpu.dot_dimension_numbers<[1], [0], [0], [1], [0, 0, 1, 1], [], []>} : vector<8x16xbf16>, vector<16x128xbf16>, vector<8x128xf32> -> vector<8x128xf32>
    %246 = arith.truncf %245 : vector<8x128xf32> to vector<8x128xbf16>
    %c0_229 = arith.constant 0 : index
    %c0_230 = arith.constant 0 : index
    %c0_231 = arith.constant 0 : index
    %247 = vector.load %arg12[%c0_229, %c0_230, %c0_231] : memref<9x128x128xbf16, #tpu.memory_space<vmem>>, vector<1x128x128xbf16>
    %248 = vector.shape_cast %247 : vector<1x128x128xbf16> to vector<128x128xbf16>
    %cst_232 = arith.constant dense<0.000000e+00> : vector<8x128xf32>
    %249 = tpu.matmul %246, %248, %cst_232 {dimension_numbers = #tpu.dot_dimension_numbers<[1], [0], [0], [1], [0, 0, 1, 1], [], []>} : vector<8x128xbf16>, vector<128x128xbf16>, vector<8x128xf32> -> vector<8x128xf32>
    %250 = arith.addf %242, %249 : vector<8x128xf32>
    %c1_233 = arith.constant 1 : index
    %c0_234 = arith.constant 0 : index
    %c0_235 = arith.constant 0 : index
    %251 = vector.load %arg4[%c1_233, %c0_234, %c0_235] : memref<9x8x16xbf16, #tpu.memory_space<vmem>>, vector<1x8x16xbf16>
    %252 = vector.shape_cast %251 : vector<1x8x16xbf16> to vector<8x16xbf16>
    %cst_236 = arith.constant dense<0.000000e+00> : vector<8x128xf32>
    %253 = tpu.matmul %252, %241, %cst_236 {dimension_numbers = #tpu.dot_dimension_numbers<[1], [0], [0], [1], [0, 0, 1, 1], [], []>} : vector<8x16xbf16>, vector<16x128xbf16>, vector<8x128xf32> -> vector<8x128xf32>
    %254 = arith.truncf %253 : vector<8x128xf32> to vector<8x128xbf16>
    %c1_237 = arith.constant 1 : index
    %c0_238 = arith.constant 0 : index
    %c0_239 = arith.constant 0 : index
    %255 = vector.load %arg12[%c1_237, %c0_238, %c0_239] : memref<9x128x128xbf16, #tpu.memory_space<vmem>>, vector<1x128x128xbf16>
    %256 = vector.shape_cast %255 : vector<1x128x128xbf16> to vector<128x128xbf16>
    %cst_240 = arith.constant dense<0.000000e+00> : vector<8x128xf32>
    %257 = tpu.matmul %254, %256, %cst_240 {dimension_numbers = #tpu.dot_dimension_numbers<[1], [0], [0], [1], [0, 0, 1, 1], [], []>} : vector<8x128xbf16>, vector<128x128xbf16>, vector<8x128xf32> -> vector<8x128xf32>
    %258 = arith.addf %250, %257 : vector<8x128xf32>
    %c2_241 = arith.constant 2 : index
    %c0_242 = arith.constant 0 : index
    %c0_243 = arith.constant 0 : index
    %259 = vector.load %arg4[%c2_241, %c0_242, %c0_243] : memref<9x8x16xbf16, #tpu.memory_space<vmem>>, vector<1x8x16xbf16>
    %260 = vector.shape_cast %259 : vector<1x8x16xbf16> to vector<8x16xbf16>
    %cst_244 = arith.constant dense<0.000000e+00> : vector<8x128xf32>
    %261 = tpu.matmul %260, %241, %cst_244 {dimension_numbers = #tpu.dot_dimension_numbers<[1], [0], [0], [1], [0, 0, 1, 1], [], []>} : vector<8x16xbf16>, vector<16x128xbf16>, vector<8x128xf32> -> vector<8x128xf32>
    %262 = arith.truncf %261 : vector<8x128xf32> to vector<8x128xbf16>
    %c2_245 = arith.constant 2 : index
    %c0_246 = arith.constant 0 : index
    %c0_247 = arith.constant 0 : index
    %263 = vector.load %arg12[%c2_245, %c0_246, %c0_247] : memref<9x128x128xbf16, #tpu.memory_space<vmem>>, vector<1x128x128xbf16>
    %264 = vector.shape_cast %263 : vector<1x128x128xbf16> to vector<128x128xbf16>
    %cst_248 = arith.constant dense<0.000000e+00> : vector<8x128xf32>
    %265 = tpu.matmul %262, %264, %cst_248 {dimension_numbers = #tpu.dot_dimension_numbers<[1], [0], [0], [1], [0, 0, 1, 1], [], []>} : vector<8x128xbf16>, vector<128x128xbf16>, vector<8x128xf32> -> vector<8x128xf32>
    %266 = arith.addf %258, %265 : vector<8x128xf32>
    %c3_249 = arith.constant 3 : index
    %c0_250 = arith.constant 0 : index
    %c0_251 = arith.constant 0 : index
    %267 = vector.load %arg4[%c3_249, %c0_250, %c0_251] : memref<9x8x16xbf16, #tpu.memory_space<vmem>>, vector<1x8x16xbf16>
    %268 = vector.shape_cast %267 : vector<1x8x16xbf16> to vector<8x16xbf16>
    %cst_252 = arith.constant dense<0.000000e+00> : vector<8x128xf32>
    %269 = tpu.matmul %268, %241, %cst_252 {dimension_numbers = #tpu.dot_dimension_numbers<[1], [0], [0], [1], [0, 0, 1, 1], [], []>} : vector<8x16xbf16>, vector<16x128xbf16>, vector<8x128xf32> -> vector<8x128xf32>
    %270 = arith.truncf %269 : vector<8x128xf32> to vector<8x128xbf16>
    %c3_253 = arith.constant 3 : index
    %c0_254 = arith.constant 0 : index
    %c0_255 = arith.constant 0 : index
    %271 = vector.load %arg12[%c3_253, %c0_254, %c0_255] : memref<9x128x128xbf16, #tpu.memory_space<vmem>>, vector<1x128x128xbf16>
    %272 = vector.shape_cast %271 : vector<1x128x128xbf16> to vector<128x128xbf16>
    %cst_256 = arith.constant dense<0.000000e+00> : vector<8x128xf32>
    %273 = tpu.matmul %270, %272, %cst_256 {dimension_numbers = #tpu.dot_dimension_numbers<[1], [0], [0], [1], [0, 0, 1, 1], [], []>} : vector<8x128xbf16>, vector<128x128xbf16>, vector<8x128xf32> -> vector<8x128xf32>
    %274 = arith.addf %266, %273 : vector<8x128xf32>
    %c4_257 = arith.constant 4 : index
    %c0_258 = arith.constant 0 : index
    %c0_259 = arith.constant 0 : index
    %275 = vector.load %arg4[%c4_257, %c0_258, %c0_259] : memref<9x8x16xbf16, #tpu.memory_space<vmem>>, vector<1x8x16xbf16>
    %276 = vector.shape_cast %275 : vector<1x8x16xbf16> to vector<8x16xbf16>
    %cst_260 = arith.constant dense<0.000000e+00> : vector<8x128xf32>
    %277 = tpu.matmul %276, %241, %cst_260 {dimension_numbers = #tpu.dot_dimension_numbers<[1], [0], [0], [1], [0, 0, 1, 1], [], []>} : vector<8x16xbf16>, vector<16x128xbf16>, vector<8x128xf32> -> vector<8x128xf32>
    %278 = arith.truncf %277 : vector<8x128xf32> to vector<8x128xbf16>
    %c4_261 = arith.constant 4 : index
    %c0_262 = arith.constant 0 : index
    %c0_263 = arith.constant 0 : index
    %279 = vector.load %arg12[%c4_261, %c0_262, %c0_263] : memref<9x128x128xbf16, #tpu.memory_space<vmem>>, vector<1x128x128xbf16>
    %280 = vector.shape_cast %279 : vector<1x128x128xbf16> to vector<128x128xbf16>
    %cst_264 = arith.constant dense<0.000000e+00> : vector<8x128xf32>
    %281 = tpu.matmul %278, %280, %cst_264 {dimension_numbers = #tpu.dot_dimension_numbers<[1], [0], [0], [1], [0, 0, 1, 1], [], []>} : vector<8x128xbf16>, vector<128x128xbf16>, vector<8x128xf32> -> vector<8x128xf32>
    %282 = arith.addf %274, %281 : vector<8x128xf32>
    %c5_265 = arith.constant 5 : index
    %c0_266 = arith.constant 0 : index
    %c0_267 = arith.constant 0 : index
    %283 = vector.load %arg4[%c5_265, %c0_266, %c0_267] : memref<9x8x16xbf16, #tpu.memory_space<vmem>>, vector<1x8x16xbf16>
    %284 = vector.shape_cast %283 : vector<1x8x16xbf16> to vector<8x16xbf16>
    %cst_268 = arith.constant dense<0.000000e+00> : vector<8x128xf32>
    %285 = tpu.matmul %284, %241, %cst_268 {dimension_numbers = #tpu.dot_dimension_numbers<[1], [0], [0], [1], [0, 0, 1, 1], [], []>} : vector<8x16xbf16>, vector<16x128xbf16>, vector<8x128xf32> -> vector<8x128xf32>
    %286 = arith.truncf %285 : vector<8x128xf32> to vector<8x128xbf16>
    %c5_269 = arith.constant 5 : index
    %c0_270 = arith.constant 0 : index
    %c0_271 = arith.constant 0 : index
    %287 = vector.load %arg12[%c5_269, %c0_270, %c0_271] : memref<9x128x128xbf16, #tpu.memory_space<vmem>>, vector<1x128x128xbf16>
    %288 = vector.shape_cast %287 : vector<1x128x128xbf16> to vector<128x128xbf16>
    %cst_272 = arith.constant dense<0.000000e+00> : vector<8x128xf32>
    %289 = tpu.matmul %286, %288, %cst_272 {dimension_numbers = #tpu.dot_dimension_numbers<[1], [0], [0], [1], [0, 0, 1, 1], [], []>} : vector<8x128xbf16>, vector<128x128xbf16>, vector<8x128xf32> -> vector<8x128xf32>
    %290 = arith.addf %282, %289 : vector<8x128xf32>
    %c6_273 = arith.constant 6 : index
    %c0_274 = arith.constant 0 : index
    %c0_275 = arith.constant 0 : index
    %291 = vector.load %arg4[%c6_273, %c0_274, %c0_275] : memref<9x8x16xbf16, #tpu.memory_space<vmem>>, vector<1x8x16xbf16>
    %292 = vector.shape_cast %291 : vector<1x8x16xbf16> to vector<8x16xbf16>
    %cst_276 = arith.constant dense<0.000000e+00> : vector<8x128xf32>
    %293 = tpu.matmul %292, %241, %cst_276 {dimension_numbers = #tpu.dot_dimension_numbers<[1], [0], [0], [1], [0, 0, 1, 1], [], []>} : vector<8x16xbf16>, vector<16x128xbf16>, vector<8x128xf32> -> vector<8x128xf32>
    %294 = arith.truncf %293 : vector<8x128xf32> to vector<8x128xbf16>
    %c6_277 = arith.constant 6 : index
    %c0_278 = arith.constant 0 : index
    %c0_279 = arith.constant 0 : index
    %295 = vector.load %arg12[%c6_277, %c0_278, %c0_279] : memref<9x128x128xbf16, #tpu.memory_space<vmem>>, vector<1x128x128xbf16>
    %296 = vector.shape_cast %295 : vector<1x128x128xbf16> to vector<128x128xbf16>
    %cst_280 = arith.constant dense<0.000000e+00> : vector<8x128xf32>
    %297 = tpu.matmul %294, %296, %cst_280 {dimension_numbers = #tpu.dot_dimension_numbers<[1], [0], [0], [1], [0, 0, 1, 1], [], []>} : vector<8x128xbf16>, vector<128x128xbf16>, vector<8x128xf32> -> vector<8x128xf32>
    %298 = arith.addf %290, %297 : vector<8x128xf32>
    %c7_281 = arith.constant 7 : index
    %c0_282 = arith.constant 0 : index
    %c0_283 = arith.constant 0 : index
    %299 = vector.load %arg4[%c7_281, %c0_282, %c0_283] : memref<9x8x16xbf16, #tpu.memory_space<vmem>>, vector<1x8x16xbf16>
    %300 = vector.shape_cast %299 : vector<1x8x16xbf16> to vector<8x16xbf16>
    %cst_284 = arith.constant dense<0.000000e+00> : vector<8x128xf32>
    %301 = tpu.matmul %300, %241, %cst_284 {dimension_numbers = #tpu.dot_dimension_numbers<[1], [0], [0], [1], [0, 0, 1, 1], [], []>} : vector<8x16xbf16>, vector<16x128xbf16>, vector<8x128xf32> -> vector<8x128xf32>
    %302 = arith.truncf %301 : vector<8x128xf32> to vector<8x128xbf16>
    %c7_285 = arith.constant 7 : index
    %c0_286 = arith.constant 0 : index
    %c0_287 = arith.constant 0 : index
    %303 = vector.load %arg12[%c7_285, %c0_286, %c0_287] : memref<9x128x128xbf16, #tpu.memory_space<vmem>>, vector<1x128x128xbf16>
    %304 = vector.shape_cast %303 : vector<1x128x128xbf16> to vector<128x128xbf16>
    %cst_288 = arith.constant dense<0.000000e+00> : vector<8x128xf32>
    %305 = tpu.matmul %302, %304, %cst_288 {dimension_numbers = #tpu.dot_dimension_numbers<[1], [0], [0], [1], [0, 0, 1, 1], [], []>} : vector<8x128xbf16>, vector<128x128xbf16>, vector<8x128xf32> -> vector<8x128xf32>
    %306 = arith.addf %298, %305 : vector<8x128xf32>
    %c8_289 = arith.constant 8 : index
    %c0_290 = arith.constant 0 : index
    %c0_291 = arith.constant 0 : index
    %307 = vector.load %arg4[%c8_289, %c0_290, %c0_291] : memref<9x8x16xbf16, #tpu.memory_space<vmem>>, vector<1x8x16xbf16>
    %308 = vector.shape_cast %307 : vector<1x8x16xbf16> to vector<8x16xbf16>
    %cst_292 = arith.constant dense<0.000000e+00> : vector<8x128xf32>
    %309 = tpu.matmul %308, %241, %cst_292 {dimension_numbers = #tpu.dot_dimension_numbers<[1], [0], [0], [1], [0, 0, 1, 1], [], []>} : vector<8x16xbf16>, vector<16x128xbf16>, vector<8x128xf32> -> vector<8x128xf32>
    %310 = arith.truncf %309 : vector<8x128xf32> to vector<8x128xbf16>
    %c8_293 = arith.constant 8 : index
    %c0_294 = arith.constant 0 : index
    %c0_295 = arith.constant 0 : index
    %311 = vector.load %arg12[%c8_293, %c0_294, %c0_295] : memref<9x128x128xbf16, #tpu.memory_space<vmem>>, vector<1x128x128xbf16>
    %312 = vector.shape_cast %311 : vector<1x128x128xbf16> to vector<128x128xbf16>
    %cst_296 = arith.constant dense<0.000000e+00> : vector<8x128xf32>
    %313 = tpu.matmul %310, %312, %cst_296 {dimension_numbers = #tpu.dot_dimension_numbers<[1], [0], [0], [1], [0, 0, 1, 1], [], []>} : vector<8x128xbf16>, vector<128x128xbf16>, vector<8x128xf32> -> vector<8x128xf32>
    %314 = arith.addf %306, %313 : vector<8x128xf32>
    %c0_297 = arith.constant 0 : index
    %c0_298 = arith.constant 0 : index
    %315 = vector.load %arg13[%c0_297, %c0_298] : memref<1x128xf32, #tpu.memory_space<vmem>>, vector<1x128xf32>
    %316 = vector.broadcast %315 : vector<1x128xf32> to vector<8x128xf32>
    %317 = arith.addf %314, %316 : vector<8x128xf32>
    %cst_299 = arith.constant 0.000000e+00 : f32
    %318 = vector.broadcast %cst_299 : f32 to vector<8x128xf32>
    %319 = arith.maximumf %317, %318 : vector<8x128xf32>
    %c0_300 = arith.constant 0 : index
    %c0_301 = arith.constant 0 : index
    %c0_302 = arith.constant 0 : index
    %320 = vector.load %arg17[%c0_300, %c0_301, %c0_302] : memref<1x8x128xf32, #tpu.memory_space<vmem>>, vector<1x8x128xf32>
    %321 = vector.shape_cast %320 : vector<1x8x128xf32> to vector<8x128xf32>
    %322 = vector.shape_cast %319 : vector<8x128xf32> to vector<1x8x128xf32>
    tpu.vector_store %arg17[%c0_300, %c0_301, %c0_302], %322 {strides = array<i32>} : memref<1x8x128xf32, #tpu.memory_space<vmem>>, vector<1x8x128xf32>,
    %323 = arith.truncf %319 : vector<8x128xf32> to vector<8x128xbf16>
    %cst_303 = arith.constant 0.000000e+00 : f32
    %324 = vector.broadcast %cst_303 : f32 to vector<8x256xf32>
    %c0_304 = arith.constant 0 : index
    %c0_305 = arith.constant 0 : index
    %c0_306 = arith.constant 0 : index
    %325 = vector.load %arg5[%c0_304, %c0_305, %c0_306] : memref<9x8x8xbf16, #tpu.memory_space<vmem>>, vector<1x8x8xbf16>
    %326 = vector.shape_cast %325 : vector<1x8x8xbf16> to vector<8x8xbf16>
    %cst_307 = arith.constant dense<0.000000e+00> : vector<8x128xf32>
    %327 = tpu.matmul %326, %323, %cst_307 {dimension_numbers = #tpu.dot_dimension_numbers<[1], [0], [0], [1], [0, 0, 1, 1], [], []>} : vector<8x8xbf16>, vector<8x128xbf16>, vector<8x128xf32> -> vector<8x128xf32>
    %328 = arith.truncf %327 : vector<8x128xf32> to vector<8x128xbf16>
    %c0_308 = arith.constant 0 : index
    %c0_309 = arith.constant 0 : index
    %c0_310 = arith.constant 0 : index
    %329 = vector.load %arg14[%c0_308, %c0_309, %c0_310] : memref<9x128x256xbf16, #tpu.memory_space<vmem>>, vector<1x128x256xbf16>
    %330 = vector.shape_cast %329 : vector<1x128x256xbf16> to vector<128x256xbf16>
    %cst_311 = arith.constant dense<0.000000e+00> : vector<8x256xf32>
    %331 = tpu.matmul %328, %330, %cst_311 {dimension_numbers = #tpu.dot_dimension_numbers<[1], [0], [0], [1], [0, 0, 1, 1], [], []>} : vector<8x128xbf16>, vector<128x256xbf16>, vector<8x256xf32> -> vector<8x256xf32>
    %332 = arith.addf %324, %331 : vector<8x256xf32>
    %c1_312 = arith.constant 1 : index
    %c0_313 = arith.constant 0 : index
    %c0_314 = arith.constant 0 : index
    %333 = vector.load %arg5[%c1_312, %c0_313, %c0_314] : memref<9x8x8xbf16, #tpu.memory_space<vmem>>, vector<1x8x8xbf16>
    %334 = vector.shape_cast %333 : vector<1x8x8xbf16> to vector<8x8xbf16>
    %cst_315 = arith.constant dense<0.000000e+00> : vector<8x128xf32>
    %335 = tpu.matmul %334, %323, %cst_315 {dimension_numbers = #tpu.dot_dimension_numbers<[1], [0], [0], [1], [0, 0, 1, 1], [], []>} : vector<8x8xbf16>, vector<8x128xbf16>, vector<8x128xf32> -> vector<8x128xf32>
    %336 = arith.truncf %335 : vector<8x128xf32> to vector<8x128xbf16>
    %c1_316 = arith.constant 1 : index
    %c0_317 = arith.constant 0 : index
    %c0_318 = arith.constant 0 : index
    %337 = vector.load %arg14[%c1_316, %c0_317, %c0_318] : memref<9x128x256xbf16, #tpu.memory_space<vmem>>, vector<1x128x256xbf16>
    %338 = vector.shape_cast %337 : vector<1x128x256xbf16> to vector<128x256xbf16>
    %cst_319 = arith.constant dense<0.000000e+00> : vector<8x256xf32>
    %339 = tpu.matmul %336, %338, %cst_319 {dimension_numbers = #tpu.dot_dimension_numbers<[1], [0], [0], [1], [0, 0, 1, 1], [], []>} : vector<8x128xbf16>, vector<128x256xbf16>, vector<8x256xf32> -> vector<8x256xf32>
    %340 = arith.addf %332, %339 : vector<8x256xf32>
    %c2_320 = arith.constant 2 : index
    %c0_321 = arith.constant 0 : index
    %c0_322 = arith.constant 0 : index
    %341 = vector.load %arg5[%c2_320, %c0_321, %c0_322] : memref<9x8x8xbf16, #tpu.memory_space<vmem>>, vector<1x8x8xbf16>
    %342 = vector.shape_cast %341 : vector<1x8x8xbf16> to vector<8x8xbf16>
    %cst_323 = arith.constant dense<0.000000e+00> : vector<8x128xf32>
    %343 = tpu.matmul %342, %323, %cst_323 {dimension_numbers = #tpu.dot_dimension_numbers<[1], [0], [0], [1], [0, 0, 1, 1], [], []>} : vector<8x8xbf16>, vector<8x128xbf16>, vector<8x128xf32> -> vector<8x128xf32>
    %344 = arith.truncf %343 : vector<8x128xf32> to vector<8x128xbf16>
    %c2_324 = arith.constant 2 : index
    %c0_325 = arith.constant 0 : index
    %c0_326 = arith.constant 0 : index
    %345 = vector.load %arg14[%c2_324, %c0_325, %c0_326] : memref<9x128x256xbf16, #tpu.memory_space<vmem>>, vector<1x128x256xbf16>
    %346 = vector.shape_cast %345 : vector<1x128x256xbf16> to vector<128x256xbf16>
    %cst_327 = arith.constant dense<0.000000e+00> : vector<8x256xf32>
    %347 = tpu.matmul %344, %346, %cst_327 {dimension_numbers = #tpu.dot_dimension_numbers<[1], [0], [0], [1], [0, 0, 1, 1], [], []>} : vector<8x128xbf16>, vector<128x256xbf16>, vector<8x256xf32> -> vector<8x256xf32>
    %348 = arith.addf %340, %347 : vector<8x256xf32>
    %c3_328 = arith.constant 3 : index
    %c0_329 = arith.constant 0 : index
    %c0_330 = arith.constant 0 : index
    %349 = vector.load %arg5[%c3_328, %c0_329, %c0_330] : memref<9x8x8xbf16, #tpu.memory_space<vmem>>, vector<1x8x8xbf16>
    %350 = vector.shape_cast %349 : vector<1x8x8xbf16> to vector<8x8xbf16>
    %cst_331 = arith.constant dense<0.000000e+00> : vector<8x128xf32>
    %351 = tpu.matmul %350, %323, %cst_331 {dimension_numbers = #tpu.dot_dimension_numbers<[1], [0], [0], [1], [0, 0, 1, 1], [], []>} : vector<8x8xbf16>, vector<8x128xbf16>, vector<8x128xf32> -> vector<8x128xf32>
    %352 = arith.truncf %351 : vector<8x128xf32> to vector<8x128xbf16>
    %c3_332 = arith.constant 3 : index
    %c0_333 = arith.constant 0 : index
    %c0_334 = arith.constant 0 : index
    %353 = vector.load %arg14[%c3_332, %c0_333, %c0_334] : memref<9x128x256xbf16, #tpu.memory_space<vmem>>, vector<1x128x256xbf16>
    %354 = vector.shape_cast %353 : vector<1x128x256xbf16> to vector<128x256xbf16>
    %cst_335 = arith.constant dense<0.000000e+00> : vector<8x256xf32>
    %355 = tpu.matmul %352, %354, %cst_335 {dimension_numbers = #tpu.dot_dimension_numbers<[1], [0], [0], [1], [0, 0, 1, 1], [], []>} : vector<8x128xbf16>, vector<128x256xbf16>, vector<8x256xf32> -> vector<8x256xf32>
    %356 = arith.addf %348, %355 : vector<8x256xf32>
    %c4_336 = arith.constant 4 : index
    %c0_337 = arith.constant 0 : index
    %c0_338 = arith.constant 0 : index
    %357 = vector.load %arg5[%c4_336, %c0_337, %c0_338] : memref<9x8x8xbf16, #tpu.memory_space<vmem>>, vector<1x8x8xbf16>
    %358 = vector.shape_cast %357 : vector<1x8x8xbf16> to vector<8x8xbf16>
    %cst_339 = arith.constant dense<0.000000e+00> : vector<8x128xf32>
    %359 = tpu.matmul %358, %323, %cst_339 {dimension_numbers = #tpu.dot_dimension_numbers<[1], [0], [0], [1], [0, 0, 1, 1], [], []>} : vector<8x8xbf16>, vector<8x128xbf16>, vector<8x128xf32> -> vector<8x128xf32>
    %360 = arith.truncf %359 : vector<8x128xf32> to vector<8x128xbf16>
    %c4_340 = arith.constant 4 : index
    %c0_341 = arith.constant 0 : index
    %c0_342 = arith.constant 0 : index
    %361 = vector.load %arg14[%c4_340, %c0_341, %c0_342] : memref<9x128x256xbf16, #tpu.memory_space<vmem>>, vector<1x128x256xbf16>
    %362 = vector.shape_cast %361 : vector<1x128x256xbf16> to vector<128x256xbf16>
    %cst_343 = arith.constant dense<0.000000e+00> : vector<8x256xf32>
    %363 = tpu.matmul %360, %362, %cst_343 {dimension_numbers = #tpu.dot_dimension_numbers<[1], [0], [0], [1], [0, 0, 1, 1], [], []>} : vector<8x128xbf16>, vector<128x256xbf16>, vector<8x256xf32> -> vector<8x256xf32>
    %364 = arith.addf %356, %363 : vector<8x256xf32>
    %c5_344 = arith.constant 5 : index
    %c0_345 = arith.constant 0 : index
    %c0_346 = arith.constant 0 : index
    %365 = vector.load %arg5[%c5_344, %c0_345, %c0_346] : memref<9x8x8xbf16, #tpu.memory_space<vmem>>, vector<1x8x8xbf16>
    %366 = vector.shape_cast %365 : vector<1x8x8xbf16> to vector<8x8xbf16>
    %cst_347 = arith.constant dense<0.000000e+00> : vector<8x128xf32>
    %367 = tpu.matmul %366, %323, %cst_347 {dimension_numbers = #tpu.dot_dimension_numbers<[1], [0], [0], [1], [0, 0, 1, 1], [], []>} : vector<8x8xbf16>, vector<8x128xbf16>, vector<8x128xf32> -> vector<8x128xf32>
    %368 = arith.truncf %367 : vector<8x128xf32> to vector<8x128xbf16>
    %c5_348 = arith.constant 5 : index
    %c0_349 = arith.constant 0 : index
    %c0_350 = arith.constant 0 : index
    %369 = vector.load %arg14[%c5_348, %c0_349, %c0_350] : memref<9x128x256xbf16, #tpu.memory_space<vmem>>, vector<1x128x256xbf16>
    %370 = vector.shape_cast %369 : vector<1x128x256xbf16> to vector<128x256xbf16>
    %cst_351 = arith.constant dense<0.000000e+00> : vector<8x256xf32>
    %371 = tpu.matmul %368, %370, %cst_351 {dimension_numbers = #tpu.dot_dimension_numbers<[1], [0], [0], [1], [0, 0, 1, 1], [], []>} : vector<8x128xbf16>, vector<128x256xbf16>, vector<8x256xf32> -> vector<8x256xf32>
    %372 = arith.addf %364, %371 : vector<8x256xf32>
    %c6_352 = arith.constant 6 : index
    %c0_353 = arith.constant 0 : index
    %c0_354 = arith.constant 0 : index
    %373 = vector.load %arg5[%c6_352, %c0_353, %c0_354] : memref<9x8x8xbf16, #tpu.memory_space<vmem>>, vector<1x8x8xbf16>
    %374 = vector.shape_cast %373 : vector<1x8x8xbf16> to vector<8x8xbf16>
    %cst_355 = arith.constant dense<0.000000e+00> : vector<8x128xf32>
    %375 = tpu.matmul %374, %323, %cst_355 {dimension_numbers = #tpu.dot_dimension_numbers<[1], [0], [0], [1], [0, 0, 1, 1], [], []>} : vector<8x8xbf16>, vector<8x128xbf16>, vector<8x128xf32> -> vector<8x128xf32>
    %376 = arith.truncf %375 : vector<8x128xf32> to vector<8x128xbf16>
    %c6_356 = arith.constant 6 : index
    %c0_357 = arith.constant 0 : index
    %c0_358 = arith.constant 0 : index
    %377 = vector.load %arg14[%c6_356, %c0_357, %c0_358] : memref<9x128x256xbf16, #tpu.memory_space<vmem>>, vector<1x128x256xbf16>
    %378 = vector.shape_cast %377 : vector<1x128x256xbf16> to vector<128x256xbf16>
    %cst_359 = arith.constant dense<0.000000e+00> : vector<8x256xf32>
    %379 = tpu.matmul %376, %378, %cst_359 {dimension_numbers = #tpu.dot_dimension_numbers<[1], [0], [0], [1], [0, 0, 1, 1], [], []>} : vector<8x128xbf16>, vector<128x256xbf16>, vector<8x256xf32> -> vector<8x256xf32>
    %380 = arith.addf %372, %379 : vector<8x256xf32>
    %c7_360 = arith.constant 7 : index
    %c0_361 = arith.constant 0 : index
    %c0_362 = arith.constant 0 : index
    %381 = vector.load %arg5[%c7_360, %c0_361, %c0_362] : memref<9x8x8xbf16, #tpu.memory_space<vmem>>, vector<1x8x8xbf16>
    %382 = vector.shape_cast %381 : vector<1x8x8xbf16> to vector<8x8xbf16>
    %cst_363 = arith.constant dense<0.000000e+00> : vector<8x128xf32>
    %383 = tpu.matmul %382, %323, %cst_363 {dimension_numbers = #tpu.dot_dimension_numbers<[1], [0], [0], [1], [0, 0, 1, 1], [], []>} : vector<8x8xbf16>, vector<8x128xbf16>, vector<8x128xf32> -> vector<8x128xf32>
    %384 = arith.truncf %383 : vector<8x128xf32> to vector<8x128xbf16>
    %c7_364 = arith.constant 7 : index
    %c0_365 = arith.constant 0 : index
    %c0_366 = arith.constant 0 : index
    %385 = vector.load %arg14[%c7_364, %c0_365, %c0_366] : memref<9x128x256xbf16, #tpu.memory_space<vmem>>, vector<1x128x256xbf16>
    %386 = vector.shape_cast %385 : vector<1x128x256xbf16> to vector<128x256xbf16>
    %cst_367 = arith.constant dense<0.000000e+00> : vector<8x256xf32>
    %387 = tpu.matmul %384, %386, %cst_367 {dimension_numbers = #tpu.dot_dimension_numbers<[1], [0], [0], [1], [0, 0, 1, 1], [], []>} : vector<8x128xbf16>, vector<128x256xbf16>, vector<8x256xf32> -> vector<8x256xf32>
    %388 = arith.addf %380, %387 : vector<8x256xf32>
    %c8_368 = arith.constant 8 : index
    %c0_369 = arith.constant 0 : index
    %c0_370 = arith.constant 0 : index
    %389 = vector.load %arg5[%c8_368, %c0_369, %c0_370] : memref<9x8x8xbf16, #tpu.memory_space<vmem>>, vector<1x8x8xbf16>
    %390 = vector.shape_cast %389 : vector<1x8x8xbf16> to vector<8x8xbf16>
    %cst_371 = arith.constant dense<0.000000e+00> : vector<8x128xf32>
    %391 = tpu.matmul %390, %323, %cst_371 {dimension_numbers = #tpu.dot_dimension_numbers<[1], [0], [0], [1], [0, 0, 1, 1], [], []>} : vector<8x8xbf16>, vector<8x128xbf16>, vector<8x128xf32> -> vector<8x128xf32>
    %392 = arith.truncf %391 : vector<8x128xf32> to vector<8x128xbf16>
    %c8_372 = arith.constant 8 : index
    %c0_373 = arith.constant 0 : index
    %c0_374 = arith.constant 0 : index
    %393 = vector.load %arg14[%c8_372, %c0_373, %c0_374] : memref<9x128x256xbf16, #tpu.memory_space<vmem>>, vector<1x128x256xbf16>
    %394 = vector.shape_cast %393 : vector<1x128x256xbf16> to vector<128x256xbf16>
    %cst_375 = arith.constant dense<0.000000e+00> : vector<8x256xf32>
    %395 = tpu.matmul %392, %394, %cst_375 {dimension_numbers = #tpu.dot_dimension_numbers<[1], [0], [0], [1], [0, 0, 1, 1], [], []>} : vector<8x128xbf16>, vector<128x256xbf16>, vector<8x256xf32> -> vector<8x256xf32>
    %396 = arith.addf %388, %395 : vector<8x256xf32>
    %c0_376 = arith.constant 0 : index
    %c0_377 = arith.constant 0 : index
    %397 = vector.load %arg15[%c0_376, %c0_377] : memref<1x256xf32, #tpu.memory_space<vmem>>, vector<1x256xf32>
    %398 = vector.broadcast %397 : vector<1x256xf32> to vector<8x256xf32>
    %399 = arith.addf %396, %398 : vector<8x256xf32>
    %cst_378 = arith.constant 0.000000e+00 : f32
    %400 = vector.broadcast %cst_378 : f32 to vector<8x256xf32>
    %401 = arith.maximumf %399, %400 : vector<8x256xf32>
    %c0_379 = arith.constant 0 : index
    %c0_380 = arith.constant 0 : index
    %c0_381 = arith.constant 0 : index
    %402 = vector.load %arg18[%c0_379, %c0_380, %c0_381] : memref<1x8x256xf32, #tpu.memory_space<vmem>>, vector<1x8x256xf32>
    %403 = vector.shape_cast %402 : vector<1x8x256xf32> to vector<8x256xf32>
    %404 = vector.shape_cast %401 : vector<8x256xf32> to vector<1x8x256xf32>
    tpu.vector_store %arg18[%c0_379, %c0_380, %c0_381], %404 {strides = array<i32>} : memref<1x8x256xf32, #tpu.memory_space<vmem>>, vector<1x8x256xf32>,
    return
  }
  func.func @transform_0(%arg0: i32) -> (i32, i32, i32) {
    %c0_i32 = arith.constant 0 : i32
    %c0_i32_0 = arith.constant 0 : i32
    %c0_i32_1 = arith.constant 0 : i32
    return %arg0, %c0_i32, %c0_i32_0 : i32, i32, i32
  }
  func.func @transform_1(%arg0: i32) -> (i32, i32, i32) {
    %c0_i32 = arith.constant 0 : i32
    %c0_i32_0 = arith.constant 0 : i32
    %c0_i32_1 = arith.constant 0 : i32
    %c0_i32_2 = arith.constant 0 : i32
    return %c0_i32, %c0_i32_0, %c0_i32_1 : i32, i32, i32
  }
  func.func @transform_2(%arg0: i32) -> (i32, i32, i32) {
    %c0_i32 = arith.constant 0 : i32
    %c0_i32_0 = arith.constant 0 : i32
    %c0_i32_1 = arith.constant 0 : i32
    %c0_i32_2 = arith.constant 0 : i32
    return %c0_i32, %c0_i32_0, %c0_i32_1 : i32, i32, i32
  }
  func.func @transform_3(%arg0: i32) -> (i32, i32, i32) {
    %c0_i32 = arith.constant 0 : i32
    %c0_i32_0 = arith.constant 0 : i32
    %c0_i32_1 = arith.constant 0 : i32
    %c0_i32_2 = arith.constant 0 : i32
    return %c0_i32, %c0_i32_0, %c0_i32_1 : i32, i32, i32
  }
  func.func @transform_4(%arg0: i32) -> (i32, i32, i32) {
    %c0_i32 = arith.constant 0 : i32
    %c0_i32_0 = arith.constant 0 : i32
    %c0_i32_1 = arith.constant 0 : i32
    %c0_i32_2 = arith.constant 0 : i32
    return %c0_i32, %c0_i32_0, %c0_i32_1 : i32, i32, i32
  }
  func.func @transform_5(%arg0: i32) -> (i32, i32, i32) {
    %c0_i32 = arith.constant 0 : i32
    %c0_i32_0 = arith.constant 0 : i32
    %c0_i32_1 = arith.constant 0 : i32
    %c0_i32_2 = arith.constant 0 : i32
    return %c0_i32, %c0_i32_0, %c0_i32_1 : i32, i32, i32
  }
  func.func @transform_6(%arg0: i32) -> (i32, i32) {
    %c0_i32 = arith.constant 0 : i32
    %c0_i32_0 = arith.constant 0 : i32
    %c0_i32_1 = arith.constant 0 : i32
    return %c0_i32, %c0_i32_0 : i32, i32
  }
  func.func @transform_7(%arg0: i32) -> (i32, i32, i32) {
    %c0_i32 = arith.constant 0 : i32
    %c0_i32_0 = arith.constant 0 : i32
    %c0_i32_1 = arith.constant 0 : i32
    %c0_i32_2 = arith.constant 0 : i32
    return %c0_i32, %c0_i32_0, %c0_i32_1 : i32, i32, i32
  }
  func.func @transform_8(%arg0: i32) -> (i32, i32) {
    %c0_i32 = arith.constant 0 : i32
    %c0_i32_0 = arith.constant 0 : i32
    %c0_i32_1 = arith.constant 0 : i32
    return %c0_i32, %c0_i32_0 : i32, i32
  }
  func.func @transform_9(%arg0: i32) -> (i32, i32, i32) {
    %c0_i32 = arith.constant 0 : i32
    %c0_i32_0 = arith.constant 0 : i32
    %c0_i32_1 = arith.constant 0 : i32
    %c0_i32_2 = arith.constant 0 : i32
    return %c0_i32, %c0_i32_0, %c0_i32_1 : i32, i32, i32
  }
  func.func @transform_10(%arg0: i32) -> (i32, i32) {
    %c0_i32 = arith.constant 0 : i32
    %c0_i32_0 = arith.constant 0 : i32
    %c0_i32_1 = arith.constant 0 : i32
    return %c0_i32, %c0_i32_0 : i32, i32
  }
  func.func @transform_11(%arg0: i32) -> (i32, i32, i32) {
    %c0_i32 = arith.constant 0 : i32
    %c0_i32_0 = arith.constant 0 : i32
    %c0_i32_1 = arith.constant 0 : i32
    %c0_i32_2 = arith.constant 0 : i32
    return %c0_i32, %c0_i32_0, %c0_i32_1 : i32, i32, i32
  }
  func.func @transform_12(%arg0: i32) -> (i32, i32) {
    %c0_i32 = arith.constant 0 : i32
    %c0_i32_0 = arith.constant 0 : i32
    %c0_i32_1 = arith.constant 0 : i32
    return %c0_i32, %c0_i32_0 : i32, i32
  }
  func.func @transform_13(%arg0: i32) -> (i32, i32, i32) {
    %c0_i32 = arith.constant 0 : i32
    %c0_i32_0 = arith.constant 0 : i32
    %c0_i32_1 = arith.constant 0 : i32
    %c0_i32_2 = arith.constant 0 : i32
    return %c0_i32, %c0_i32_0, %c0_i32_1 : i32, i32, i32
  }
  func.func @transform_14(%arg0: i32) -> (i32, i32) {
    %c0_i32 = arith.constant 0 : i32
    %c0_i32_0 = arith.constant 0 : i32
    %c0_i32_1 = arith.constant 0 : i32
    return %c0_i32, %c0_i32_0 : i32, i32
  }
  func.func @transform_15(%arg0: i32) -> (i32, i32, i32) {
    %c0_i32 = arith.constant 0 : i32
    %c0_i32_0 = arith.constant 0 : i32
    %c0_i32_1 = arith.constant 0 : i32
    return %arg0, %c0_i32, %c0_i32_0 : i32, i32, i32
  }
  func.func @transform_16(%arg0: i32) -> (i32, i32, i32) {
    %c0_i32 = arith.constant 0 : i32
    %c0_i32_0 = arith.constant 0 : i32
    %c0_i32_1 = arith.constant 0 : i32
    return %arg0, %c0_i32, %c0_i32_0 : i32, i32, i32
  }
  func.func @transform_17(%arg0: i32) -> (i32, i32, i32) {
    %c0_i32 = arith.constant 0 : i32
    %c0_i32_0 = arith.constant 0 : i32
    %c0_i32_1 = arith.constant 0 : i32
    return %arg0, %c0_i32, %c0_i32_0 : i32, i32, i32
  }
}

</mosaic_0001>

<bundles_post_ra>
// kernel: tpu_custom_call.1
= control target key start
LH: loop header
LB: loop body
LE: loop exit
PB: predicated region body
PF: predicated region fallthrough
CT: control target
= control target key end

     0   :  { %s15113_s0 = inlined_call_operand.hbm [shape: bf16[2,64,128], index: 0, kind: input, shape index: {}]   ;;  %s15114_s1 = inlined_call_operand.hbm [shape: bf16[9,64,64], index: 1, kind: input, shape index: {}]   ;;  %s15115_s2 = inlined_call_operand.vmem [shape: bf16[9,16,64], index: 2, kind: input, shape index: {}]   ;;  %s15116_s3 = inlined_call_operand.hbm [shape: bf16[9,8,16], index: 3, kind: input, shape index: {}]   ;;  %s15117_s4 = inlined_call_operand.vmem [shape: bf16[9,8,8], index: 4, kind: input, shape index: {}]   ;;  %s15118_s5 = inlined_call_operand.hbm [shape: bf16[9,128,128], index: 5, kind: input, shape index: {}]   ;;  %s15119_s6 = inlined_call_operand.vmem [shape: f32[1,128], index: 6, kind: input, shape index: {}]   ;;  %s15120_s7 = inlined_call_operand.hbm [shape: bf16[9,128,128], index: 7, kind: input, shape index: {}]   ;;  %s15121_s8 = inlined_call_operand.vmem [shape: f32[1,128], index: 8, kind: input, shape index: {}]   ;;  %s15122_s9 = inlined_call_operand.hbm [shape: bf16[9,128,128], index: 9, kind: input, shape index: {}]   ;;  %s15123_s10 = inlined_call_operand.vmem [shape: f32[1,128], index: 10, kind: input, shape index: {}]   ;;  %s15124_s11 = inlined_call_operand.hbm [shape: bf16[9,128,128], index: 11, kind: input, shape index: {}]   ;;  %s15125_s12 = inlined_call_operand.vmem [shape: f32[1,128], index: 12, kind: input, shape index: {}]   ;;  %s15126_s13 = inlined_call_operand.hbm [shape: bf16[9,128,256], index: 13, kind: input, shape index: {}]   ;;  %s15127_s14 = inlined_call_operand.vmem [shape: f32[1,256], index: 14, kind: input, shape index: {}]   ;;  %s15128_s15 = inlined_call_operand.hbm [shape: f32[2,16,128], index: 15, kind: output, shape index: {0}]   ;;  %s15129_s16 = inlined_call_operand.hbm [shape: f32[2,8,128], index: 16, kind: output, shape index: {1}]   ;;  %s15130_s17 = inlined_call_operand.hbm [shape: f32[2,8,256], index: 17, kind: output, shape index: {2}]  }
   0x1   :  { %15146 = sst [smem:[#allocation27_spill]] %s15113_s0 }
   0x2   :  { %15147 = sst [smem:[#allocation28_spill]] %s15114_s1 }
   0x3   :  { %15148 = sst [smem:[#allocation29_spill]] %s15115_s2 }
   0x4   :  { %15149 = sst [smem:[#allocation30_spill]] %s15116_s3 }
   0x5   :  { %15150 = sst [smem:[#allocation31_spill]] %s15117_s4 }
   0x6   :  { %15151 = sst [smem:[#allocation32_spill]] %s15118_s5 }
   0x7   :  { %15152 = sst [smem:[#allocation33_spill]] %s15119_s6 }
   0x8   :  { %15153 = sst [smem:[#allocation34_spill]] %s15120_s7 }
   0x9   :  { %15154 = sst [smem:[#allocation35_spill]] %s15121_s8 }
   0xa   :  { %15155 = sst [smem:[#allocation36_spill]] %s15123_s10 }
   0xb   :  { %15156 = sst [smem:[#allocation37_spill]] %s15125_s12 }
   0xc   :  { %15157 = sst [smem:[#allocation38_spill]] %s15127_s14 }
   0xd   :  { %15158 = sst [smem:[#allocation39_spill]] %s15128_s15 }
   0xe   :  { %15159 = sst [smem:[#allocation40_spill]] %s15129_s16 }
   0xf   :  { %15160 = sst [smem:[#allocation41_spill]] %s15130_s17 }
  0x10   :  { %23 = vsyncpa [#allocation3], 0 }
  0x11   :  { %25 = vsyncpa [#allocation3 + $0x1], 0 }
  0x12   :  { %26 = vsyncpa [#allocation6], 0 }
  0x13   :  { %27 = vsyncpa [#allocation9], 0 }
  0x14   :  { %28 = vsyncpa [#allocation12], 0 }
  0x15   :  { %29 = vsyncpa [#allocation15], 0 }
  0x16   :  { %30 = vsyncpa [#allocation4], 0 }
  0x17   :  { %32 = vsyncpa [#allocation4 + $0x1], 0 }
  0x18   :  { %33 = vsyncpa [#allocation18], 0 }
  0x19   :  { %35 = vsyncpa [#allocation18 + $0x1], 0  ;;  %s13492_s24 = smov 0   ;;  %s13494_s25 = smov 0  }
  0x1a   :  { %s13496_s26 = smov 0   ;;  %s13498_s27 = smov 0  }
  0x1b LB: > { %s13382_s28 = smov [#allocation5]   ;;  %s13513_s0 = sadd.s32 4294967295, %s13380_s27   ;;  %s13380_s27 = sphi %s13498_s27, %s15203_s27   ;;  %s13376_s26 = sphi %s13496_s26, %s15202_s26   ;;  %s13372_s25 = sphi %s13494_s25, %s15201_s25   ;;  %s13368_s24 = sphi %s13492_s24, %s15200_s24  }
  0x1c   : > { %s456_s29 = sshll.u32 %s13382_s28, 4  ;;  %p9612_p0 = scmp.ge.s32.totalorder %s13380_s27, 1  ;;  %s13518_s29 = int_to_ptr.vmem [resolvable:$true] %s456_s29 }
  0x1d   : > { %p15138_p1 = scmp.eq.s32.totalorder %s13513_s0, 0  ;;  %p444_p2 = scmp.lt.s32.totalorder %s13380_s27, 3 }
  0x1e   : > { %s13383_s18 = smov [#allocation8]   ;;  %s13384_s20 = smov [#allocation11]  }
  0x1f   : > { %p13520_p3 = pnand %p9612_p0, %p444_p2  ;;  %s488_s19 = sshll.u32 %s13383_s18, 4  ;;  %s13533_s19 = int_to_ptr.vmem [resolvable:$true] %s488_s19 }
  0x20   : > { %s520_s21 = sshll.u32 %s13384_s20, 4  ;;  %s15163_s28 = sld [smem:[#allocation28_spill]]  ;;  %s13535_s21 = int_to_ptr.vmem [resolvable:$true] %s520_s21 }
  0x21   : > { %s15161_s30 = scalar_select %p13520_p3, 1, 0 }
  0x22   : > { %p12320_p5 = pneg %p13520_p3 }
  0x24   : > { %p13529_p6 = pnand %p12320_p5, %p15138_p1 }
  0x26   : > { %s13012_s17 = scalar_lea.hbm %s15163_s28, 4608  ;;  %p13545_p8 = pneg %p13529_p6 }
  0x27   : > { %p13013_p7 = scmp.ne.s32.totalorder %s15163_s28, %s13012_s17  ;;  %p13019_p11 = scmp.lt.u32.totalorder %s13012_s17, %s15163_s28 }
  0x29   : > { %p13015_p9 = pnand %p13545_p8, %p13013_p7 }
  0x2b   : > { %p13016_p10 = pneg %p13015_p9 }
  0x2d   : > { %p13021_p12 = pnand %p13019_p11, %p13016_p10 }
  0x2f   : > { %13024 = shalt.err (!%p13021_p12)
}
  0x30   : > { %s13025_s14 = scalar_lea.vmem %s13518_s29, 4608  ;;  %p13033_p5 = scmp.lt.s32.totalorder %s13518_s29, %s13518_s29 }
  0x31   : > { %p13026_p13 = scmp.ne.s32.totalorder %s13518_s29, %s13025_s14  ;;  %p13034_p4 = scmp.lt.s32.totalorder %s13025_s14, %s13025_s14 }
  0x33   : > { %p13028_p0 = pnand %p13026_p13, %p13545_p8  ;;  %p13035_p7 = por %p13034_p4, %p13033_p5 }
  0x35   : > { %p13029_p2 = pneg %p13028_p0 }
  0x37   : > { %p13036_p9 = pnand %p13035_p7, %p13029_p2 }
  0x39   : > { %13039 = shalt.err (!%p13036_p9)
}
  0x3a   : > { %s15141_s15 = smov 64   ;;  %s15142_s16 = smov 4  }
  0x3b   : > { %12323 = dma.hbm_to_vmem [thread:$0]  (!%p13529_p6), %s15163_s28, 4608, %s13518_s29, [#allocation6], %s15141_s15, %s15141_s15, %s15142_s16  }
  0x3c   : > { %s15165_s5 = sld [smem:[#allocation32_spill]] }
  0x42   : > { %s13040_s14 = scalar_lea.hbm %s15165_s5, 9216 }
  0x43   : > { %p13041_p4 = scmp.ne.s32.totalorder %s15165_s5, %s13040_s14  ;;  %p13047_p12 = scmp.lt.u32.totalorder %s13040_s14, %s15165_s5 }
  0x45   : > { %p13043_p10 = pnand %p13041_p4, %p13545_p8 }
  0x47   : > { %p13044_p11 = pneg %p13043_p10 }
  0x49   : > { %p13049_p13 = pnand %p13047_p12, %p13044_p11 }
  0x4b   : > { %13052 = shalt.err (!%p13049_p13)
}
  0x4c   : > { %s13053_s29 = scalar_lea.vmem %s13533_s19, 9216  ;;  %p13061_p7 = scmp.lt.s32.totalorder %s13533_s19, %s13533_s19 }
  0x4d   : > { %p13054_p0 = scmp.ne.s32.totalorder %s13533_s19, %s13053_s29  ;;  %p13062_p9 = scmp.lt.s32.totalorder %s13053_s29, %s13053_s29 }
  0x4f   : > { %p13056_p2 = pnand %p13054_p0, %p13545_p8  ;;  %p13063_p4 = por %p13062_p9, %p13061_p7 }
  0x51   : > { %p13057_p5 = pneg %p13056_p2 }
  0x53   : > { %p13064_p10 = pnand %p13063_p4, %p13057_p5 }
  0x55   : > { %13067 = shalt.err (!%p13064_p10)
}
  0x56   : > { %12329 = dma.hbm_to_vmem [thread:$0]  (!%p13529_p6), %s15165_s5, 9216, %s13533_s19, [#allocation9], %s15141_s15, %s15141_s15, %s15142_s16  }
  0x57   : > { %s13068_s17 = scalar_lea.hbm %s15122_s9, 9216 }
  0x58   : > { %p13069_p11 = scmp.ne.s32.totalorder %s15122_s9, %s13068_s17  ;;  %p13075_p0 = scmp.lt.u32.totalorder %s13068_s17, %s15122_s9 }
  0x5a   : > { %p13071_p12 = pnand %p13069_p11, %p13545_p8 }
  0x5c   : > { %p13072_p13 = pneg %p13071_p12 }
  0x5e   : > { %p13077_p2 = pnand %p13075_p0, %p13072_p13 }
  0x60   : > { %13080 = shalt.err (!%p13077_p2)
}
  0x61   : > { %s13081_s19 = scalar_lea.vmem %s13535_s21, 9216  ;;  %p13089_p4 = scmp.lt.s32.totalorder %s13535_s21, %s13535_s21 }
  0x62   : > { %p13082_p5 = scmp.ne.s32.totalorder %s13535_s21, %s13081_s19  ;;  %p13090_p10 = scmp.lt.s32.totalorder %s13081_s19, %s13081_s19 }
  0x64   : > { %p13084_p7 = pnand %p13082_p5, %p13545_p8  ;;  %p13091_p11 = por %p13090_p10, %p13089_p4 }
  0x66   : > { %p13085_p9 = pneg %p13084_p7 }
  0x68   : > { %p13092_p12 = pnand %p13091_p11, %p13085_p9 }
  0x6a   : > { %13095 = shalt.err (!%p13092_p12)
}
  0x6b   : > { %12335 = dma.hbm_to_vmem [thread:$0]  (!%p13529_p6), %s15122_s9, 9216, %s13535_s21, [#allocation12], %s15141_s15, %s15141_s15, %s15142_s16  }
  0x6c   : > { %s13387_s4 = smov [#allocation7]   ;;  %s13388_s12 = smov [#allocation10]  }
  0x6d   : > { %s472_s10 = sshll.u32 %s13387_s4, 4  ;;  %s504_s17 = sshll.u32 %s13388_s12, 4  ;;  %s473_s10 = int_to_ptr.vmem [resolvable:$true] %s472_s10  ;;  %s505_s17 = int_to_ptr.vmem [resolvable:$true] %s504_s17 }
  0x6e   : > { %s15166_s3 = sld [smem:[#allocation30_spill]] }
  0x74   : > { %s13096_s20 = scalar_lea.hbm %s15166_s3, 576 }
  0x75   : > { %p13097_p13 = scmp.ne.s32.totalorder %s15166_s3, %s13096_s20  ;;  %p13103_p5 = scmp.lt.u32.totalorder %s13096_s20, %s15166_s3 }
  0x77   : > { %p13099_p0 = pnand %p13097_p13, %p13545_p8 }
  0x79   : > { %p13100_p2 = pneg %p13099_p0 }
  0x7b   : > { %p13105_p7 = pnand %p13103_p5, %p13100_p2 }
  0x7d   : > { %13108 = shalt.err (!%p13105_p7)
}
  0x7e   : > { %s13109_s21 = scalar_lea.vmem %s473_s10, 576  ;;  %p13117_p11 = scmp.lt.s32.totalorder %s473_s10, %s473_s10 }
  0x7f   : > { %p13110_p9 = scmp.ne.s32.totalorder %s473_s10, %s13109_s21  ;;  %p13118_p12 = scmp.lt.s32.totalorder %s13109_s21, %s13109_s21 }
  0x81   : > { %p13112_p4 = pnand %p13110_p9, %p13545_p8  ;;  %p13119_p1 = por %p13118_p12, %p13117_p11 }
  0x83   : > { %p13113_p10 = pneg %p13112_p4 }
  0x85   : > { %p13120_p3 = pnand %p13119_p1, %p13113_p10 }
  0x87   : > { %13123 = shalt.err (!%p13120_p3)
}
  0x88   : > { %12326 = dma.hbm_to_vmem [thread:$0]  (!%p13529_p6), %s15166_s3, 576, %s473_s10, [#allocation6], %s15141_s15, %s15141_s15, %s15142_s16  }
  0x89   : > { %s15167_s7 = sld [smem:[#allocation34_spill]] }
  0x8f   : > { %s13124_s22 = scalar_lea.hbm %s15167_s7, 9216 }
  0x90   : > { %p13125_p1 = scmp.ne.s32.totalorder %s15167_s7, %s13124_s22  ;;  %p13131_p0 = scmp.lt.u32.totalorder %s13124_s22, %s15167_s7 }
  0x92   : > { %p13127_p3 = pnand %p13125_p1, %p13545_p8 }
  0x94   : > { %p13128_p13 = pneg %p13127_p3 }
  0x96   : > { %p13133_p2 = pnand %p13131_p0, %p13128_p13 }
  0x98   : > { %13136 = shalt.err (!%p13133_p2)
}
  0x99   : > { %s13137_s29 = scalar_lea.vmem %s505_s17, 9216  ;;  %p13145_p4 = scmp.lt.s32.totalorder %s505_s17, %s505_s17 }
  0x9a   : > { %p13138_p5 = scmp.ne.s32.totalorder %s505_s17, %s13137_s29  ;;  %p13146_p10 = scmp.lt.s32.totalorder %s13137_s29, %s13137_s29 }
  0x9c   : > { %p13140_p7 = pnand %p13138_p5, %p13545_p8  ;;  %p13147_p11 = por %p13146_p10, %p13145_p4 }
  0x9e   : > { %p13141_p9 = pneg %p13140_p7 }
  0xa0   : > { %p13148_p12 = pnand %p13147_p11, %p13141_p9 }
  0xa2   : > { %13151 = shalt.err (!%p13148_p12)
}
  0xa3   : > { %12332 = dma.hbm_to_vmem [thread:$0]  (!%p13529_p6), %s15167_s7, 9216, %s505_s17, [#allocation9], %s15141_s15, %s15141_s15, %s15142_s16  }
  0xa4   : > { %s13389_s5 = smov [#allocation13]   ;;  %s13390_s4 = smov [#allocation14]  }
  0xa5   : > { %s536_s2 = sshll.u32 %s13389_s5, 4  ;;  %s552_s12 = sshll.u32 %s13390_s4, 4  ;;  %s537_s2 = int_to_ptr.vmem [resolvable:$true] %s536_s2  ;;  %s553_s12 = int_to_ptr.vmem [resolvable:$true] %s552_s12 }
  0xa6   : > { %s13152_s20 = scalar_lea.hbm %s15124_s11, 9216 }
  0xa7   : > { %p13153_p1 = scmp.ne.s32.totalorder %s15124_s11, %s13152_s20  ;;  %p13159_p0 = scmp.lt.u32.totalorder %s13152_s20, %s15124_s11 }
  0xa9   : > { %p13155_p3 = pnand %p13153_p1, %p13545_p8 }
  0xab   : > { %p13156_p13 = pneg %p13155_p3 }
  0xad   : > { %p13161_p2 = pnand %p13159_p0, %p13156_p13 }
  0xaf   : > { %13164 = shalt.err (!%p13161_p2)
}
  0xb0   : > { %s13165_s17 = scalar_lea.vmem %s537_s2, 9216  ;;  %p13173_p4 = scmp.lt.s32.totalorder %s537_s2, %s537_s2 }
  0xb1   : > { %p13166_p5 = scmp.ne.s32.totalorder %s537_s2, %s13165_s17  ;;  %p13174_p10 = scmp.lt.s32.totalorder %s13165_s17, %s13165_s17 }
  0xb3   : > { %p13168_p7 = pnand %p13166_p5, %p13545_p8  ;;  %p13175_p11 = por %p13174_p10, %p13173_p4 }
  0xb5   : > { %p13169_p9 = pneg %p13168_p7 }
  0xb7   : > { %p13176_p12 = pnand %p13175_p11, %p13169_p9 }
  0xb9   : > { %13179 = shalt.err (!%p13176_p12)
}
  0xba   : > { %12338 = dma.hbm_to_vmem [thread:$0]  (!%p13529_p6), %s15124_s11, 9216, %s537_s2, [#allocation12], %s15141_s15, %s15141_s15, %s15142_s16  }
  0xbb   : > { %s13180_s23 = scalar_lea.hbm %s15126_s13, 18432 }
  0xbc   : > { %p13181_p1 = scmp.ne.s32.totalorder %s15126_s13, %s13180_s23  ;;  %p13187_p0 = scmp.lt.u32.totalorder %s13180_s23, %s15126_s13 }
  0xbe   : > { %p13183_p3 = pnand %p13181_p1, %p13545_p8 }
  0xc0   : > { %p13184_p13 = pneg %p13183_p3 }
  0xc2   : > { %p13189_p2 = pnand %p13187_p0, %p13184_p13 }
  0xc4   : > { %13192 = shalt.err (!%p13189_p2)
}
  0xc5   : > { %s13193_s10 = scalar_lea.vmem %s553_s12, 18432  ;;  %p13201_p4 = scmp.lt.s32.totalorder %s553_s12, %s553_s12 }
  0xc6   : > { %p13194_p5 = scmp.ne.s32.totalorder %s553_s12, %s13193_s10  ;;  %p13202_p10 = scmp.lt.s32.totalorder %s13193_s10, %s13193_s10 }
  0xc8   : > { %p13196_p7 = pnand %p13194_p5, %p13545_p8  ;;  %p13203_p11 = por %p13202_p10, %p13201_p4 }
  0xca   : > { %p13197_p9 = pneg %p13196_p7 }
  0xcc   : > { %p13204_p12 = pnand %p13203_p11, %p13197_p9 }
  0xce   : > { %13207 = shalt.err (!%p13204_p12)
}
  0xcf   : > { %s13391_s2 = smov 128   ;;  %s13392_s18 = smov 8  }
  0xd0   : > { %12341 = dma.hbm_to_vmem [thread:$0]  (!%p13529_p6), %s15126_s13, 18432, %s553_s12, [#allocation15], %s13391_s2, %s13391_s2, %s13392_s18  }
  0xd1   : > { %s15140_s5 = sadd.s32 4294967294, %s13380_s27   ;;  %s13704_s4 = sadd.s32 1, %s13380_s27  }
  0xd2   : > { %s48_s22 = sadd.s32 1, %s13376_s26  ;;  %s45_s23 = ssub.s32 %s13380_s27, %s13704_s4 }
  0xd3   : > { %p55_p8 = scmp.ne.s32.totalorder %s13376_s26, %s13372_s25  ;;  %p46_p1 = scmp.eq.s32.totalorder %s45_s23, 0 }
  0xd4   : > { %p56_p3 = scmp.eq.s32.totalorder %s13380_s27, 0  ;;  %p61_p13 = scmp.ne.s32.totalorder %s13372_s25, %s13368_s24 }
  0xd5   : > { %p379_p0 = scmp.eq.s32.totalorder %s13513_s0, 1  ;;  %p15168_p5 = scmp.eq.s32.totalorder %s13513_s0, 0 }
  0xd6   : > { %s13716_s20 = scalar_select %p46_p1, %s13376_s26, %s48_s22  }
  0xd7   : > { %p57_p2 = por %p56_p3, %p55_p8  ;;  %p13720_p7 = por %p15168_p5, %p61_p13 }
  0xd8   : > { %p13724_p6 = por %p379_p0, %p55_p8  ;;  %p385_p9 = scmp.eq.s32.totalorder %s15140_s5, 1 }
  0xd9   : > { %p12363_p4 = scmp.lt.s32.totalorder %s13380_s27, 2  ;;  %s569_s14 = sand.u32 1, %s13376_s26  }
  0xda   : > { %s15170_s12 = scalar_select %p13724_p6, 1, 0 }
  0xdb   : > { %p13732_p10 = por %p385_p9, %p61_p13  ;;  %s9621_s29 = sshll.u32 %s569_s14, 5 }
  0xdc   : > { %s10254_s10 = sshll.u32 %s13380_s27, 9  ;;  %s15172_s17 = sld [smem:[#allocation27_spill]] }
  0xdd   : > { %s15171_s19 = scalar_select %p13732_p10, 1, 0 }
  0xde   : > { %s573_s22 = scalar_lea.vmem [#allocation2], %s9621_s29  ;;  %p13742_p11 = pnand %p12363_p4, %p57_p2 }
  0xdf   : > { %s580_s23 = sshll.u32 %s573_s22, 4  ;;  %s13748_s15 = scalar_lea.sflag [#allocation3], %s569_s14  ;;  %s13746_s23 = int_to_ptr.vmem [resolvable:$true] %s580_s23 }
  0xe0   : > { %p13210_p8 = pneg %p13742_p11 }
  0xe2   : > { %s13740_s21 = scalar_lea.hbm %s15172_s17, %s10254_s10  ;;  %s13213_s2 = scalar_lea.hbm %s15172_s17, 1024 }
  0xe3   : > { %s13208_s16 = scalar_lea.hbm %s13740_s21, 512  ;;  %p13214_p13 = scmp.lt.u32.totalorder %s13740_s21, %s15172_s17 }
  0xe4   : > { %p13209_p12 = scmp.ne.s32.totalorder %s13740_s21, %s13208_s16  ;;  %p13215_p0 = scmp.lt.u32.totalorder %s13213_s2, %s13208_s16 }
  0xe5   : > { %p13217_p5 = scmp.lt.u32.totalorder %s13208_s16, %s13740_s21 }
  0xe6   : > { %p13211_p1 = pnand %p13210_p8, %p13209_p12  ;;  %p13216_p2 = por %p13215_p0, %p13214_p13 }
  0xe8   : > { %p13212_p3 = pneg %p13211_p1  ;;  %p13218_p9 = por %p13217_p5, %p13216_p2 }
  0xea   : > { %p13219_p4 = pnand %p13218_p9, %p13212_p3 }
  0xec   : > { %13222 = shalt.err (!%p13219_p4)
}
  0xed   : > { %s13223_s14 = scalar_lea.vmem %s13746_s23, 512  ;;  %s13393_s29 = smov [#allocation2]  }
  0xee   : > { %p13224_p12 = scmp.ne.s32.totalorder %s13746_s23, %s13223_s14  ;;  %s13228_s10 = sshll.u32 %s13393_s29, 4  ;;  %s13229_s10 = int_to_ptr.vmem [resolvable:$false] %s13228_s10 }
  0xef   : > { %s13230_s18 = scalar_lea.vmem %s13229_s10, 1024  ;;  %p13231_p6 = scmp.lt.s32.totalorder %s13746_s23, %s13229_s10 }
  0xf0   : > { %p13226_p1 = pnand %p13224_p12, %p13210_p8  ;;  %p13232_p13 = scmp.lt.s32.totalorder %s13230_s18, %s13223_s14 }
  0xf2   : > { %p13227_p10 = pneg %p13226_p1  ;;  %p13233_p0 = por %p13232_p13, %p13231_p6 }
  0xf4   : > { %p13234_p2 = pnand %p13233_p0, %p13227_p10 }
  0xf6   : > { %13237 = shalt.err (!%p13234_p2)
}
  0xf7   : > { %s15174_s16 = smov 4   ;;  %s15175_s2 = smov 64  }
  0xf8   : > { %12345 = dma.hbm_to_vmem [thread:$0]  (!%p13742_p11), %s13740_s21, 512, %s13746_s23, %s13748_s15, %s15175_s2, %s15175_s2, %s15174_s16  }
  0xf9   : > { %p15176_p8 = scmp.ne.s32.totalorder %s15161_s30, 0 }
  0xfa   : > { %s13782_s22 = sand.u32 (!%p15176_p8), 1, %s13372_s25  }
  0xfb   : > { %592 = sbr.rel (%p15176_p8) target bundleno = 6240 (0x1860), region = 80  ;;  %s9625_s14 = sshll.u32 (!%p15176_p8), %s13782_s22, 5 }
  0xfc   : > { %s595_s29 = scalar_lea.sflag (!%p15176_p8), [#allocation3], %s13782_s22  ;;  %s13786_s10 = scalar_lea.vmem (!%p15176_p8), [#allocation2], %s9625_s14 }
 0x102   : > { %13339 = dma.done.wait (%p13720_p7), %s595_s29, 512  }
 0x103   : > { %13341 = vsyncadd (%p13720_p7), %s595_s29, 4294966784  ;;  %p15177_p6 = scmp.eq.s32.totalorder %s13513_s0, 0 }
 0x105   : > { %13343 = dma.done.wait (%p15177_p6), [#allocation6], 5184   ;;  %p15178_p10 = pmov %p15177_p6 }
 0x106   : > { %p15179_p11 = pmov %p15177_p6 }
 0x107   : > { %13345 = vsyncadd (%p15178_p10), [#allocation6], 4294962112 }
 0x108   : > { %13347 = dma.done.wait (%p15179_p11), [#allocation9], 18432   ;;  %p15180_p3 = pmov %p15177_p6 }
 0x10a   : > { %13349 = vsyncadd (%p15180_p3), [#allocation9], 4294948864  ;;  %p15181_p5 = pmov %p15180_p3 }
 0x10b   : > { %p15182_p9 = pmov %p15180_p3 }
 0x10c   : > { %13351 = dma.done.wait (%p15181_p5), [#allocation12], 18432  }
 0x10d   : > { %13353 = vsyncadd (%p15182_p9), [#allocation12], 4294948864  ;;  %p15183_p7 = pmov %p15180_p3 }
 0x10e   : > { %p15184_p4 = pmov %p15180_p3 }
 0x10f   : > { %13355 = dma.done.wait (%p15183_p7), [#allocation15], 18432  }
 0x110   : > { %13357 = vsyncadd (%p15184_p4), [#allocation15], 4294948864  ;;  %v13809_v0 = vld [vmem:[%s13786_s10] sm:$0xff]   ;;  %v13812_v1 = vld [vmem:[%s13786_s10 + $0x8] sm:$0xff]   ;;  %vm748_vm0 = vcmask 523264   ;;  %s15185_s6 = sld [smem:[#allocation33_spill]] }
 0x111   : > { %10860 = vmatprep.subr.bf16.mxu1 %v13809_v0  ;;  %v13817_v2 = vld [vmem:[%s13786_s10 + $0x10] sm:$0xff]   ;;  %v12424_v3 = vld [vmem:[#allocation5] sm:$0xff]   ;;  %v13824_v4 = vld [vmem:[%s13786_s10 + $0x18] sm:$0xff]   ;;  %vm13395_vm1 = vmmov 0   ;;  %s15186_s8 = sld [smem:[#allocation35_spill]]  ;;  %s15187_s18 = sld [smem:[#allocation29_spill]] }
 0x112   : > { %10861 = vmatpush3.bf16.msra.mxu1 %v13809_v0  ;;  %10868 = vmatprep.mubr.msk.bf16.mxu1 %vm748_vm0, %v12424_v3  ;;  %v12425_v5 = vld [vmem:[#allocation5 + $0x8] sm:$0xff]   ;;  %v12426_v6 = vld [vmem:[#allocation5 + $0x10] sm:$0xff]   ;;  %v12427_v7 = vld [vmem:[#allocation5 + $0x18] sm:$0xff]   ;;  %s15188_s5 = sld [smem:[#allocation36_spill]]  ;;  %s15144_s1 = sshll.u32 %s13782_s22, 4  ;;  %vm6293_vm2 = vcmask 130048  }
 0x113   : > { %10862 = vmatprep.subr.bf16.mxu1 %v13812_v1  ;;  %v12428_v8 = vld [vmem:[#allocation5 + $0x20] sm:$0xff]   ;;  %v12429_v10 = vld [vmem:[#allocation5 + $0x28] sm:$0xff]   ;;  %v12430_v12 = vld [vmem:[#allocation5 + $0x30] sm:$0xff]   ;;  %s14746_s21 = scalar_lea.vmem [#allocation16], %s15144_s1  ;;  %s15189_s2 = sld [smem:[#allocation37_spill]]  ;;  %vm7673_vm3 = vcmask 1043456  }
 0x114   : > { %v12448_v9 = vld [vmem:[#allocation8 + $0x40] sm:$0xff]   ;;  %v12450_v11 = vld [vmem:[#allocation8 + $0x48] sm:$0xff]   ;;  %v12452_v13 = vld [vmem:[#allocation8 + $0x50] sm:$0xff]   ;;  %s9634_s14 = sshll.u32 %s13782_s22, 3  ;;  %s15190_s15 = sld [smem:[#allocation31_spill]]  ;;  %vm7669_vm4 = vcmask 64512  }
 0x115   : > { %10892 = vmatprep.subr.bf16.mxu0 %v12448_v9  ;;  %v12431_v14 = vld [vmem:[#allocation5 + $0x38] sm:$0xff]   ;;  %v12432_v15 = vld [vmem:[#allocation5 + $0x40] sm:$0xff]   ;;  %v12433_v16 = vld [vmem:[#allocation5 + $0x48] sm:$0xff]   ;;  %s14888_s29 = scalar_lea.vmem [#allocation17], %s9634_s14  ;;  %s9383_s16 = sshll.u32 %s14746_s21, 4  ;;  %s14987_s16 = int_to_ptr.vmem [resolvable:$true] %s9383_s16 }
 0x116   : > { %10863 = vmatpush3.bf16.msra.mxu1 %v13812_v1  ;;  %10893 = vmatpush3.bf16.msra.mxu0 %v12448_v9  ;;  %v12434_v17 = vld [vmem:[#allocation5 + $0x50] sm:$0xff]   ;;  %v12435_v18 = vld [vmem:[#allocation5 + $0x58] sm:$0xff]   ;;  %v12436_v19 = vld [vmem:[#allocation5 + $0x60] sm:$0xff]   ;;  %s10249_s14 = sshll.u32 %s13513_s0, 7  ;;  %s9399_s1 = sshll.u32 %s14888_s29, 4  ;;  %s14997_s1 = int_to_ptr.vmem [resolvable:$true] %s9399_s1 }
 0x117   : > { %10864 = vmatprep.subr.bf16.mxu1 %v13817_v2  ;;  %10894 = vmatprep.subr.bf16.mxu0 %v12450_v11  ;;  %v12437_v20 = vld [vmem:[#allocation5 + $0x68] sm:$0xff]   ;;  %v12438_v21 = vld [vmem:[#allocation5 + $0x70] sm:$0xff]   ;;  %v12439_v22 = vld [vmem:[#allocation5 + $0x78] sm:$0xff]   ;;  %s10255_s3 = sshll.u32 %s13513_s0, 8  ;;  %s13238_s7 = scalar_lea.vmem %s14997_s1, 128 }
 0x118   : > { %v12440_v23 = vld [vmem:[#allocation5 + $0x80] sm:$0xff]   ;;  %v12441_v24 = vld [vmem:[#allocation5 + $0x88] sm:$0xff]   ;;  %v12442_v25 = vld [vmem:[#allocation5 + $0x90] sm:$0xff]   ;;  %p13239_p12 = scmp.ne.s32.totalorder %s14997_s1, %s13238_s7  ;;  %p15192_p1 = scmp.ne.s32.totalorder %s15170_s12, 0 }
 0x119   : > { %v12443_v26 = vld [vmem:[#allocation5 + $0x98] sm:$0xff]   ;;  %v12444_v27 = vld [vmem:[#allocation5 + $0xa0] sm:$0xff]   ;;  %v12445_v28 = vld [vmem:[#allocation5 + $0xa8] sm:$0xff]  }
 0x11a   : > { %10865 = vmatpush3.bf16.msra.mxu1 %v13817_v2  ;;  %10895 = vmatpush3.bf16.msra.mxu0 %v12450_v11  ;;  %v12446_v29 = vld [vmem:[#allocation5 + $0xb0] sm:$0xff]   ;;  %v12447_v30 = vld [vmem:[#allocation5 + $0xb8] sm:$0xff]   ;;  %v12449_v31 = vld [vmem:[#allocation5 + $0xc0] sm:$0xff]   ;;  %p13240_p13 = pnand %p13239_p12, %p15192_p1 }
 0x11b   : > { %10866 = vmatprep.subr.bf16.mxu1 %v13824_v4  ;;  %10896 = vmatprep.subr.bf16.mxu0 %v12452_v13  ;;  %v12453_v32 = vld [vmem:[#allocation8 + $0x58] sm:$0xff]   ;;  %v12454_v33 = vld [vmem:[#allocation8 + $0x60] sm:$0xff]   ;;  %v12455_v35 = vld [vmem:[#allocation8 + $0x68] sm:$0xff]  }
 0x11c   : > { %v12451_v34 = vld [vmem:[#allocation5 + $0xc8] sm:$0xff]   ;;  %v12456_v36 = vld [vmem:[#allocation8 + $0x70] sm:$0xff]   ;;  %v12459_v39 = vld [vmem:[#allocation8 + $0x78] sm:$0xff]   ;;  %p13241_p0 = pneg %p13240_p13 }
 0x11d   : > { %v12457_v37 = vld [vmem:[#allocation5 + $0xd0] sm:$0xff]   ;;  %v12458_v38 = vld [vmem:[#allocation5 + $0xd8] sm:$0xff]   ;;  %v12460_v40 = vld [vmem:[#allocation8] sm:$0xff]  }
 0x11e   : > { %10867 = vmatpush3.bf16.msra.mxu1 %v13824_v4  ;;  %10897 = vmatpush3.bf16.msra.mxu0 %v12452_v13  ;;  %v12461_v41 = vld [vmem:[#allocation5 + $0xe0] sm:$0xff]   ;;  %v12463_v42 = vld [vmem:[#allocation5 + $0xe8] sm:$0xff]   ;;  %v12974_v44 = vld [vmem:[%s13786_s10 + $0x10] sm:$0xff]  }
 0x11f   : > { %10876 = vmatprep.subr.bf16.mxu1 %v13809_v0  ;;  %10898 = vmatprep.subr.bf16.mxu0 %v12453_v32  ;;  %v12973_v43 = vld [vmem:[%s13786_s10 + $0x8] sm:$0xff]   ;;  %v12975_v45 = vld [vmem:[%s13786_s10 + $0x18] sm:$0xff]   ;;  %v12469_v46 = vld [vmem:[#allocation5 + $0xf0] sm:$0xff]  }
 0x120   : > { %v12470_v47 = vld [vmem:[#allocation5 + $0xf8] sm:$0xff]   ;;  %v12473_v48 = vld [vmem:[#allocation5 + $0x100] sm:$0xff]   ;;  %v12474_v49 = vld [vmem:[#allocation5 + $0x108] sm:$0xff]  }
 0x121   : > { %10869 = vmatmul.mubr.msk.bf16.vlgmr.msra.gmra.mrb[0].mxu1 %vm748_vm0, %v12425_v5  ;;  %v12477_v50 = vld [vmem:[#allocation5 + $0x110] sm:$0xff]   ;;  %v12478_v51 = vld [vmem:[#allocation5 + $0x118] sm:$0xff]   ;;  %v12976_v52 = vld [vmem:[#allocation5] sm:$0xff]  }
 0x122   : > { %10877 = vmatpush3.bf16.msra.mxu1 %v13809_v0  ;;  %10872 = vmatprep.mubr.msk.bf16.mxu1 %vm748_vm0, %v12426_v6  ;;  %v12464_v9 = vld [vmem:[#allocation8 + $0x10] sm:$0xff]  }
 0x123   : > { %10878 = vmatprep.subr.bf16.mxu1 %v13812_v1  ;;  %10899 = vmatpush3.bf16.msra.mxu0 %v12453_v32  ;;  %v12472_v32 = vld [vmem:[#allocation8 + $0x80] sm:$0xff]  }
 0x124   : > { %10900 = vmatprep.subr.bf16.mxu0 %v12454_v33 }
 0x126   : > { %10879 = vmatpush3.bf16.msra.mxu1 %v13812_v1 }
 0x127   : > { %10880 = vmatprep.subr.bf16.mxu1 %v13817_v2  ;;  %10901 = vmatpush3.bf16.msra.mxu0 %v12454_v33 }
 0x128   : > { %10902 = vmatprep.subr.bf16.mxu0 %v12455_v35 }
 0x129   : > { %10873 = vmatmul.mubr.msk.bf16.gmra.mrb[4].mxu1 %vm748_vm0, %v12427_v7  ;;  %v12462_v7 = vld [vmem:[#allocation8 + $0x8] sm:$0xff]  }
 0x12a   : > { %10881 = vmatpush3.bf16.msra.mxu1 %v13817_v2  ;;  %10884 = vmatprep.mubr.msk.bf16.mxu1 %vm748_vm0, %v12428_v8 }
 0x12b   : > { %10882 = vmatprep.subr.bf16.mxu1 %v13824_v4  ;;  %10903 = vmatpush3.bf16.msra.mxu0 %v12455_v35 }
 0x12c   : > { %10904 = vmatprep.subr.bf16.mxu0 %v12456_v36 }
 0x12e   : > { %10883 = vmatpush3.bf16.msra.mxu1 %v13824_v4 }
 0x12f   : > { %10940 = vmatprep.subr.bf16.mxu1 %v13809_v0  ;;  %10905 = vmatpush3.bf16.msra.mxu0 %v12456_v36 }
 0x130   : > { %10906 = vmatprep.subr.bf16.mxu0 %v12459_v39 }
 0x131   : > { %10885 = vmatmul.mubr.msk.bf16.vlgmr.msra.gmra.mrb[8].mxu1 %vm748_vm0, %v12429_v10 }
 0x132   : > { %10888 = vmatprep.mubr.msk.bf16.mxu1 %vm748_vm0, %v12430_v12  ;;  %10941 = vmatpush3.bf16.msra.mxu1 %v13809_v0 }
 0x133   : > { %10942 = vmatprep.subr.bf16.mxu1 %v13812_v1  ;;  %10907 = vmatpush3.bf16.msra.mxu0 %v12459_v39  ;;  %v12475_v39 = vld [vmem:[#allocation8 + $0x88] sm:$0xff]  }
 0x134   : > { %10916 = vmatprep.subr.bf16.mxu0 %v12460_v40 }
 0x136   : > { %10943 = vmatpush3.bf16.msra.mxu1 %v13812_v1 }
 0x137   : > { %10944 = vmatprep.subr.bf16.mxu1 %v13817_v2 }
 0x139   : > { %10889 = vmatmul.mubr.msk.bf16.gmra.mrb[12].mxu1 %vm748_vm0, %v12431_v14 }
 0x13a   : > { %10945 = vmatpush3.bf16.msra.mxu1 %v13817_v2  ;;  %10948 = vmatprep.mubr.msk.bf16.mxu1 %vm748_vm0, %v12432_v15  ;;  %v12465_v15 = vld [vmem:[#allocation8 + $0x18] sm:$0xff]  }
 0x13b   : > { %10946 = vmatprep.subr.bf16.mxu1 %v13824_v4 }
 0x13e   : > { %10947 = vmatpush3.bf16.msra.mxu1 %v13824_v4 }
 0x13f   : > { %10980 = vmatprep.subr.bf16.mxu1 %v13809_v0 }
 0x141   : > { %10949 = vmatmul.mubr.msk.bf16.vlgmr.msra.gmra.mrb[16].mxu1 %vm748_vm0, %v12433_v16  ;;  %v12466_v16 = vld [vmem:[#allocation8 + $0x20] sm:$0xff]  }
 0x142   : > { %10981 = vmatpush3.bf16.msra.mxu1 %v13809_v0  ;;  %10952 = vmatprep.mubr.msk.bf16.mxu1 %vm748_vm0, %v12434_v17 }
 0x143   : > { %10982 = vmatprep.subr.bf16.mxu1 %v13812_v1 }
 0x146   : > { %10983 = vmatpush3.bf16.msra.mxu1 %v13812_v1 }
 0x147   : > { %10984 = vmatprep.subr.bf16.mxu1 %v13817_v2 }
 0x149   : > { %10953 = vmatmul.mubr.msk.bf16.gmra.mrb[20].mxu1 %vm748_vm0, %v12435_v18 }
 0x14a   : > { %10985 = vmatpush3.bf16.msra.mxu1 %v13817_v2  ;;  %10988 = vmatprep.mubr.msk.bf16.mxu1 %vm748_vm0, %v12436_v19 }
 0x14b   : > { %10986 = vmatprep.subr.bf16.mxu1 %v13824_v4 }
 0x14e   : > { %10987 = vmatpush3.bf16.msra.mxu1 %v13824_v4 }
 0x14f   : > { %11020 = vmatprep.subr.bf16.mxu1 %v13809_v0 }
 0x151   : > { %10989 = vmatmul.mubr.msk.bf16.vlgmr.msra.gmra.mrb[24].mxu1 %vm748_vm0, %v12437_v20 }
 0x152   : > { %11021 = vmatpush3.bf16.msra.mxu1 %v13809_v0  ;;  %10992 = vmatprep.mubr.msk.bf16.mxu1 %vm748_vm0, %v12438_v21 }
 0x153   : > { %11022 = vmatprep.subr.bf16.mxu1 %v13812_v1 }
 0x156   : > { %11023 = vmatpush3.bf16.msra.mxu1 %v13812_v1 }
 0x157   : > { %11024 = vmatprep.subr.bf16.mxu1 %v13817_v2 }
 0x159   : > { %10993 = vmatmul.mubr.msk.bf16.gmra.mrb[28].mxu1 %vm748_vm0, %v12439_v22  ;;  %v12467_v22 = vld [vmem:[#allocation8 + $0x28] sm:$0xff]  }
 0x15a   : > { %11025 = vmatpush3.bf16.msra.mxu1 %v13817_v2  ;;  %11028 = vmatprep.mubr.msk.bf16.mxu1 %vm748_vm0, %v12440_v23 }
 0x15b   : > { %11026 = vmatprep.subr.bf16.mxu1 %v13824_v4 }
 0x15e   : > { %11027 = vmatpush3.bf16.msra.mxu1 %v13824_v4 }
 0x15f   : > { %11060 = vmatprep.subr.bf16.mxu1 %v13809_v0 }
 0x161   : > { %11029 = vmatmul.mubr.msk.bf16.vlgmr.msra.gmra.mrb[32].mxu1 %vm748_vm0, %v12441_v24  ;;  %v12468_v24 = vld [vmem:[#allocation8 + $0x30] sm:$0xff]  }
 0x162   : > { %11061 = vmatpush3.bf16.msra.mxu1 %v13809_v0  ;;  %11032 = vmatprep.mubr.msk.bf16.mxu1 %vm748_vm0, %v12442_v25 }
 0x163   : > { %11062 = vmatprep.subr.bf16.mxu1 %v13812_v1 }
 0x166   : > { %11063 = vmatpush3.bf16.msra.mxu1 %v13812_v1 }
 0x167   : > { %11064 = vmatprep.subr.bf16.mxu1 %v13817_v2 }
 0x169   : > { %11033 = vmatmul.mubr.msk.bf16.gmra.mrb[36].mxu1 %vm748_vm0, %v12443_v26 }
 0x16a   : > { %11065 = vmatpush3.bf16.msra.mxu1 %v13817_v2  ;;  %11068 = vmatprep.mubr.msk.bf16.mxu1 %vm748_vm0, %v12444_v27 }
 0x16b   : > { %11066 = vmatprep.subr.bf16.mxu1 %v13824_v4 }
 0x16e   : > { %11067 = vmatpush3.bf16.msra.mxu1 %v13824_v4 }
 0x16f   : > { %11100 = vmatprep.subr.bf16.mxu1 %v13809_v0 }
 0x171   : > { %11069 = vmatmul.mubr.msk.bf16.vlgmr.msra.gmra.mrb[40].mxu1 %vm748_vm0, %v12445_v28 }
 0x172   : > { %11101 = vmatpush3.bf16.msra.mxu1 %v13809_v0  ;;  %11072 = vmatprep.mubr.msk.bf16.mxu1 %vm748_vm0, %v12446_v29 }
 0x173   : > { %11102 = vmatprep.subr.bf16.mxu1 %v13812_v1 }
 0x176   : > { %11103 = vmatpush3.bf16.msra.mxu1 %v13812_v1 }
 0x177   : > { %11104 = vmatprep.subr.bf16.mxu1 %v13817_v2 }
 0x179   : > { %11073 = vmatmul.mubr.msk.bf16.gmra.mrb[44].mxu1 %vm748_vm0, %v12447_v30  ;;  %v12471_v30 = vld [vmem:[#allocation8 + $0x38] sm:$0xff]  }
 0x17a   : > { %11105 = vmatpush3.bf16.msra.mxu1 %v13817_v2  ;;  %11108 = vmatprep.mubr.msk.bf16.mxu1 %vm748_vm0, %v12449_v31 }
 0x17b   : > { %11106 = vmatprep.subr.bf16.mxu1 %v13824_v4 }
 0x17e   : > { %11107 = vmatpush3.bf16.msra.mxu1 %v13824_v4 }
 0x17f   : > { %11140 = vmatprep.subr.bf16.mxu1 %v13809_v0 }
 0x181   : > { %11109 = vmatmul.mubr.msk.bf16.vlgmr.msra.gmra.mrb[48].mxu1 %vm748_vm0, %v12451_v34 }
 0x182   : > { %11141 = vmatpush3.bf16.msra.mxu1 %v13809_v0  ;;  %11112 = vmatprep.mubr.msk.bf16.mxu1 %vm748_vm0, %v12457_v37 }
 0x183   : > { %11142 = vmatprep.subr.bf16.mxu1 %v13812_v1 }
 0x186   : > { %11143 = vmatpush3.bf16.msra.mxu1 %v13812_v1 }
 0x187   : > { %11144 = vmatprep.subr.bf16.mxu1 %v13817_v2 }
 0x189   : > { %11113 = vmatmul.mubr.msk.bf16.gmra.mrb[52].mxu1 %vm748_vm0, %v12458_v38 }
 0x18a   : > { %11145 = vmatpush3.bf16.msra.mxu1 %v13817_v2  ;;  %11148 = vmatprep.mubr.msk.bf16.mxu1 %vm748_vm0, %v12461_v41 }
 0x18b   : > { %11146 = vmatprep.subr.bf16.mxu1 %v13824_v4 }
 0x18e   : > { %11147 = vmatpush3.bf16.msra.mxu1 %v13824_v4 }
 0x18f   : > { %11180 = vmatprep.subr.bf16.mxu1 %v13809_v0 }
 0x191   : > { %11149 = vmatmul.mubr.msk.bf16.vlgmr.msra.gmra.mrb[56].mxu1 %vm748_vm0, %v12463_v42 }
 0x192   : > { %11181 = vmatpush3.bf16.msra.mxu1 %v13809_v0  ;;  %11152 = vmatprep.mubr.msk.bf16.mxu1 %vm748_vm0, %v12469_v46  ;;  %v12479_v46 = vld [vmem:[#allocation8 + $0x98] sm:$0xff]  }
 0x193   : > { %11182 = vmatprep.subr.bf16.mxu1 %v13812_v1 }
 0x196   : > { %11183 = vmatpush3.bf16.msra.mxu1 %v12973_v43 }
 0x197   : > { %11184 = vmatprep.subr.bf16.mxu1 %v13817_v2 }
 0x199   : > { %11153 = vmatmul.mubr.msk.bf16.gmra.mrb[60].mxu1 %vm748_vm0, %v12470_v47 }
 0x19a   : > { %11185 = vmatpush3.bf16.msra.mxu1 %v12974_v44  ;;  %11188 = vmatprep.mubr.msk.bf16.mxu1 %vm748_vm0, %v12473_v48  ;;  %v12480_v48 = vld [vmem:[#allocation8 + $0xa0] sm:$0xff]  }
 0x19b   : > { %11186 = vmatprep.subr.bf16.mxu1 %v13824_v4 }
 0x19e   : > { %11187 = vmatpush3.bf16.msra.mxu1 %v12975_v45 }
 0x1a1   : > { %11189 = vmatmul.mubr.msk.bf16.vlgmr.msra.gmra.mrb[64].mxu1 %vm748_vm0, %v12474_v49 }
 0x1a2   : > { %11192 = vmatprep.mubr.msk.bf16.mxu1 %vm748_vm0, %v12477_v50 }
 0x1a9   : > { %11193 = vmatmul.mubr.msk.bf16.gmra.mrb[68].mxu1 %vm748_vm0, %v12478_v51 }
 0x1aa   : > { %11228 = vmatprep.mubr.msk.bf16.mxu1 %vm748_vm0, %v12976_v52 }
 0x1f4   : > { %v13929_v53 = vpop.f32.mrb[0].mxu1 }
 0x1f5   : > { %v795_v54 = vpop.f32.mrb[1].mxu1 }
 0x1f6   : > { %v13931_v55 = vpop.f32.mrb[2].mxu1 }
 0x1f7   : > { %v827_v56 = vpack.c.bf16 %v13931_v55, %v13929_v53  ;;  %v798_v57 = vpop.f32.mrb[3].mxu1 }
 0x1f8   : > { %v826_v58 = vpack.c.bf16 %v798_v57, %v795_v54  ;;  %v12481_v54 = vld [vmem:[#allocation8 + $0xa8] sm:$0xff]  }
 0x1fc   : > { %v13935_v59 = vpop.f32.mrb[4].mxu1 }
 0x1fd   : > { %v13937_v60 = vpop.f32.mrb[5].mxu1 }
 0x1fe   : > { %v13939_v61 = vpop.f32.mrb[6].mxu1 }
 0x1ff   : > { %v829_v62 = vpack.c.bf16 %v13939_v61, %v13935_v59  ;;  %v13943_v63 = vpop.f32.mrb[7].mxu1 }
 0x200   : > { %v828_v0 = vpack.c.bf16 %v13943_v63, %v13937_v60  ;;  %v12483_v63 = vld [vmem:[#allocation8 + $0xb8] sm:$0xff]  }
 0x204   : > { %v10886_v1 = vpop.f32.mrb[8].mxu1 }
 0x205   : > { %v921_v2 = vpop.f32.mrb[9].mxu1 }
 0x206   : > { %v10887_v3 = vpop.f32.mrb[10].mxu1 }
 0x207   : > { %v953_v4 = vpack.c.bf16 %v10887_v3, %v10886_v1  ;;  %v924_v5 = vpop.f32.mrb[11].mxu1  ;;  %v12484_v1 = vld [vmem:[#allocation8 + $0xc0] sm:$0xff]  }
 0x208   : > { %v952_v6 = vpack.c.bf16 %v924_v5, %v921_v2 }
 0x20a   : > { %10908 = vmatprep.mubr.bf16.mxu0 %v952_v6 }
 0x20b   : > { %10909 = vmatmul.mubr.bf16.vlgmr.msra.gmra.mrb[0].mxu0 %v953_v4 }
 0x20c   : > { %10917 = vmatpush3.bf16.msra.mxu0 %v12460_v40  ;;  %v10890_v8 = vpop.f32.mrb[12].mxu1  ;;  %v12476_v40 = vld [vmem:[#allocation8 + $0x90] sm:$0xff]  }
 0x20d   : > { %v937_v10 = vpop.f32.mrb[13].mxu1  ;;  %10918 = vmatprep.subr.bf16.mxu0 %v12462_v7 }
 0x20e   : > { %v10891_v11 = vpop.f32.mrb[14].mxu1 }
 0x20f   : > { %v955_v12 = vpack.c.bf16 %v10891_v11, %v10890_v8  ;;  %v940_v13 = vpop.f32.mrb[15].mxu1 }
 0x210   : > { %v954_v14 = vpack.c.bf16 %v940_v13, %v937_v10  ;;  %10919 = vmatpush3.bf16.msra.mxu0 %v12462_v7  ;;  %v12485_v7 = vld [vmem:[#allocation8 + $0xc8] sm:$0xff]  }
 0x211   : > { %10920 = vmatprep.subr.bf16.mxu0 %v12464_v9 }
 0x212   : > { %10912 = vmatprep.mubr.bf16.mxu0 %v954_v14 }
 0x213   : > { %10913 = vmatmul.mubr.bf16.gmra.mrb[4].mxu0 %v955_v12 }
 0x214   : > { %10921 = vmatpush3.bf16.msra.mxu0 %v12464_v9  ;;  %10932 = vmatprep.mubr.bf16.mxu0 %v826_v58  ;;  %v13947_v17 = vpop.f32.mrb[16].mxu1  ;;  %v12486_v9 = vld [vmem:[#allocation8 + $0xd0] sm:$0xff]  }
 0x215   : > { %10922 = vmatprep.subr.bf16.mxu0 %v12465_v15  ;;  %v1274_v18 = vpop.f32.mrb[17].mxu1 }
 0x216   : > { %v13949_v19 = vpop.f32.mrb[18].mxu1 }
 0x217   : > { %v1306_v20 = vpack.c.bf16 %v13949_v19, %v13947_v17  ;;  %v1277_v21 = vpop.f32.mrb[19].mxu1  ;;  %v12488_v17 = vld [vmem:[#allocation8 + $0xe0] sm:$0xff]  }
 0x218   : > { %10923 = vmatpush3.bf16.msra.mxu0 %v12465_v15  ;;  %v1305_v23 = vpack.c.bf16 %v1277_v21, %v1274_v18  ;;  %v12487_v15 = vld [vmem:[#allocation8 + $0xd8] sm:$0xff]  }
 0x219   : > { %10924 = vmatprep.subr.bf16.mxu0 %v12466_v16 }
 0x21c   : > { %10925 = vmatpush3.bf16.msra.mxu0 %v12466_v16  ;;  %v13953_v25 = vpop.f32.mrb[20].mxu1 }
 0x21d   : > { %10926 = vmatprep.subr.bf16.mxu0 %v12467_v22  ;;  %v13955_v26 = vpop.f32.mrb[21].mxu1 }
 0x21e   : > { %v13957_v27 = vpop.f32.mrb[22].mxu1 }
 0x21f   : > { %v1308_v28 = vpack.c.bf16 %v13957_v27, %v13953_v25  ;;  %v13961_v29 = vpop.f32.mrb[23].mxu1  ;;  %v12490_v25 = vld [vmem:[#allocation8 + $0xf0] sm:$0xff]  }
 0x220   : > { %10927 = vmatpush3.bf16.msra.mxu0 %v12467_v22  ;;  %v1307_v31 = vpack.c.bf16 %v13961_v29, %v13955_v26 }
 0x221   : > { %10928 = vmatprep.subr.bf16.mxu0 %v12468_v24 }
 0x224   : > { %10929 = vmatpush3.bf16.msra.mxu0 %v12468_v24  ;;  %v13965_v33 = vpop.f32.mrb[24].mxu1 }
 0x225   : > { %10930 = vmatprep.subr.bf16.mxu0 %v12471_v30  ;;  %v13967_v34 = vpop.f32.mrb[25].mxu1 }
 0x226   : > { %v13969_v35 = vpop.f32.mrb[26].mxu1 }
 0x227   : > { %v1554_v36 = vpack.c.bf16 %v13969_v35, %v13965_v33  ;;  %v13973_v37 = vpop.f32.mrb[27].mxu1  ;;  %v12496_v33 = vld [vmem:[#allocation8 + $0x120] sm:$0xff]  }
 0x228   : > { %10931 = vmatpush3.bf16.msra.mxu0 %v12471_v30  ;;  %v1553_v38 = vpack.c.bf16 %v13973_v37, %v13967_v34  ;;  %v12492_v34 = vld [vmem:[#allocation8 + $0x100] sm:$0xff]  }
 0x229   : > { %10956 = vmatprep.subr.bf16.mxu0 %v12472_v32 }
 0x22b   : > { %10933 = vmatmul.mubr.bf16.vlgmr.msra.gmra.mrb[0].mxu0 %v827_v56  ;;  %v12482_v56 = vld [vmem:[#allocation8 + $0xb0] sm:$0xff]  }
 0x22c   : > { %10936 = vmatprep.mubr.bf16.mxu0 %v828_v0  ;;  %10957 = vmatpush3.bf16.msra.mxu0 %v12472_v32  ;;  %v13980_v41 = vpop.f32.mrb[28].mxu1 }
 0x22d   : > { %10958 = vmatprep.subr.bf16.mxu0 %v12475_v39  ;;  %v13982_v42 = vpop.f32.mrb[29].mxu1 }
 0x22e   : > { %v13984_v43 = vpop.f32.mrb[30].mxu1 }
 0x22f   : > { %v1556_v44 = vpack.c.bf16 %v13984_v43, %v13980_v41  ;;  %v13988_v45 = vpop.f32.mrb[31].mxu1 }
 0x230   : > { %10959 = vmatpush3.bf16.msra.mxu0 %v12475_v39  ;;  %v1555_v47 = vpack.c.bf16 %v13988_v45, %v13982_v42 }
 0x231   : > { %10960 = vmatprep.subr.bf16.mxu0 %v12476_v40 }
 0x233   : > { %10937 = vmatmul.mubr.bf16.gmra.mrb[4].mxu0 %v829_v62 }
 0x234   : > { %10961 = vmatpush3.bf16.msra.mxu0 %v12476_v40  ;;  %10972 = vmatprep.mubr.bf16.mxu0 %v1305_v23  ;;  %v13995_v49 = vpop.f32.mrb[32].mxu1  ;;  %v12489_v23 = vld [vmem:[#allocation8 + $0xe8] sm:$0xff]  }
 0x235   : > { %10962 = vmatprep.subr.bf16.mxu0 %v12479_v46  ;;  %v13997_v50 = vpop.f32.mrb[33].mxu1 }
 0x236   : > { %v13999_v51 = vpop.f32.mrb[34].mxu1 }
 0x237   : > { %v1802_v52 = vpack.c.bf16 %v13999_v51, %v13995_v49  ;;  %v14003_v53 = vpop.f32.mrb[35].mxu1  ;;  %v12503_v49 = vld [vmem:[#allocation8 + $0x158] sm:$0xff]   ;;  %v12504_v51 = vld [vmem:[#allocation8 + $0x160] sm:$0xff]  }
 0x238   : > { %10963 = vmatpush3.bf16.msra.mxu0 %v12479_v46  ;;  %v1801_v55 = vpack.c.bf16 %v14003_v53, %v13997_v50  ;;  %v12499_v50 = vld [vmem:[#allocation8 + $0x138] sm:$0xff]  }
 0x239   : > { %10964 = vmatprep.subr.bf16.mxu0 %v12480_v48 }
 0x23c   : > { %10965 = vmatpush3.bf16.msra.mxu0 %v12480_v48  ;;  %v14007_v57 = vpop.f32.mrb[36].mxu1  ;;  %v12493_v48 = vld [vmem:[#allocation8 + $0x108] sm:$0xff]  }
 0x23d   : > { %10966 = vmatprep.subr.bf16.mxu0 %v12481_v54  ;;  %v14009_v58 = vpop.f32.mrb[37].mxu1 }
 0x23e   : > { %v14011_v59 = vpop.f32.mrb[38].mxu1 }
 0x23f   : > { %v1804_v60 = vpack.c.bf16 %v14011_v59, %v14007_v57  ;;  %v14015_v61 = vpop.f32.mrb[39].mxu1  ;;  %v12508_v57 = vld [vmem:[#allocation8 + $0x180] sm:$0xff]   ;;  %v12509_v59 = vld [vmem:[#allocation8 + $0x188] sm:$0xff]  }
 0x240   : > { %10967 = vmatpush3.bf16.msra.mxu0 %v12481_v54  ;;  %v1803_v62 = vpack.c.bf16 %v14015_v61, %v14009_v58  ;;  %v12494_v54 = vld [vmem:[#allocation8 + $0x110] sm:$0xff]   ;;  %v12507_v61 = vld [vmem:[#allocation8 + $0x178] sm:$0xff]  }
 0x241   : > { %10968 = vmatprep.subr.bf16.mxu0 %v12482_v56  ;;  %v12506_v58 = vld [vmem:[#allocation8 + $0x170] sm:$0xff]  }
 0x244   : > { %10969 = vmatpush3.bf16.msra.mxu0 %v12482_v56  ;;  %v14019_v0 = vpop.f32.mrb[40].mxu1  ;;  %v12495_v56 = vld [vmem:[#allocation8 + $0x118] sm:$0xff]  }
 0x245   : > { %10970 = vmatprep.subr.bf16.mxu0 %v12483_v63  ;;  %v14021_v2 = vpop.f32.mrb[41].mxu1 }
 0x246   : > { %v14023_v3 = vpop.f32.mrb[42].mxu1 }
 0x247   : > { %v2050_v4 = vpack.c.bf16 %v14023_v3, %v14019_v0  ;;  %v14027_v5 = vpop.f32.mrb[43].mxu1  ;;  %v12512_v0 = vld [vmem:[#allocation8 + $0x1a0] sm:$0xff]   ;;  %v12514_v3 = vld [vmem:[#allocation8 + $0x1b0] sm:$0xff]  }
 0x248   : > { %10971 = vmatpush3.bf16.msra.mxu0 %v12483_v63  ;;  %v2049_v6 = vpack.c.bf16 %v14027_v5, %v14021_v2  ;;  %v12513_v2 = vld [vmem:[#allocation8 + $0x1a8] sm:$0xff]   ;;  %v12516_v5 = vld [vmem:[#allocation8 + $0x1c0] sm:$0xff]  }
 0x249   : > { %10996 = vmatprep.subr.bf16.mxu0 %v12484_v1 }
 0x24b   : > { %10973 = vmatmul.mubr.bf16.vlgmr.msra.gmra.mrb[0].mxu0 %v1306_v20 }
 0x24c   : > { %10997 = vmatpush3.bf16.msra.mxu0 %v12484_v1  ;;  %10976 = vmatprep.mubr.bf16.mxu0 %v1307_v31  ;;  %v14037_v8 = vpop.f32.mrb[44].mxu1  ;;  %v12491_v31 = vld [vmem:[#allocation8 + $0xf8] sm:$0xff]  }
 0x24d   : > { %10998 = vmatprep.subr.bf16.mxu0 %v12485_v7  ;;  %v14039_v10 = vpop.f32.mrb[45].mxu1 }
 0x24e   : > { %v14041_v11 = vpop.f32.mrb[46].mxu1 }
 0x24f   : > { %v2052_v12 = vpack.c.bf16 %v14041_v11, %v14037_v8  ;;  %v14045_v13 = vpop.f32.mrb[47].mxu1  ;;  %v12518_v8 = vld [vmem:[#allocation8 + $0x1d0] sm:$0xff]   ;;  %v12520_v11 = vld [vmem:[#allocation8 + $0x1e0] sm:$0xff]  }
 0x250   : > { %10999 = vmatpush3.bf16.msra.mxu0 %v12485_v7  ;;  %v2051_v14 = vpack.c.bf16 %v14045_v13, %v14039_v10  ;;  %v12519_v10 = vld [vmem:[#allocation8 + $0x1d8] sm:$0xff]   ;;  %v12522_v13 = vld [vmem:[#allocation8 + $0x1f0] sm:$0xff]  }
 0x251   : > { %11000 = vmatprep.subr.bf16.mxu0 %v12486_v9 }
 0x253   : > { %10977 = vmatmul.mubr.bf16.gmra.mrb[4].mxu0 %v1308_v28 }
 0x254   : > { %11001 = vmatpush3.bf16.msra.mxu0 %v12486_v9  ;;  %11012 = vmatprep.mubr.bf16.mxu0 %v1553_v38  ;;  %v14055_v16 = vpop.f32.mrb[48].mxu1  ;;  %v12500_v9 = vld [vmem:[#allocation8 + $0x140] sm:$0xff]  }
 0x255   : > { %11002 = vmatprep.subr.bf16.mxu0 %v12487_v15  ;;  %v14057_v18 = vpop.f32.mrb[49].mxu1 }
 0x256   : > { %v14059_v19 = vpop.f32.mrb[50].mxu1 }
 0x257   : > { %v2298_v20 = vpack.c.bf16 %v14059_v19, %v14055_v16  ;;  %v14063_v21 = vpop.f32.mrb[51].mxu1  ;;  %v12524_v16 = vld [vmem:[#allocation8 + $0x200] sm:$0xff]   ;;  %v12526_v19 = vld [vmem:[#allocation8 + $0x210] sm:$0xff]  }
 0x258   : > { %11003 = vmatpush3.bf16.msra.mxu0 %v12487_v15  ;;  %v2297_v22 = vpack.c.bf16 %v14063_v21, %v14057_v18  ;;  %v12525_v18 = vld [vmem:[#allocation8 + $0x208] sm:$0xff]   ;;  %v12528_v21 = vld [vmem:[#allocation8 + $0x220] sm:$0xff]  }
 0x259   : > { %11004 = vmatprep.subr.bf16.mxu0 %v12488_v17 }
 0x25c   : > { %11005 = vmatpush3.bf16.msra.mxu0 %v12488_v17  ;;  %v14067_v24 = vpop.f32.mrb[52].mxu1  ;;  %v12501_v17 = vld [vmem:[#allocation8 + $0x148] sm:$0xff]  }
 0x25d   : > { %11006 = vmatprep.subr.bf16.mxu0 %v12489_v23  ;;  %v14069_v26 = vpop.f32.mrb[53].mxu1 }
 0x25e   : > { %v14071_v27 = vpop.f32.mrb[54].mxu1 }
 0x25f   : > { %v2300_v28 = vpack.c.bf16 %v14071_v27, %v14067_v24  ;;  %v14075_v29 = vpop.f32.mrb[55].mxu1  ;;  %v12530_v24 = vld [vmem:[#allocation8 + $0x230] sm:$0xff]   ;;  %v12977_v27 = vld [vmem:[#allocation5 + $0x80] sm:$0xff]  }
 0x260   : > { %11007 = vmatpush3.bf16.msra.mxu0 %v12489_v23  ;;  %v2299_v30 = vpack.c.bf16 %v14075_v29, %v14069_v26  ;;  %v12531_v26 = vld [vmem:[#allocation8 + $0x238] sm:$0xff]  }
 0x261   : > { %11008 = vmatprep.subr.bf16.mxu0 %v12490_v25 }
 0x264   : > { %11009 = vmatpush3.bf16.msra.mxu0 %v12490_v25  ;;  %v14079_v32 = vpop.f32.mrb[56].mxu1 }
 0x265   : > { %11010 = vmatprep.subr.bf16.mxu0 %v12491_v31  ;;  %v14081_v37 = vpop.f32.mrb[57].mxu1 }
 0x266   : > { %v14083_v38 = vpop.f32.mrb[58].mxu1 }
 0x267   : > { %v2546_v39 = vpack.c.bf16 %v14083_v38, %v14079_v32  ;;  %v14087_v40 = vpop.f32.mrb[59].mxu1 }
 0x268   : > { %11011 = vmatpush3.bf16.msra.mxu0 %v12491_v31  ;;  %v2545_v46 = vpack.c.bf16 %v14087_v40, %v14081_v37 }
 0x269   : > { %11036 = vmatprep.subr.bf16.mxu0 %v12492_v34 }
 0x26b   : > { %11013 = vmatmul.mubr.bf16.vlgmr.msra.gmra.mrb[0].mxu0 %v1554_v36  ;;  %v12497_v36 = vld [vmem:[#allocation8 + $0x128] sm:$0xff]  }
 0x26c   : > { %11037 = vmatpush3.bf16.msra.mxu0 %v12492_v34  ;;  %11016 = vmatprep.mubr.bf16.mxu0 %v1555_v47  ;;  %v14103_v35 = vpop.f32.mrb[60].mxu1  ;;  %v12498_v47 = vld [vmem:[#allocation8 + $0x130] sm:$0xff]  }
 0x26d   : > { %11038 = vmatprep.subr.bf16.mxu0 %v12493_v48  ;;  %v14105_v42 = vpop.f32.mrb[61].mxu1 }
 0x26e   : > { %v14107_v45 = vpop.f32.mrb[62].mxu1 }
 0x26f   : > { %v2548_v41 = vpack.c.bf16 %v14107_v45, %v14103_v35  ;;  %v14111_v43 = vpop.f32.mrb[63].mxu1 }
 0x270   : > { %11039 = vmatpush3.bf16.msra.mxu0 %v12493_v48 }
 0x271   : > { %11040 = vmatprep.subr.bf16.mxu0 %v12494_v54 }
 0x273   : > { %11017 = vmatmul.mubr.bf16.gmra.mrb[4].mxu0 %v1556_v44  ;;  %v2547_v44 = vpack.c.bf16 %v14111_v43, %v14105_v42 }
 0x274   : > { %11041 = vmatpush3.bf16.msra.mxu0 %v12494_v54  ;;  %11052 = vmatprep.mubr.bf16.mxu0 %v1801_v55  ;;  %v14115_v53 = vpop.f32.mrb[64].mxu1  ;;  %v12502_v54 = vld [vmem:[#allocation8 + $0x150] sm:$0xff]  }
 0x275   : > { %11042 = vmatprep.subr.bf16.mxu0 %v12495_v56  ;;  %v14117_v55 = vpop.f32.mrb[65].mxu1 }
 0x276   : > { %v14119_v63 = vpop.f32.mrb[66].mxu1 }
 0x277   : > { %v2794_v1 = vpack.c.bf16 %v14119_v63, %v14115_v53  ;;  %v14123_v7 = vpop.f32.mrb[67].mxu1 }
 0x278   : > { %11043 = vmatpush3.bf16.msra.mxu0 %v12495_v56  ;;  %v2793_v15 = vpack.c.bf16 %v14123_v7, %v14117_v55 }
 0x279   : > { %11044 = vmatprep.subr.bf16.mxu0 %v12496_v33 }
 0x27c   : > { %11045 = vmatpush3.bf16.msra.mxu0 %v12496_v33  ;;  %v14127_v23 = vpop.f32.mrb[68].mxu1 }
 0x27d   : > { %11046 = vmatprep.subr.bf16.mxu0 %v12497_v36  ;;  %v14129_v25 = vpop.f32.mrb[69].mxu1 }
 0x27e   : > { %v14134_v31 = vpop.f32.mrb[70].mxu1 }
 0x27f   : > { %v2796_v34 = vpack.c.bf16 %v14134_v31, %v14127_v23  ;;  %v14141_v48 = vpop.f32.mrb[71].mxu1  ;;  %v12978_v31 = vld [vmem:[#allocation5 + $0x8] sm:$0xff]  }
 0x280   : > { %11047 = vmatpush3.bf16.msra.mxu0 %v12497_v36  ;;  %v2795_v56 = vpack.c.bf16 %v14141_v48, %v14129_v25  ;;  %v12980_v48 = vld [vmem:[#allocation5 + $0x10] sm:$0xff]  }
 0x281   : > { %11048 = vmatprep.subr.bf16.mxu0 %v12498_v47 }
 0x284   : > { %11049 = vmatpush3.bf16.msra.mxu0 %v12498_v47 }
 0x285   : > { %11050 = vmatprep.subr.bf16.mxu0 %v12499_v50 }
 0x288   : > { %11051 = vmatpush3.bf16.msra.mxu0 %v12499_v50 }
 0x289   : > { %11076 = vmatprep.subr.bf16.mxu0 %v12500_v9 }
 0x28b   : > { %11053 = vmatmul.mubr.bf16.vlgmr.msra.gmra.mrb[0].mxu0 %v1802_v52  ;;  %v12505_v52 = vld [vmem:[#allocation8 + $0x168] sm:$0xff]  }
 0x28c   : > { %11077 = vmatpush3.bf16.msra.mxu0 %v12500_v9  ;;  %11056 = vmatprep.mubr.bf16.mxu0 %v1803_v62  ;;  %v12511_v62 = vld [vmem:[#allocation8 + $0x198] sm:$0xff]  }
 0x28d   : > { %11078 = vmatprep.subr.bf16.mxu0 %v12501_v17 }
 0x290   : > { %11079 = vmatpush3.bf16.msra.mxu0 %v12501_v17 }
 0x291   : > { %11080 = vmatprep.subr.bf16.mxu0 %v12502_v54 }
 0x293   : > { %11057 = vmatmul.mubr.bf16.gmra.mrb[4].mxu0 %v1804_v60  ;;  %v12510_v60 = vld [vmem:[#allocation8 + $0x190] sm:$0xff]  }
 0x294   : > { %11081 = vmatpush3.bf16.msra.mxu0 %v12502_v54  ;;  %11092 = vmatprep.mubr.bf16.mxu0 %v2049_v6  ;;  %v12517_v6 = vld [vmem:[#allocation8 + $0x1c8] sm:$0xff]  }
 0x295   : > { %11082 = vmatprep.subr.bf16.mxu0 %v12503_v49  ;;  %v12981_v54 = vld [vmem:[#allocation5 + $0x90] sm:$0xff]  }
 0x298   : > { %11083 = vmatpush3.bf16.msra.mxu0 %v12503_v49  ;;  %v12983_v49 = vld [vmem:[#allocation5 + $0x98] sm:$0xff]  }
 0x299   : > { %11084 = vmatprep.subr.bf16.mxu0 %v12504_v51 }
 0x29c   : > { %11085 = vmatpush3.bf16.msra.mxu0 %v12504_v51  ;;  %v12532_v51 = vld [vmem:[#allocation10 + $0x40] sm:$0xff]  }
 0x29d   : > { %11086 = vmatprep.subr.bf16.mxu0 %v12505_v52 }
 0x2a0   : > { %11087 = vmatpush3.bf16.msra.mxu0 %v12505_v52  ;;  %v12984_v52 = vld [vmem:[#allocation5 + $0x20] sm:$0xff]  }
 0x2a1   : > { %11088 = vmatprep.subr.bf16.mxu0 %v12506_v58 }
 0x2a4   : > { %11089 = vmatpush3.bf16.msra.mxu0 %v12506_v58  ;;  %v12985_v58 = vld [vmem:[#allocation5 + $0xa0] sm:$0xff]  }
 0x2a5   : > { %11090 = vmatprep.subr.bf16.mxu0 %v12507_v61 }
 0x2a8   : > { %11091 = vmatpush3.bf16.msra.mxu0 %v12507_v61  ;;  %v12986_v61 = vld [vmem:[#allocation5 + $0x28] sm:$0xff]  }
 0x2a9   : > { %11116 = vmatprep.subr.bf16.mxu0 %v12508_v57 }
 0x2ab   : > { %11093 = vmatmul.mubr.bf16.vlgmr.msra.gmra.mrb[0].mxu0 %v2050_v4  ;;  %v12515_v4 = vld [vmem:[#allocation8 + $0x1b8] sm:$0xff]  }
 0x2ac   : > { %11117 = vmatpush3.bf16.msra.mxu0 %v12508_v57  ;;  %11096 = vmatprep.mubr.bf16.mxu0 %v2051_v14  ;;  %v12523_v14 = vld [vmem:[#allocation8 + $0x1f8] sm:$0xff]   ;;  %v12987_v57 = vld [vmem:[#allocation5 + $0xa8] sm:$0xff]  }
 0x2ad   : > { %11118 = vmatprep.subr.bf16.mxu0 %v12509_v59 }
 0x2b0   : > { %11119 = vmatpush3.bf16.msra.mxu0 %v12509_v59  ;;  %v12533_v59 = vld [vmem:[#allocation10 + $0x48] sm:$0xff]  }
 0x2b1   : > { %11120 = vmatprep.subr.bf16.mxu0 %v12510_v60 }
 0x2b3   : > { %11097 = vmatmul.mubr.bf16.gmra.mrb[4].mxu0 %v2052_v12  ;;  %v12521_v12 = vld [vmem:[#allocation8 + $0x1e8] sm:$0xff]  }
 0x2b4   : > { %11121 = vmatpush3.bf16.msra.mxu0 %v12510_v60  ;;  %11132 = vmatprep.mubr.bf16.mxu0 %v2297_v22  ;;  %v12529_v22 = vld [vmem:[#allocation8 + $0x228] sm:$0xff]  }
 0x2b5   : > { %11122 = vmatprep.subr.bf16.mxu0 %v12511_v62  ;;  %v12988_v60 = vld [vmem:[#allocation5 + $0x30] sm:$0xff]  }
 0x2b8   : > { %11123 = vmatpush3.bf16.msra.mxu0 %v12511_v62  ;;  %v12989_v62 = vld [vmem:[#allocation5 + $0xb0] sm:$0xff]  }
 0x2b9   : > { %11124 = vmatprep.subr.bf16.mxu0 %v12512_v0 }
 0x2bc   : > { %11125 = vmatpush3.bf16.msra.mxu0 %v12512_v0  ;;  %v12534_v0 = vld [vmem:[#allocation10 + $0x50] sm:$0xff]  }
 0x2bd   : > { %11126 = vmatprep.subr.bf16.mxu0 %v12513_v2 }
 0x2c0   : > { %11127 = vmatpush3.bf16.msra.mxu0 %v12513_v2  ;;  %v12990_v2 = vld [vmem:[#allocation5 + $0x38] sm:$0xff]  }
 0x2c1   : > { %11128 = vmatprep.subr.bf16.mxu0 %v12514_v3 }
 0x2c4   : > { %11129 = vmatpush3.bf16.msra.mxu0 %v12514_v3  ;;  %v12991_v3 = vld [vmem:[#allocation5 + $0xb8] sm:$0xff]  }
 0x2c5   : > { %11130 = vmatprep.subr.bf16.mxu0 %v12515_v4 }
 0x2c8   : > { %11131 = vmatpush3.bf16.msra.mxu0 %v12515_v4  ;;  %v12992_v4 = vld [vmem:[#allocation5 + $0xc0] sm:$0xff]  }
 0x2c9   : > { %11156 = vmatprep.subr.bf16.mxu0 %v12516_v5 }
 0x2cb   : > { %11133 = vmatmul.mubr.bf16.vlgmr.msra.gmra.mrb[0].mxu0 %v2298_v20  ;;  %v12527_v20 = vld [vmem:[#allocation8 + $0x218] sm:$0xff]  }
 0x2cc   : > { %11157 = vmatpush3.bf16.msra.mxu0 %v12516_v5  ;;  %11136 = vmatprep.mubr.bf16.mxu0 %v2299_v30  ;;  %v12993_v5 = vld [vmem:[#allocation5 + $0xc8] sm:$0xff]  }
 0x2cd   : > { %11158 = vmatprep.subr.bf16.mxu0 %v12517_v6 }
 0x2d0   : > { %11159 = vmatpush3.bf16.msra.mxu0 %v12517_v6  ;;  %v12994_v6 = vld [vmem:[#allocation5 + $0xd0] sm:$0xff]  }
 0x2d1   : > { %11160 = vmatprep.subr.bf16.mxu0 %v12518_v8 }
 0x2d3   : > { %11137 = vmatmul.mubr.bf16.gmra.mrb[4].mxu0 %v2300_v28  ;;  %v9784_v28 = vld [vmem:[%s15185_s6] ss:$0 sm:$0xff] }
 0x2d4   : > { %11161 = vmatpush3.bf16.msra.mxu0 %v12518_v8  ;;  %11172 = vmatprep.mubr.bf16.mxu0 %v2545_v46  ;;  %v12995_v8 = vld [vmem:[#allocation5 + $0xd8] sm:$0xff]  }
 0x2d5   : > { %11162 = vmatprep.subr.bf16.mxu0 %v12519_v10 }
 0x2d8   : > { %11163 = vmatpush3.bf16.msra.mxu0 %v12519_v10  ;;  %v12996_v10 = vld [vmem:[#allocation5 + $0xe0] sm:$0xff]  }
 0x2d9   : > { %11164 = vmatprep.subr.bf16.mxu0 %v12520_v11 }
 0x2dc   : > { %11165 = vmatpush3.bf16.msra.mxu0 %v12520_v11  ;;  %v12997_v11 = vld [vmem:[#allocation5 + $0xe8] sm:$0xff]  }
 0x2dd   : > { %11166 = vmatprep.subr.bf16.mxu0 %v12521_v12 }
 0x2e0   : > { %11167 = vmatpush3.bf16.msra.mxu0 %v12521_v12  ;;  %v12998_v12 = vld [vmem:[#allocation5 + $0xf0] sm:$0xff]  }
 0x2e1   : > { %11168 = vmatprep.subr.bf16.mxu0 %v12522_v13 }
 0x2e4   : > { %11169 = vmatpush3.bf16.msra.mxu0 %v12522_v13  ;;  %v12999_v13 = vld [vmem:[#allocation5 + $0xf8] sm:$0xff]  }
 0x2e5   : > { %11170 = vmatprep.subr.bf16.mxu0 %v12523_v14 }
 0x2e8   : > { %11171 = vmatpush3.bf16.msra.mxu0 %v12523_v14  ;;  %v13000_v14 = vld [vmem:[#allocation5 + $0x100] sm:$0xff]  }
 0x2e9   : > { %11196 = vmatprep.subr.bf16.mxu0 %v12524_v16 }
 0x2eb   : > { %11173 = vmatmul.mubr.bf16.vlgmr.msra.gmra.mrb[0].mxu0 %v2546_v39 }
 0x2ec   : > { %11197 = vmatpush3.bf16.msra.mxu0 %v12524_v16  ;;  %11176 = vmatprep.mubr.bf16.mxu0 %v2547_v44  ;;  %v13001_v16 = vld [vmem:[#allocation5 + $0x108] sm:$0xff]  }
 0x2ed   : > { %11198 = vmatprep.subr.bf16.mxu0 %v12525_v18 }
 0x2f0   : > { %11199 = vmatpush3.bf16.msra.mxu0 %v12525_v18  ;;  %v13002_v18 = vld [vmem:[#allocation5 + $0x110] sm:$0xff]  }
 0x2f1   : > { %11200 = vmatprep.subr.bf16.mxu0 %v12526_v19 }
 0x2f3   : > { %11177 = vmatmul.mubr.bf16.gmra.mrb[4].mxu0 %v2548_v41 }
 0x2f4   : > { %11201 = vmatpush3.bf16.msra.mxu0 %v12526_v19  ;;  %11212 = vmatprep.mubr.bf16.mxu0 %v2793_v15  ;;  %v13003_v19 = vld [vmem:[#allocation5 + $0x118] sm:$0xff]  }
 0x2f5   : > { %11202 = vmatprep.subr.bf16.mxu0 %v12527_v20 }
 0x2f8   : > { %11203 = vmatpush3.bf16.msra.mxu0 %v12527_v20  ;;  %v12535_v20 = vld [vmem:[#allocation10 + $0x58] sm:$0xff]  }
 0x2f9   : > { %11204 = vmatprep.subr.bf16.mxu0 %v12528_v21 }
 0x2fc   : > { %11205 = vmatpush3.bf16.msra.mxu0 %v12528_v21  ;;  %v12536_v21 = vld [vmem:[#allocation10 + $0x60] sm:$0xff]  }
 0x2fd   : > { %11206 = vmatprep.subr.bf16.mxu0 %v12529_v22 }
 0x300   : > { %11207 = vmatpush3.bf16.msra.mxu0 %v12529_v22  ;;  %v12537_v22 = vld [vmem:[#allocation10 + $0x68] sm:$0xff]  }
 0x301   : > { %11208 = vmatprep.subr.bf16.mxu0 %v12530_v24 }
 0x304   : > { %11209 = vmatpush3.bf16.msra.mxu0 %v12530_v24  ;;  %v12538_v24 = vld [vmem:[#allocation10 + $0x70] sm:$0xff]  }
 0x305   : > { %11210 = vmatprep.subr.bf16.mxu0 %v12531_v26 }
 0x308   : > { %11211 = vmatpush3.bf16.msra.mxu0 %v12531_v26  ;;  %v12539_v26 = vld [vmem:[#allocation10 + $0x78] sm:$0xff]  }
 0x30b   : > { %11213 = vmatmul.mubr.bf16.vlgmr.msra.gmra.mrb[0].mxu0 %v2794_v1 }
 0x30c   : > { %11216 = vmatprep.mubr.bf16.mxu0 %v2795_v56  ;;  %v12982_v56 = vld [vmem:[#allocation5 + $0x18] sm:$0xff]  }
 0x313   : > { %11217 = vmatmul.mubr.bf16.gmra.mrb[4].mxu0 %v2796_v34  ;;  %v12979_v34 = vld [vmem:[#allocation5 + $0x88] sm:$0xff]  }
 0x314   : > { %11388 = vmatprep.mubr.msk.bf16.mxu0 %vm748_vm0, %v12977_v27  ;;  %v12540_v27 = vld [vmem:[#allocation10] sm:$0xff]  }
 0x3de   : > { %v11214_v29 = vpop.f32.mrb[0].mxu0 }
 0x3df   : > { %v2944_v30 = vadd.f32 %v11214_v29, %v9784_v28  ;;  %v2896_v32 = vpop.f32.mrb[1].mxu0 }
 0x3e0   : > { %v2942_v37 = vadd.f32 %v9784_v28, %v2896_v32  ;;  %v11215_v38 = vpop.f32.mrb[2].mxu0 }
 0x3e1   : > { %v2945_v39 = vadd.f32 %v11215_v38, %v9784_v28  ;;  %v2899_v40 = vpop.f32.mrb[3].mxu0  ;;  %v2952_v33 = vmax.f32 %v2944_v30, 0.0 }
 0x3e2   : > { %v2943_v46 = vadd.f32 %v9784_v28, %v2899_v40  ;;  %v2950_v36 = vmax.f32 %v2942_v37, 0.0 }
 0x3e3   : > { %v2953_v35 = vmax.f32 %v2945_v39, 0.0 }
 0x3e4   : > { %v2951_v42 = vmax.f32 %v2943_v46, 0.0 }
 0x3e5   : > { %v14200_v45 = vpack.c.bf16 %v2953_v35, %v2952_v33 }
 0x3e6   : > { %v14202_v41 = vpack.c.bf16 %v2951_v42, %v2950_v36  ;;  %v11218_v43 = vpop.f32.mrb[4].mxu0 }
 0x3e7   : > { %v2948_v44 = vadd.f32 %v11218_v43, %v9784_v28  ;;  %v2912_v47 = vpop.f32.mrb[5].mxu0 }
 0x3e8   : > { %v2946_v50 = vadd.f32 %v9784_v28, %v2912_v47  ;;  %v11219_v53 = vpop.f32.mrb[6].mxu0  ;;  %11220 = vmatprep.subr.bf16.mxu1 %v14202_v41  ;;  %11380 = vmatprep.subr.bf16.mxu0 %v14202_v41 }
 0x3e9   : > { %v2949_v55 = vadd.f32 %v11219_v53, %v9784_v28  ;;  %v2915_v63 = vpop.f32.mrb[7].mxu0  ;;  %11221 = vmatpush3.bf16.msra.mxu1 %v14202_v41  ;;  %11381 = vmatpush3.bf16.msra.mxu0 %v14202_v41  ;;  %v2956_v7 = vmax.f32 %v2948_v44, 0.0 }
 0x3ea   : > { %v2947_v1 = vadd.f32 %v9784_v28, %v2915_v63  ;;  %11222 = vmatprep.subr.bf16.mxu1 %v14200_v45  ;;  %11382 = vmatprep.subr.bf16.mxu0 %v14200_v45  ;;  %v2954_v15 = vmax.f32 %v2946_v50, 0.0 }
 0x3eb   : > { %v2957_v9 = vmax.f32 %v2949_v55, 0.0  ;;  %v12541_v55 = vld [vmem:[#allocation10 + $0x8] sm:$0xff]  }
 0x3ec   : > { %v2955_v17 = vmax.f32 %v2947_v1, 0.0 }
 0x3ed   : > { %v14210_v23 = vpack.c.bf16 %v2957_v9, %v2956_v7  ;;  %11223 = vmatpush3.bf16.msra.mxu1 %v14200_v45  ;;  %11383 = vmatpush3.bf16.msra.mxu0 %v14200_v45  ;;  %v12542_v7 = vld [vmem:[#allocation10 + $0x10] sm:$0xff]  }
 0x3ee   : > { %v14214_v25 = vpack.c.bf16 %v2955_v17, %v2954_v15 }
 0x3f0   : > { %11224 = vmatprep.subr.bf16.mxu1 %v14214_v25  ;;  %11384 = vmatprep.subr.bf16.mxu0 %v14214_v25 }
 0x3f1   : > { %11225 = vmatpush3.bf16.msra.mxu1 %v14214_v25  ;;  %11385 = vmatpush3.bf16.msra.mxu0 %v14214_v25 }
 0x3f2   : > { %11226 = vmatprep.subr.bf16.mxu1 %v14210_v23  ;;  %11386 = vmatprep.subr.bf16.mxu0 %v14210_v23 }
 0x3f5   : > { %11227 = vmatpush3.bf16.msra.mxu1 %v14210_v23  ;;  %11387 = vmatpush3.bf16.msra.mxu0 %v14210_v23 }
 0x3f6   : > { %11236 = vmatprep.subr.bf16.mxu1 %v14202_v41  ;;  %11420 = vmatprep.subr.bf16.mxu0 %v14202_v41 }
 0x3f8   : > { %11229 = vmatmul.mubr.msk.bf16.vlgmr.msra.gmra.mrb[72].mxu1 %vm748_vm0, %v12978_v31  ;;  %11389 = vmatmul.mubr.msk.bf16.vlgmr.msra.gmra.mrb[8].mxu0 %vm748_vm0, %v12979_v34  ;;  %v12543_v34 = vld [vmem:[#allocation10 + $0x18] sm:$0xff]  }
 0x3f9   : > { %11237 = vmatpush3.bf16.msra.mxu1 %v14202_v41  ;;  %11421 = vmatpush3.bf16.msra.mxu0 %v14202_v41 }
 0x3fa   : > { %11238 = vmatprep.subr.bf16.mxu1 %v14200_v45  ;;  %11422 = vmatprep.subr.bf16.mxu0 %v14200_v45 }
 0x3fb   : > { %11232 = vmatprep.mubr.msk.bf16.mxu1 %vm748_vm0, %v12980_v48  ;;  %11392 = vmatprep.mubr.msk.bf16.mxu0 %vm748_vm0, %v12981_v54  ;;  %v12544_v48 = vld [vmem:[#allocation10 + $0x20] sm:$0xff]   ;;  %v12545_v54 = vld [vmem:[#allocation10 + $0x28] sm:$0xff]  }
 0x3fd   : > { %11239 = vmatpush3.bf16.msra.mxu1 %v14200_v45  ;;  %11423 = vmatpush3.bf16.msra.mxu0 %v14200_v45 }
 0x3fe   : > { %11240 = vmatprep.subr.bf16.mxu1 %v14214_v25  ;;  %11424 = vmatprep.subr.bf16.mxu0 %v14214_v25 }
 0x400   : > { %11233 = vmatmul.mubr.msk.bf16.gmra.mrb[76].mxu1 %vm748_vm0, %v12982_v56  ;;  %11393 = vmatmul.mubr.msk.bf16.gmra.mrb[12].mxu0 %vm748_vm0, %v12983_v49  ;;  %v12546_v56 = vld [vmem:[#allocation10 + $0x30] sm:$0xff]   ;;  %v12547_v49 = vld [vmem:[#allocation10 + $0x38] sm:$0xff]  }
 0x401   : > { %11241 = vmatpush3.bf16.msra.mxu1 %v14214_v25  ;;  %11425 = vmatpush3.bf16.msra.mxu0 %v14214_v25 }
 0x402   : > { %11242 = vmatprep.subr.bf16.mxu1 %v14210_v23  ;;  %11426 = vmatprep.subr.bf16.mxu0 %v14210_v23 }
 0x403   : > { %11244 = vmatprep.mubr.msk.bf16.mxu1 %vm748_vm0, %v12984_v52  ;;  %11428 = vmatprep.mubr.msk.bf16.mxu0 %vm748_vm0, %v12985_v58  ;;  %v12548_v52 = vld [vmem:[#allocation10 + $0x80] sm:$0xff]   ;;  %v12549_v58 = vld [vmem:[#allocation10 + $0x88] sm:$0xff]  }
 0x405   : > { %11243 = vmatpush3.bf16.msra.mxu1 %v14210_v23  ;;  %11427 = vmatpush3.bf16.msra.mxu0 %v14210_v23 }
 0x406   : > { %11460 = vmatprep.subr.bf16.mxu0 %v14202_v41  ;;  %11252 = vmatprep.subr.bf16.mxu1 %v12532_v51 }
 0x408   : > { %11245 = vmatmul.mubr.msk.bf16.vlgmr.msra.gmra.mrb[80].mxu1 %vm748_vm0, %v12986_v61  ;;  %11429 = vmatmul.mubr.msk.bf16.vlgmr.msra.gmra.mrb[16].mxu0 %vm748_vm0, %v12987_v57  ;;  %v13005_v61 = vld [vmem:[#allocation5 + $0x48] sm:$0xff]   ;;  %v13006_v57 = vld [vmem:[#allocation5 + $0x50] sm:$0xff]  }
 0x409   : > { %11461 = vmatpush3.bf16.msra.mxu0 %v14202_v41  ;;  %11248 = vmatprep.mubr.msk.bf16.mxu1 %vm748_vm0, %v12988_v60  ;;  %v12551_v60 = vld [vmem:[#allocation10 + $0x98] sm:$0xff]  }
 0x40a   : > { %11462 = vmatprep.subr.bf16.mxu0 %v14200_v45  ;;  %11432 = vmatprep.mubr.msk.bf16.mxu0 %vm748_vm0, %v12989_v62  ;;  %v13007_v62 = vld [vmem:[#allocation5 + $0x58] sm:$0xff]  }
 0x40b   : > { %11253 = vmatpush3.bf16.msra.mxu1 %v12532_v51  ;;  %v13004_v51 = vld [vmem:[#allocation5 + $0x40] sm:$0xff]  }
 0x40c   : > { %11254 = vmatprep.subr.bf16.mxu1 %v12533_v59 }
 0x40d   : > { %11463 = vmatpush3.bf16.msra.mxu0 %v14200_v45 }
 0x40e   : > { %11464 = vmatprep.subr.bf16.mxu0 %v14214_v25 }
 0x40f   : > { %11255 = vmatpush3.bf16.msra.mxu1 %v12533_v59  ;;  %v12550_v59 = vld [vmem:[#allocation10 + $0x90] sm:$0xff]  }
 0x410   : > { %11249 = vmatmul.mubr.msk.bf16.gmra.mrb[84].mxu1 %vm748_vm0, %v12990_v2  ;;  %11433 = vmatmul.mubr.msk.bf16.gmra.mrb[20].mxu0 %vm748_vm0, %v12991_v3  ;;  %v12553_v2 = vld [vmem:[#allocation10 + $0xa8] sm:$0xff]   ;;  %v12554_v3 = vld [vmem:[#allocation10 + $0xb0] sm:$0xff]  }
 0x411   : > { %11465 = vmatpush3.bf16.msra.mxu0 %v14214_v25  ;;  %11468 = vmatprep.mubr.msk.bf16.mxu0 %vm748_vm0, %v12992_v4  ;;  %v12555_v4 = vld [vmem:[#allocation10 + $0xb8] sm:$0xff]  }
 0x412   : > { %11466 = vmatprep.subr.bf16.mxu0 %v14210_v23  ;;  %11256 = vmatprep.subr.bf16.mxu1 %v12534_v0 }
 0x413   : > { %11257 = vmatpush3.bf16.msra.mxu1 %v12534_v0  ;;  %v12552_v0 = vld [vmem:[#allocation10 + $0xa0] sm:$0xff]  }
 0x414   : > { %11258 = vmatprep.subr.bf16.mxu1 %v12535_v20 }
 0x415   : > { %11467 = vmatpush3.bf16.msra.mxu0 %v14210_v23 }
 0x416   : > { %11500 = vmatprep.subr.bf16.mxu0 %v14202_v41 }
 0x417   : > { %11259 = vmatpush3.bf16.msra.mxu1 %v12535_v20 }
 0x418   : > { %11469 = vmatmul.mubr.msk.bf16.vlgmr.msra.gmra.mrb[24].mxu0 %vm748_vm0, %v12993_v5  ;;  %11260 = vmatprep.subr.bf16.mxu1 %v12536_v21 }
 0x419   : > { %11501 = vmatpush3.bf16.msra.mxu0 %v14202_v41  ;;  %11472 = vmatprep.mubr.msk.bf16.mxu0 %vm748_vm0, %v12994_v6 }
 0x41a   : > { %11502 = vmatprep.subr.bf16.mxu0 %v14200_v45 }
 0x41b   : > { %11261 = vmatpush3.bf16.msra.mxu1 %v12536_v21  ;;  %v13008_v21 = vld [vmem:[#allocation5 + $0x60] sm:$0xff]  }
 0x41c   : > { %11262 = vmatprep.subr.bf16.mxu1 %v12537_v22 }
 0x41d   : > { %11503 = vmatpush3.bf16.msra.mxu0 %v14200_v45 }
 0x41e   : > { %11504 = vmatprep.subr.bf16.mxu0 %v14214_v25 }
 0x41f   : > { %11263 = vmatpush3.bf16.msra.mxu1 %v12537_v22  ;;  %v12557_v22 = vld [vmem:[#allocation10 + $0xc8] sm:$0xff]  }
 0x420   : > { %11473 = vmatmul.mubr.msk.bf16.gmra.mrb[28].mxu0 %vm748_vm0, %v12995_v8  ;;  %11264 = vmatprep.subr.bf16.mxu1 %v12538_v24 }
 0x421   : > { %11505 = vmatpush3.bf16.msra.mxu0 %v14214_v25  ;;  %11508 = vmatprep.mubr.msk.bf16.mxu0 %vm748_vm0, %v12996_v10 }
 0x422   : > { %11506 = vmatprep.subr.bf16.mxu0 %v14210_v23 }
 0x423   : > { %11265 = vmatpush3.bf16.msra.mxu1 %v12538_v24  ;;  %v13009_v24 = vld [vmem:[#allocation5 + $0x68] sm:$0xff]  }
 0x424   : > { %11266 = vmatprep.subr.bf16.mxu1 %v12539_v26 }
 0x425   : > { %11507 = vmatpush3.bf16.msra.mxu0 %v14210_v23 }
 0x426   : > { %11540 = vmatprep.subr.bf16.mxu0 %v14202_v41 }
 0x427   : > { %11267 = vmatpush3.bf16.msra.mxu1 %v12539_v26  ;;  %v12558_v26 = vld [vmem:[#allocation10 + $0xd0] sm:$0xff]  }
 0x428   : > { %11509 = vmatmul.mubr.msk.bf16.vlgmr.msra.gmra.mrb[32].mxu0 %vm748_vm0, %v12997_v11  ;;  %11276 = vmatprep.subr.bf16.mxu1 %v12540_v27 }
 0x429   : > { %11541 = vmatpush3.bf16.msra.mxu0 %v14202_v41  ;;  %11512 = vmatprep.mubr.msk.bf16.mxu0 %vm748_vm0, %v12998_v12 }
 0x42a   : > { %11542 = vmatprep.subr.bf16.mxu0 %v14200_v45 }
 0x42d   : > { %11543 = vmatpush3.bf16.msra.mxu0 %v14200_v45 }
 0x42e   : > { %11544 = vmatprep.subr.bf16.mxu0 %v14214_v25 }
 0x430   : > { %11513 = vmatmul.mubr.msk.bf16.gmra.mrb[36].mxu0 %vm748_vm0, %v12999_v13 }
 0x431   : > { %11545 = vmatpush3.bf16.msra.mxu0 %v14214_v25  ;;  %11548 = vmatprep.mubr.msk.bf16.mxu0 %vm748_vm0, %v13000_v14 }
 0x432   : > { %11546 = vmatprep.subr.bf16.mxu0 %v14210_v23 }
 0x435   : > { %11547 = vmatpush3.bf16.msra.mxu0 %v14210_v23 }
 0x438   : > { %11549 = vmatmul.mubr.msk.bf16.vlgmr.msra.gmra.mrb[40].mxu0 %vm748_vm0, %v13001_v16 }
 0x439   : > { %11552 = vmatprep.mubr.msk.bf16.mxu0 %vm748_vm0, %v13002_v18 }
 0x440   : > { %11553 = vmatmul.mubr.msk.bf16.gmra.mrb[44].mxu0 %vm748_vm0, %v13003_v19 }
 0x4cb   : > { %v11230_v28 = vpop.f32.mrb[72].mxu1 }
 0x4cc   : > { %v2996_v29 = vpop.f32.mrb[73].mxu1 }
 0x4cd   : > { %v11231_v30 = vpop.f32.mrb[74].mxu1 }
 0x4ce   : > { %v3028_v32 = vpack.c.bf16 %v11231_v30, %v11230_v28  ;;  %v2999_v37 = vpop.f32.mrb[75].mxu1  ;;  %v12561_v28 = vld [vmem:[#allocation10 + $0xe8] sm:$0xff]   ;;  %v12563_v30 = vld [vmem:[#allocation10 + $0xf8] sm:$0xff]  }
 0x4cf   : > { %v3027_v38 = vpack.c.bf16 %v2999_v37, %v2996_v29  ;;  %v12562_v29 = vld [vmem:[#allocation10 + $0xf0] sm:$0xff]   ;;  %v14314_v37 = vpop.f32.mrb[8].mxu0 }
 0x4d3   : > { %v11234_v39 = vpop.f32.mrb[76].mxu1 }
 0x4d4   : > { %v3012_v40 = vpop.f32.mrb[77].mxu1 }
 0x4d5   : > { %v11235_v46 = vpop.f32.mrb[78].mxu1 }
 0x4d6   : > { %v3030_v33 = vpack.c.bf16 %v11235_v46, %v11234_v39  ;;  %v3015_v35 = vpop.f32.mrb[79].mxu1 }
 0x4d7   : > { %v3029_v36 = vpack.c.bf16 %v3015_v35, %v3012_v40 }
 0x4db   : > { %v11246_v42 = vpop.f32.mrb[80].mxu1 }
 0x4dc   : > { %v3081_v43 = vpop.f32.mrb[81].mxu1 }
 0x4dd   : > { %v11247_v44 = vpop.f32.mrb[82].mxu1 }
 0x4de   : > { %v3113_v47 = vpack.c.bf16 %v11247_v44, %v11246_v42  ;;  %v3084_v50 = vpop.f32.mrb[83].mxu1 }
 0x4df   : > { %v3112_v53 = vpack.c.bf16 %v3084_v50, %v3081_v43 }
 0x4e1   : > { %11268 = vmatprep.mubr.bf16.mxu1 %v3112_v53 }
 0x4e2   : > { %11269 = vmatmul.mubr.bf16.vlgmr.msra.gmra.mrb[88].mxu1 %v3113_v47 }
 0x4e3   : > { %11277 = vmatpush3.bf16.msra.mxu1 %v12540_v27  ;;  %v11250_v63 = vpop.f32.mrb[84].mxu1  ;;  %v13011_v27 = vld [vmem:[#allocation5 + $0x78] sm:$0xff]  }
 0x4e4   : > { %v3097_v1 = vpop.f32.mrb[85].mxu1  ;;  %11278 = vmatprep.subr.bf16.mxu1 %v12541_v55 }
 0x4e5   : > { %v11251_v9 = vpop.f32.mrb[86].mxu1 }
 0x4e6   : > { %v3115_v15 = vpack.c.bf16 %v11251_v9, %v11250_v63  ;;  %v3100_v17 = vpop.f32.mrb[87].mxu1 }
 0x4e7   : > { %v3114_v31 = vpack.c.bf16 %v3100_v17, %v3097_v1  ;;  %11279 = vmatpush3.bf16.msra.mxu1 %v12541_v55 }
 0x4e8   : > { %11280 = vmatprep.subr.bf16.mxu1 %v12542_v7 }
 0x4e9   : > { %11272 = vmatprep.mubr.bf16.mxu1 %v3114_v31 }
 0x4ea   : > { %11273 = vmatmul.mubr.bf16.gmra.mrb[92].mxu1 %v3115_v15 }
 0x4eb   : > { %11281 = vmatpush3.bf16.msra.mxu1 %v12542_v7  ;;  %11292 = vmatprep.mubr.bf16.mxu1 %v3027_v38  ;;  %v14316_v38 = vpop.f32.mrb[9].mxu0 }
 0x4ec   : > { %11282 = vmatprep.subr.bf16.mxu1 %v12543_v34  ;;  %v14318_v39 = vpop.f32.mrb[10].mxu0 }
 0x4ed   : > { %v3839_v40 = vpack.c.bf16 %v14318_v39, %v14314_v37  ;;  %v3810_v46 = vpop.f32.mrb[11].mxu0  ;;  %v12576_v37 = vld [vmem:[#allocation10 + $0x160] sm:$0xff]   ;;  %v12577_v39 = vld [vmem:[#allocation10 + $0x168] sm:$0xff]  }
 0x4ee   : > { %v14323_v35 = vpop.f32.mrb[12].mxu0 }
 0x4ef   : > { %11283 = vmatpush3.bf16.msra.mxu1 %v12543_v34 }
 0x4f0   : > { %11284 = vmatprep.subr.bf16.mxu1 %v12544_v48 }
 0x4f3   : > { %11285 = vmatpush3.bf16.msra.mxu1 %v12544_v48 }
 0x4f4   : > { %11286 = vmatprep.subr.bf16.mxu1 %v12545_v54 }
 0x4f7   : > { %11287 = vmatpush3.bf16.msra.mxu1 %v12545_v54 }
 0x4f8   : > { %11288 = vmatprep.subr.bf16.mxu1 %v12546_v56 }
 0x4fb   : > { %11289 = vmatpush3.bf16.msra.mxu1 %v12546_v56 }
 0x4fc   : > { %11290 = vmatprep.subr.bf16.mxu1 %v12547_v49 }
 0x4ff   : > { %11291 = vmatpush3.bf16.msra.mxu1 %v12547_v49 }
 0x500   : > { %11300 = vmatprep.subr.bf16.mxu1 %v14202_v41 }
 0x502   : > { %11293 = vmatmul.mubr.bf16.vlgmr.msra.gmra.mrb[88].mxu1 %v3028_v32  ;;  %v12564_v32 = vld [vmem:[#allocation10 + $0x100] sm:$0xff]  }
 0x503   : > { %11296 = vmatprep.mubr.bf16.mxu1 %v3029_v36  ;;  %11301 = vmatpush3.bf16.msra.mxu1 %v14202_v41  ;;  %v14325_v36 = vpop.f32.mrb[13].mxu0 }
 0x504   : > { %11302 = vmatprep.subr.bf16.mxu1 %v14200_v45  ;;  %v14327_v42 = vpop.f32.mrb[14].mxu0 }
 0x505   : > { %v3841_v43 = vpack.c.bf16 %v14327_v42, %v14323_v35  ;;  %v14331_v44 = vpop.f32.mrb[15].mxu0  ;;  %v12580_v35 = vld [vmem:[#allocation10 + $0x180] sm:$0xff]   ;;  %v12581_v42 = vld [vmem:[#allocation10 + $0x188] sm:$0xff]  }
 0x506   : > { %v3840_v47 = vpack.c.bf16 %v14331_v44, %v14325_v36  ;;  %v14335_v50 = vpop.f32.mrb[16].mxu0  ;;  %v12579_v36 = vld [vmem:[#allocation10 + $0x178] sm:$0xff]  }
 0x507   : > { %11303 = vmatpush3.bf16.msra.mxu1 %v14200_v45  ;;  %v14337_v53 = vpop.f32.mrb[17].mxu0  ;;  %v12583_v44 = vld [vmem:[#allocation10 + $0x198] sm:$0xff]  }
 0x508   : > { %11304 = vmatprep.subr.bf16.mxu1 %v14214_v25  ;;  %v14339_v55 = vpop.f32.mrb[18].mxu0 }
 0x509   : > { %v4046_v63 = vpack.c.bf16 %v14339_v55, %v14335_v50  ;;  %v14343_v1 = vpop.f32.mrb[19].mxu0  ;;  %v12585_v50 = vld [vmem:[#allocation10 + $0x1a8] sm:$0xff]   ;;  %v12587_v55 = vld [vmem:[#allocation10 + $0x1b8] sm:$0xff]  }
 0x50a   : > { %11297 = vmatmul.mubr.bf16.gmra.mrb[92].mxu1 %v3030_v33  ;;  %v3838_v33 = vpack.c.bf16 %v3810_v46, %v14316_v38  ;;  %v4045_v7 = vpack.c.bf16 %v14343_v1, %v14337_v53  ;;  %v14347_v9 = vpop.f32.mrb[20].mxu0  ;;  %v12570_v46 = vld [vmem:[#allocation10 + $0x130] sm:$0xff]   ;;  %v12589_v1 = vld [vmem:[#allocation10 + $0x1c8] sm:$0xff]  }
 0x50b   : > { %11305 = vmatpush3.bf16.msra.mxu1 %v14214_v25  ;;  %11308 = vmatprep.mubr.msk.bf16.mxu1 %vm748_vm0, %v13004_v51  ;;  %v14349_v15 = vpop.f32.mrb[21].mxu0  ;;  %v12586_v53 = vld [vmem:[#allocation10 + $0x1b0] sm:$0xff]  }
 0x50c   : > { %11306 = vmatprep.subr.bf16.mxu1 %v14210_v23  ;;  %v14351_v17 = vpop.f32.mrb[22].mxu0 }
 0x50d   : > { %v4048_v31 = vpack.c.bf16 %v14351_v17, %v14347_v9  ;;  %v14355_v34 = vpop.f32.mrb[23].mxu0  ;;  %v12591_v9 = vld [vmem:[#allocation10 + $0x1d8] sm:$0xff]   ;;  %v12593_v17 = vld [vmem:[#allocation10 + $0x1e8] sm:$0xff]  }
 0x50e   : > { %v4047_v48 = vpack.c.bf16 %v14355_v34, %v14349_v15  ;;  %v14359_v54 = vpop.f32.mrb[24].mxu0  ;;  %v12592_v15 = vld [vmem:[#allocation10 + $0x1e0] sm:$0xff]   ;;  %v12595_v34 = vld [vmem:[#allocation10 + $0x1f8] sm:$0xff]  }
 0x50f   : > { %11307 = vmatpush3.bf16.msra.mxu1 %v14210_v23  ;;  %v14361_v56 = vpop.f32.mrb[25].mxu0 }
 0x510   : > { %11316 = vmatprep.subr.bf16.mxu1 %v12548_v52  ;;  %v14363_v49 = vpop.f32.mrb[26].mxu0 }
 0x511   : > { %v4253_v51 = vpack.c.bf16 %v14363_v49, %v14359_v54  ;;  %v12597_v54 = vld [vmem:[#allocation10 + $0x208] sm:$0xff]   ;;  %v12599_v49 = vld [vmem:[#allocation10 + $0x218] sm:$0xff]  }
 0x512   : > { %11309 = vmatmul.mubr.msk.bf16.vlgmr.msra.gmra.mrb[96].mxu1 %vm748_vm0, %v13005_v61 }
 0x513   : > { %11317 = vmatpush3.bf16.msra.mxu1 %v12548_v52  ;;  %11312 = vmatprep.mubr.msk.bf16.mxu1 %vm748_vm0, %v13006_v57  ;;  %v14367_v52 = vpop.f32.mrb[27].mxu0 }
 0x514   : > { %11318 = vmatprep.subr.bf16.mxu1 %v12549_v58  ;;  %v14371_v61 = vpop.f32.mrb[28].mxu0 }
 0x515   : > { %v14373_v57 = vpop.f32.mrb[29].mxu0 }
 0x517   : > { %11319 = vmatpush3.bf16.msra.mxu1 %v12549_v58  ;;  %v4252_v58 = vpack.c.bf16 %v14367_v52, %v14361_v56  ;;  %v12598_v56 = vld [vmem:[#allocation10 + $0x210] sm:$0xff]   ;;  %v12601_v52 = vld [vmem:[#allocation10 + $0x228] sm:$0xff]  }
 0x518   : > { %11320 = vmatprep.subr.bf16.mxu1 %v12550_v59 }
 0x51a   : > { %11313 = vmatmul.mubr.msk.bf16.gmra.mrb[100].mxu1 %vm748_vm0, %v13007_v62 }
 0x51b   : > { %11321 = vmatpush3.bf16.msra.mxu1 %v12550_v59  ;;  %v14375_v59 = vpop.f32.mrb[30].mxu0 }
 0x51c   : > { %11322 = vmatprep.subr.bf16.mxu1 %v12551_v60  ;;  %v14379_v62 = vpop.f32.mrb[31].mxu0 }
 0x51f   : > { %11323 = vmatpush3.bf16.msra.mxu1 %v12551_v60  ;;  %v4255_v60 = vpack.c.bf16 %v14375_v59, %v14371_v61  ;;  %v12603_v61 = vld [vmem:[#allocation10 + $0x238] sm:$0xff]  }
 0x520   : > { %11324 = vmatprep.subr.bf16.mxu1 %v12552_v0  ;;  %v9893_v59 = vld [vmem:[%s15186_s8] ss:$0 sm:$0xff] }
 0x523   : > { %11325 = vmatpush3.bf16.msra.mxu1 %v12552_v0  ;;  %v4254_v0 = vpack.c.bf16 %v14379_v62, %v14373_v57  ;;  %v13394_v57 = vmov 0.0  }
 0x524   : > { %11326 = vmatprep.subr.bf16.mxu1 %v12553_v2  ;;  %11580 = vmatprep.subr.bf16.mxu0 %v13394_v57 }
 0x525   : > { %11588 = vmatprep.mubr.msk.bf16.mxu0 %vm13395_vm1, %v13394_v57 }
 0x527   : > { %11327 = vmatpush3.bf16.msra.mxu1 %v12553_v2  ;;  %v14383_v2 = vpop.f32.mrb[32].mxu0 }
 0x528   : > { %11328 = vmatprep.subr.bf16.mxu1 %v12554_v3 }
 0x52b   : > { %11329 = vmatpush3.bf16.msra.mxu1 %v12554_v3  ;;  %v14385_v3 = vpop.f32.mrb[33].mxu0 }
 0x52c   : > { %11330 = vmatprep.subr.bf16.mxu1 %v12555_v4 }
 0x52f   : > { %11331 = vmatpush3.bf16.msra.mxu1 %v12555_v4  ;;  %v14387_v4 = vpop.f32.mrb[34].mxu0 }
 0x530   : > { %11340 = vmatprep.subr.bf16.mxu1 %v14202_v41 }
 0x5e5   : > { %v11310_v5 = vpop.f32.mrb[96].mxu1 }
 0x5e6   : > { %v3393_v6 = vpop.f32.mrb[97].mxu1 }
 0x5e7   : > { %v11311_v8 = vpop.f32.mrb[98].mxu1 }
 0x5e8   : > { %v3425_v10 = vpack.c.bf16 %v11311_v8, %v11310_v5  ;;  %v3396_v11 = vpop.f32.mrb[99].mxu1  ;;  %v4460_v5 = vpack.c.bf16 %v14387_v4, %v14383_v2  ;;  %v14391_v8 = vpop.f32.mrb[35].mxu0 }
 0x5e9   : > { %v3424_v12 = vpack.c.bf16 %v3396_v11, %v3393_v6  ;;  %v4459_v11 = vpack.c.bf16 %v14391_v8, %v14385_v3 }
 0x5eb   : > { %11332 = vmatprep.mubr.bf16.mxu1 %v3424_v12 }
 0x5ec   : > { %11333 = vmatmul.mubr.bf16.vlgmr.msra.gmra.mrb[88].mxu1 %v3425_v10 }
 0x5ed   : > { %11341 = vmatpush3.bf16.msra.mxu1 %v14202_v41  ;;  %v11314_v13 = vpop.f32.mrb[100].mxu1  ;;  %v12556_v41 = vld [vmem:[#allocation10 + $0xc0] sm:$0xff]  }
 0x5ee   : > { %11342 = vmatprep.subr.bf16.mxu1 %v14200_v45  ;;  %v3409_v14 = vpop.f32.mrb[101].mxu1 }
 0x5ef   : > { %v11315_v16 = vpop.f32.mrb[102].mxu1 }
 0x5f0   : > { %v3427_v18 = vpack.c.bf16 %v11315_v16, %v11314_v13  ;;  %v3412_v19 = vpop.f32.mrb[103].mxu1 }
 0x5f1   : > { %v3426_v20 = vpack.c.bf16 %v3412_v19, %v3409_v14  ;;  %11343 = vmatpush3.bf16.msra.mxu1 %v14200_v45  ;;  %v13010_v45 = vld [vmem:[#allocation5 + $0x70] sm:$0xff]  }
 0x5f2   : > { %11344 = vmatprep.subr.bf16.mxu1 %v14214_v25 }
 0x5f3   : > { %11336 = vmatprep.mubr.bf16.mxu1 %v3426_v20  ;;  %v12566_v20 = vld [vmem:[#allocation10 + $0x110] sm:$0xff]  }
 0x5f4   : > { %11337 = vmatmul.mubr.bf16.gmra.mrb[92].mxu1 %v3427_v18  ;;  %v12565_v18 = vld [vmem:[#allocation10 + $0x108] sm:$0xff]  }
 0x5f5   : > { %11345 = vmatpush3.bf16.msra.mxu1 %v14214_v25  ;;  %11348 = vmatprep.mubr.msk.bf16.mxu1 %vm748_vm0, %v13008_v21  ;;  %v12559_v25 = vld [vmem:[#allocation10 + $0xd8] sm:$0xff]  }
 0x5f6   : > { %11346 = vmatprep.subr.bf16.mxu1 %v14210_v23 }
 0x5f9   : > { %11347 = vmatpush3.bf16.msra.mxu1 %v14210_v23  ;;  %v12560_v23 = vld [vmem:[#allocation10 + $0xe0] sm:$0xff]  }
 0x5fa   : > { %11356 = vmatprep.subr.bf16.mxu1 %v12556_v41 }
 0x5fc   : > { %11349 = vmatmul.mubr.msk.bf16.vlgmr.msra.gmra.mrb[104].mxu1 %vm748_vm0, %v13009_v24 }
 0x5fd   : > { %11352 = vmatprep.mubr.msk.bf16.mxu1 %vm748_vm0, %v13010_v45  ;;  %11357 = vmatpush3.bf16.msra.mxu1 %v12556_v41 }
 0x5fe   : > { %11358 = vmatprep.subr.bf16.mxu1 %v12557_v22 }
 0x601   : > { %11359 = vmatpush3.bf16.msra.mxu1 %v12557_v22 }
 0x602   : > { %11360 = vmatprep.subr.bf16.mxu1 %v12558_v26 }
 0x604   : > { %11353 = vmatmul.mubr.msk.bf16.gmra.mrb[108].mxu1 %vm748_vm0, %v13011_v27  ;;  %v14395_v27 = vpop.f32.mrb[36].mxu0 }
 0x605   : > { %11361 = vmatpush3.bf16.msra.mxu1 %v12558_v26  ;;  %v12567_v26 = vld [vmem:[#allocation10 + $0x118] sm:$0xff]  }
 0x606   : > { %11362 = vmatprep.subr.bf16.mxu1 %v12559_v25 }
 0x609   : > { %11363 = vmatpush3.bf16.msra.mxu1 %v12559_v25  ;;  %v12568_v25 = vld [vmem:[#allocation10 + $0x120] sm:$0xff]  }
 0x60a   : > { %11364 = vmatprep.subr.bf16.mxu1 %v12560_v23 }
 0x60d   : > { %11365 = vmatpush3.bf16.msra.mxu1 %v12560_v23  ;;  %v14397_v23 = vpop.f32.mrb[37].mxu0 }
 0x60e   : > { %11366 = vmatprep.subr.bf16.mxu1 %v12561_v28 }
 0x611   : > { %11367 = vmatpush3.bf16.msra.mxu1 %v12561_v28  ;;  %v12569_v28 = vld [vmem:[#allocation10 + $0x128] sm:$0xff]  }
 0x612   : > { %11368 = vmatprep.subr.bf16.mxu1 %v12562_v29 }
 0x615   : > { %11369 = vmatpush3.bf16.msra.mxu1 %v12562_v29  ;;  %v14399_v29 = vpop.f32.mrb[38].mxu0 }
 0x616   : > { %11370 = vmatprep.subr.bf16.mxu1 %v12563_v30 }
 0x619   : > { %11371 = vmatpush3.bf16.msra.mxu1 %v12563_v30  ;;  %v4462_v30 = vpack.c.bf16 %v14399_v29, %v14395_v27 }
 0x61a   : > { %11396 = vmatprep.subr.bf16.mxu1 %v12564_v32 }
 0x6cf   : > { %v11350_v6 = vpop.f32.mrb[104].mxu1 }
 0x6d0   : > { %v3600_v10 = vpop.f32.mrb[105].mxu1 }
 0x6d1   : > { %v11351_v12 = vpop.f32.mrb[106].mxu1 }
 0x6d2   : > { %v3632_v13 = vpack.c.bf16 %v11351_v12, %v11350_v6  ;;  %v3603_v14 = vpop.f32.mrb[107].mxu1  ;;  %v12571_v6 = vld [vmem:[#allocation10 + $0x138] sm:$0xff]  }
 0x6d3   : > { %v3631_v16 = vpack.c.bf16 %v3603_v14, %v3600_v10 }
 0x6d5   : > { %11372 = vmatprep.mubr.bf16.mxu1 %v3631_v16 }
 0x6d6   : > { %11373 = vmatmul.mubr.bf16.vlgmr.msra.gmra.mrb[88].mxu1 %v3632_v13 }
 0x6d7   : > { %11397 = vmatpush3.bf16.msra.mxu1 %v12564_v32  ;;  %v11354_v19 = vpop.f32.mrb[108].mxu1  ;;  %v14403_v32 = vpop.f32.mrb[39].mxu0 }
 0x6d8   : > { %11398 = vmatprep.subr.bf16.mxu1 %v12565_v18  ;;  %v3616_v21 = vpop.f32.mrb[109].mxu1  ;;  %v4461_v38 = vpack.c.bf16 %v14403_v32, %v14397_v23 }
 0x6d9   : > { %v11355_v41 = vpop.f32.mrb[110].mxu1 }
 0x6da   : > { %v3634_v22 = vpack.c.bf16 %v11355_v41, %v11354_v19  ;;  %v3619_v24 = vpop.f32.mrb[111].mxu1 }
 0x6db   : > { %11399 = vmatpush3.bf16.msra.mxu1 %v12565_v18  ;;  %v3633_v45 = vpack.c.bf16 %v3619_v24, %v3616_v21  ;;  %v12572_v18 = vld [vmem:[#allocation10 + $0x140] sm:$0xff]  }
 0x6dc   : > { %11400 = vmatprep.subr.bf16.mxu1 %v12566_v20 }
 0x6dd   : > { %11376 = vmatprep.mubr.bf16.mxu1 %v3633_v45 }
 0x6de   : > { %11377 = vmatmul.mubr.bf16.gmra.mrb[92].mxu1 %v3634_v22 }
 0x6df   : > { %11401 = vmatpush3.bf16.msra.mxu1 %v12566_v20  ;;  %11412 = vmatprep.mubr.bf16.mxu1 %v3838_v33  ;;  %v14407_v33 = vpop.f32.mrb[40].mxu0  ;;  %v12573_v20 = vld [vmem:[#allocation10 + $0x148] sm:$0xff]  }
 0x6e0   : > { %11402 = vmatprep.subr.bf16.mxu1 %v12567_v26  ;;  %v14409_v10 = vpop.f32.mrb[41].mxu0 }
 0x6e1   : > { %v14411_v12 = vpop.f32.mrb[42].mxu0 }
 0x6e2   : > { %v4667_v13 = vpack.c.bf16 %v14411_v12, %v14407_v33  ;;  %v14415_v14 = vpop.f32.mrb[43].mxu0 }
 0x6e3   : > { %11403 = vmatpush3.bf16.msra.mxu1 %v12567_v26  ;;  %v4666_v16 = vpack.c.bf16 %v14415_v14, %v14409_v10  ;;  %v14419_v19 = vpop.f32.mrb[44].mxu0  ;;  %v12574_v26 = vld [vmem:[#allocation10 + $0x150] sm:$0xff]  }
 0x6e4   : > { %11404 = vmatprep.subr.bf16.mxu1 %v12568_v25  ;;  %v14421_v21 = vpop.f32.mrb[45].mxu0 }
 0x6e5   : > { %v14423_v41 = vpop.f32.mrb[46].mxu0 }
 0x6e6   : > { %v4669_v22 = vpack.c.bf16 %v14423_v41, %v14419_v19  ;;  %v14430_v24 = vpop.f32.mrb[47].mxu0  ;;  %v12604_v41 = vld [vmem:[%s15187_s18] sm:$0xff]  }
 0x6e7   : > { %11405 = vmatpush3.bf16.msra.mxu1 %v12568_v25  ;;  %v4668_v45 = vpack.c.bf16 %v14430_v24, %v14421_v21  ;;  %v12575_v25 = vld [vmem:[#allocation10 + $0x158] sm:$0xff]   ;;  %v12606_v24 = vld [vmem:[#allocation11 + $0x40] sm:$0xff]  }
 0x6e8   : > { %11406 = vmatprep.subr.bf16.mxu1 %v12569_v28 }
 0x6eb   : > { %11407 = vmatpush3.bf16.msra.mxu1 %v12569_v28 }
 0x6ec   : > { %11408 = vmatprep.subr.bf16.mxu1 %v12570_v46 }
 0x6ef   : > { %11409 = vmatpush3.bf16.msra.mxu1 %v12570_v46 }
 0x6f0   : > { %11410 = vmatprep.subr.bf16.mxu1 %v12571_v6 }
 0x6f3   : > { %11411 = vmatpush3.bf16.msra.mxu1 %v12571_v6 }
 0x6f4   : > { %11436 = vmatprep.subr.bf16.mxu1 %v12572_v18 }
 0x6f6   : > { %11413 = vmatmul.mubr.bf16.vlgmr.msra.gmra.mrb[88].mxu1 %v3839_v40  ;;  %v12578_v40 = vld [vmem:[#allocation10 + $0x170] sm:$0xff]  }
 0x6f7   : > { %11437 = vmatpush3.bf16.msra.mxu1 %v12572_v18  ;;  %11416 = vmatprep.mubr.bf16.mxu1 %v3840_v47  ;;  %v12584_v47 = vld [vmem:[#allocation10 + $0x1a0] sm:$0xff]  }
 0x6f8   : > { %11438 = vmatprep.subr.bf16.mxu1 %v12573_v20 }
 0x6fb   : > { %11439 = vmatpush3.bf16.msra.mxu1 %v12573_v20 }
 0x6fc   : > { %11440 = vmatprep.subr.bf16.mxu1 %v12574_v26 }
 0x6fe   : > { %11417 = vmatmul.mubr.bf16.gmra.mrb[92].mxu1 %v3841_v43  ;;  %v12582_v43 = vld [vmem:[#allocation10 + $0x190] sm:$0xff]  }
 0x6ff   : > { %11441 = vmatpush3.bf16.msra.mxu1 %v12574_v26  ;;  %11452 = vmatprep.mubr.bf16.mxu1 %v4045_v7  ;;  %v12590_v7 = vld [vmem:[#allocation10 + $0x1d0] sm:$0xff]  }
 0x700   : > { %11442 = vmatprep.subr.bf16.mxu1 %v12575_v25  ;;  %v12608_v26 = vld [vmem:[#allocation11 + $0x50] sm:$0xff]  }
 0x703   : > { %11443 = vmatpush3.bf16.msra.mxu1 %v12575_v25  ;;  %v12609_v25 = vld [vmem:[#allocation11 + $0x58] sm:$0xff]  }
 0x704   : > { %11444 = vmatprep.subr.bf16.mxu1 %v12576_v37 }
 0x707   : > { %11445 = vmatpush3.bf16.msra.mxu1 %v12576_v37  ;;  %v12610_v37 = vld [vmem:[#allocation11 + $0x60] sm:$0xff]  }
 0x708   : > { %11446 = vmatprep.subr.bf16.mxu1 %v12577_v39 }
 0x70b   : > { %11447 = vmatpush3.bf16.msra.mxu1 %v12577_v39  ;;  %v12611_v39 = vld [vmem:[#allocation11 + $0x68] sm:$0xff]  }
 0x70c   : > { %11448 = vmatprep.subr.bf16.mxu1 %v12578_v40 }
 0x70f   : > { %11449 = vmatpush3.bf16.msra.mxu1 %v12578_v40  ;;  %v12612_v40 = vld [vmem:[#allocation11 + $0x70] sm:$0xff]  }
 0x710   : > { %11450 = vmatprep.subr.bf16.mxu1 %v12579_v36 }
 0x713   : > { %11451 = vmatpush3.bf16.msra.mxu1 %v12579_v36  ;;  %v12613_v36 = vld [vmem:[#allocation11 + $0x78] sm:$0xff]  }
 0x714   : > { %11476 = vmatprep.subr.bf16.mxu1 %v12580_v35 }
 0x716   : > { %11453 = vmatmul.mubr.bf16.vlgmr.msra.gmra.mrb[88].mxu1 %v4046_v63  ;;  %v12588_v63 = vld [vmem:[#allocation10 + $0x1c0] sm:$0xff]  }
 0x717   : > { %11477 = vmatpush3.bf16.msra.mxu1 %v12580_v35  ;;  %11456 = vmatprep.mubr.bf16.mxu1 %v4047_v48  ;;  %v12596_v48 = vld [vmem:[#allocation10 + $0x200] sm:$0xff]  }
 0x718   : > { %11478 = vmatprep.subr.bf16.mxu1 %v12581_v42 }
 0x71b   : > { %11479 = vmatpush3.bf16.msra.mxu1 %v12581_v42 }
 0x71c   : > { %11480 = vmatprep.subr.bf16.mxu1 %v12582_v43 }
 0x71e   : > { %11457 = vmatmul.mubr.bf16.gmra.mrb[92].mxu1 %v4048_v31  ;;  %v12594_v31 = vld [vmem:[#allocation10 + $0x1f0] sm:$0xff]  }
 0x71f   : > { %11481 = vmatpush3.bf16.msra.mxu1 %v12582_v43  ;;  %11492 = vmatprep.mubr.bf16.mxu1 %v4252_v58  ;;  %v12602_v58 = vld [vmem:[#allocation10 + $0x230] sm:$0xff]  }
 0x720   : > { %11482 = vmatprep.subr.bf16.mxu1 %v12583_v44 }
 0x723   : > { %11483 = vmatpush3.bf16.msra.mxu1 %v12583_v44 }
 0x724   : > { %11484 = vmatprep.subr.bf16.mxu1 %v12584_v47 }
 0x727   : > { %11485 = vmatpush3.bf16.msra.mxu1 %v12584_v47 }
 0x728   : > { %11486 = vmatprep.subr.bf16.mxu1 %v12585_v50 }
 0x72b   : > { %11487 = vmatpush3.bf16.msra.mxu1 %v12585_v50 }
 0x72c   : > { %11488 = vmatprep.subr.bf16.mxu1 %v12586_v53 }
 0x72f   : > { %11489 = vmatpush3.bf16.msra.mxu1 %v12586_v53 }
 0x730   : > { %11490 = vmatprep.subr.bf16.mxu1 %v12587_v55 }
 0x733   : > { %11491 = vmatpush3.bf16.msra.mxu1 %v12587_v55 }
 0x734   : > { %11516 = vmatprep.subr.bf16.mxu1 %v12588_v63 }
 0x736   : > { %11493 = vmatmul.mubr.bf16.vlgmr.msra.gmra.mrb[88].mxu1 %v4253_v51  ;;  %v12600_v51 = vld [vmem:[#allocation10 + $0x220] sm:$0xff]  }
 0x737   : > { %11517 = vmatpush3.bf16.msra.mxu1 %v12588_v63  ;;  %11496 = vmatprep.mubr.bf16.mxu1 %v4254_v0  ;;  %v12614_v63 = vld [vmem:[#allocation11] sm:$0xff]  }
 0x738   : > { %11518 = vmatprep.subr.bf16.mxu1 %v12589_v1 }
 0x73b   : > { %11519 = vmatpush3.bf16.msra.mxu1 %v12589_v1 }
 0x73c   : > { %11520 = vmatprep.subr.bf16.mxu1 %v12590_v7 }
 0x73e   : > { %11497 = vmatmul.mubr.bf16.gmra.mrb[92].mxu1 %v4255_v60 }
 0x73f   : > { %11521 = vmatpush3.bf16.msra.mxu1 %v12590_v7  ;;  %11532 = vmatprep.mubr.bf16.mxu1 %v4459_v11 }
 0x740   : > { %11522 = vmatprep.subr.bf16.mxu1 %v12591_v9 }
 0x743   : > { %11523 = vmatpush3.bf16.msra.mxu1 %v12591_v9  ;;  %v12615_v9 = vld [vmem:[#allocation11 + $0x8] sm:$0xff]  }
 0x744   : > { %11524 = vmatprep.subr.bf16.mxu1 %v12592_v15 }
 0x747   : > { %11525 = vmatpush3.bf16.msra.mxu1 %v12592_v15  ;;  %v12616_v15 = vld [vmem:[#allocation11 + $0x10] sm:$0xff]  }
 0x748   : > { %11526 = vmatprep.subr.bf16.mxu1 %v12593_v17 }
 0x74b   : > { %11527 = vmatpush3.bf16.msra.mxu1 %v12593_v17  ;;  %v12617_v17 = vld [vmem:[#allocation11 + $0x18] sm:$0xff]  }
 0x74c   : > { %11528 = vmatprep.subr.bf16.mxu1 %v12594_v31 }
 0x74f   : > { %11529 = vmatpush3.bf16.msra.mxu1 %v12594_v31  ;;  %v12618_v31 = vld [vmem:[#allocation11 + $0x20] sm:$0xff]  }
 0x750   : > { %11530 = vmatprep.subr.bf16.mxu1 %v12595_v34 }
 0x753   : > { %11531 = vmatpush3.bf16.msra.mxu1 %v12595_v34  ;;  %v12619_v34 = vld [vmem:[#allocation11 + $0x28] sm:$0xff]  }
 0x754   : > { %11556 = vmatprep.subr.bf16.mxu1 %v12596_v48 }
 0x756   : > { %11533 = vmatmul.mubr.bf16.vlgmr.msra.gmra.mrb[88].mxu1 %v4460_v5 }
 0x757   : > { %11557 = vmatpush3.bf16.msra.mxu1 %v12596_v48  ;;  %11536 = vmatprep.mubr.bf16.mxu1 %v4461_v38  ;;  %v12620_v48 = vld [vmem:[#allocation11 + $0x30] sm:$0xff]  }
 0x758   : > { %11558 = vmatprep.subr.bf16.mxu1 %v12597_v54 }
 0x75b   : > { %11559 = vmatpush3.bf16.msra.mxu1 %v12597_v54  ;;  %v12621_v54 = vld [vmem:[#allocation11 + $0x38] sm:$0xff]  }
 0x75c   : > { %11560 = vmatprep.subr.bf16.mxu1 %v12598_v56 }
 0x75e   : > { %11537 = vmatmul.mubr.bf16.gmra.mrb[92].mxu1 %v4462_v30 }
 0x75f   : > { %11561 = vmatpush3.bf16.msra.mxu1 %v12598_v56  ;;  %11572 = vmatprep.mubr.bf16.mxu1 %v4666_v16  ;;  %v12622_v56 = vld [vmem:[%s15187_s18 + $0x10] sm:$0xff]  }
 0x760   : > { %11562 = vmatprep.subr.bf16.mxu1 %v12599_v49 }
 0x763   : > { %11563 = vmatpush3.bf16.msra.mxu1 %v12599_v49  ;;  %v12623_v49 = vld [vmem:[%s15187_s18 + $0x18] sm:$0xff]  }
 0x764   : > { %11564 = vmatprep.subr.bf16.mxu1 %v12600_v51 }
 0x767   : > { %11565 = vmatpush3.bf16.msra.mxu1 %v12600_v51  ;;  %v12624_v51 = vld [vmem:[#allocation11 + $0x80] sm:$0xff]  }
 0x768   : > { %11566 = vmatprep.subr.bf16.mxu1 %v12601_v52 }
 0x76b   : > { %11567 = vmatpush3.bf16.msra.mxu1 %v12601_v52  ;;  %v12625_v52 = vld [vmem:[#allocation11 + $0x88] sm:$0xff]  }
 0x76c   : > { %11568 = vmatprep.subr.bf16.mxu1 %v12602_v58 }
 0x76f   : > { %11569 = vmatpush3.bf16.msra.mxu1 %v12602_v58  ;;  %v12626_v58 = vld [vmem:[#allocation11 + $0x90] sm:$0xff]  }
 0x770   : > { %11570 = vmatprep.subr.bf16.mxu1 %v12603_v61 }
 0x773   : > { %11571 = vmatpush3.bf16.msra.mxu1 %v12603_v61  ;;  %v12627_v61 = vld [vmem:[#allocation11 + $0x98] sm:$0xff]  }
 0x774   : > { %11656 = vmatprep.subr.bf16.mxu1 %v13394_v57 }
 0x776   : > { %11573 = vmatmul.mubr.bf16.vlgmr.msra.gmra.mrb[88].mxu1 %v4667_v13 }
 0x777   : > { %11576 = vmatprep.mubr.bf16.mxu1 %v4668_v45  ;;  %v12607_v45 = vld [vmem:[#allocation11 + $0x48] sm:$0xff]   ;;  %11657 = vmatpush3.bf16.msra.mxu1 %v12624_v51 }
 0x778   : > { %11658 = vmatprep.subr.bf16.mxu1 %v13394_v57 }
 0x77b   : > { %11659 = vmatpush3.bf16.msra.mxu1 %v12625_v52 }
 0x77c   : > { %11660 = vmatprep.subr.bf16.mxu1 %v13394_v57 }
 0x77e   : > { %11577 = vmatmul.mubr.bf16.gmra.mrb[92].mxu1 %v4669_v22  ;;  %v12605_v22 = vld [vmem:[%s15187_s18 + $0x8] sm:$0xff]  }
 0x77f   : > { %11672 = vmatprep.mubr.msk.bf16.mxu1 %vm13395_vm1, %v13394_v57  ;;  %11661 = vmatpush3.bf16.msra.mxu1 %v12626_v58 }
 0x780   : > { %11662 = vmatprep.subr.bf16.mxu1 %v13394_v57 }
 0x783   : > { %11663 = vmatpush3.bf16.msra.mxu1 %v12627_v61 }
 0x784   : > { %11664 = vmatprep.subr.bf16.mxu1 %v13394_v57 }
 0x849   : > { %v11574_v60 = vpop.f32.mrb[88].mxu1 }
 0x84a   : > { %v4817_v62 = vadd.f32 %v11574_v60, %v9893_v59  ;;  %v4769_v0 = vpop.f32.mrb[89].mxu1  ;;  %v12629_v60 = vld [vmem:[#allocation11 + $0xc0] sm:$0xff]  }
 0x84b   : > { %v4815_v2 = vadd.f32 %v9893_v59, %v4769_v0  ;;  %v11575_v3 = vpop.f32.mrb[90].mxu1  ;;  %v12631_v0 = vld [vmem:[#allocation11 + $0xc8] sm:$0xff]  }
 0x84c   : > { %v4818_v4 = vadd.f32 %v11575_v3, %v9893_v59  ;;  %v4772_v5 = vpop.f32.mrb[91].mxu1  ;;  %v4825_v11 = vmax.f32 %v4817_v62, 0.0  ;;  %v12630_v62 = vld [vmem:[#allocation11 + $0xa8] sm:$0xff]   ;;  %v12633_v3 = vld [vmem:[#allocation11 + $0xd0] sm:$0xff]  }
 0x84d   : > { %v4816_v8 = vadd.f32 %v9893_v59, %v4772_v5  ;;  %v4823_v23 = vmax.f32 %v4815_v2, 0.0  ;;  %v12632_v2 = vld [vmem:[#allocation11 + $0xb0] sm:$0xff]   ;;  %v12635_v5 = vld [vmem:[#allocation11 + $0xd8] sm:$0xff]  }
 0x84e   : > { %v4826_v27 = vmax.f32 %v4818_v4, 0.0  ;;  %v12634_v4 = vld [vmem:[#allocation11 + $0xb8] sm:$0xff]  }
 0x84f   : > { %v4824_v28 = vmax.f32 %v4816_v8, 0.0  ;;  %v12636_v8 = vld [vmem:[#allocation11 + $0xe0] sm:$0xff]  }
 0x850   : > { %v14497_v29 = vpack.c.bf16 %v4826_v27, %v4825_v11  ;;  %v12637_v11 = vld [vmem:[#allocation11 + $0xe8] sm:$0xff]   ;;  %v12638_v27 = vld [vmem:[#allocation11 + $0xf0] sm:$0xff]  }
 0x851   : > { %v14499_v30 = vpack.c.bf16 %v4824_v28, %v4823_v23  ;;  %v11578_v32 = vpop.f32.mrb[92].mxu1  ;;  %v12639_v23 = vld [vmem:[#allocation11 + $0xf8] sm:$0xff]  }
 0x852   : > { %v4821_v38 = vadd.f32 %v11578_v32, %v9893_v59  ;;  %v4785_v46 = vpop.f32.mrb[93].mxu1 }
 0x853   : > { %v4819_v33 = vadd.f32 %v9893_v59, %v4785_v46  ;;  %v11579_v6 = vpop.f32.mrb[94].mxu1  ;;  %11581 = vmatpush3.bf16.msra.mxu0 %v14499_v30 }
 0x854   : > { %v4822_v10 = vadd.f32 %v11579_v6, %v9893_v59  ;;  %v4788_v12 = vpop.f32.mrb[95].mxu1  ;;  %11582 = vmatprep.subr.bf16.mxu0 %v13394_v57  ;;  %v4829_v14 = vmax.f32 %v4821_v38, 0.0 }
 0x855   : > { %v4820_v13 = vadd.f32 %v9893_v59, %v4788_v12  ;;  %v4827_v18 = vmax.f32 %v4819_v33, 0.0  ;;  %v12628_v59 = vld [vmem:[#allocation11 + $0xa0] sm:$0xff]  }
 0x856   : > { %v4830_v16 = vmax.f32 %v4822_v10, 0.0  ;;  %11665 = vmatpush3.bf16.msra.mxu1 %v12628_v59 }
 0x857   : > { %v4828_v19 = vmax.f32 %v4820_v13, 0.0  ;;  %11583 = vmatpush3.bf16.msra.mxu0 %v14497_v29  ;;  %11666 = vmatprep.subr.bf16.mxu1 %v13394_v57 }
 0x858   : > { %v14504_v20 = vpack.c.bf16 %v4830_v16, %v4829_v14  ;;  %11584 = vmatprep.subr.bf16.mxu0 %v13394_v57 }
 0x859   : > { %v14507_v21 = vpack.c.bf16 %v4828_v19, %v4827_v18 }
 0x85a   : > { %11667 = vmatpush3.bf16.msra.mxu1 %v12630_v62 }
 0x85b   : > { %11585 = vmatpush3.bf16.msra.mxu0 %v14507_v21  ;;  %11668 = vmatprep.subr.bf16.mxu1 %v13394_v57 }
 0x85c   : > { %11586 = vmatprep.subr.bf16.mxu0 %v13394_v57 }
 0x85e   : > { %11669 = vmatpush3.bf16.msra.mxu1 %v12632_v2 }
 0x85f   : > { %11587 = vmatpush3.bf16.msra.mxu0 %v14504_v20  ;;  %11670 = vmatprep.subr.bf16.mxu1 %v13394_v57 }
 0x860   : > { %11592 = vmatprep.subr.bf16.mxu0 %v13394_v57 }
 0x862   : > { %11589 = vmatmul.mubr.msk.bf16.vlgmr.msra.gmra.mrb[48].mxu0 %vm748_vm0, %v12604_v41  ;;  %11671 = vmatpush3.bf16.msra.mxu1 %v12634_v4 }
 0x863   : > { %11593 = vmatpush3.bf16.msra.mxu0 %v14499_v30  ;;  %11600 = vmatprep.mubr.msk.bf16.mxu0 %vm13395_vm1, %v13394_v57 }
 0x864   : > { %11594 = vmatprep.subr.bf16.mxu0 %v13394_v57  ;;  %11708 = vmatprep.subr.bf16.mxu1 %v13394_v57 }
 0x867   : > { %11595 = vmatpush3.bf16.msra.mxu0 %v14497_v29 }
 0x868   : > { %11596 = vmatprep.subr.bf16.mxu0 %v13394_v57 }
 0x86b   : > { %11597 = vmatpush3.bf16.msra.mxu0 %v14507_v21 }
 0x86c   : > { %11598 = vmatprep.subr.bf16.mxu0 %v13394_v57 }
 0x86f   : > { %11599 = vmatpush3.bf16.msra.mxu0 %v14504_v20 }
 0x870   : > { %11604 = vmatprep.subr.bf16.mxu0 %v13394_v57 }
 0x872   : > { %11601 = vmatmul.mubr.msk.bf16.vlgmr.msra.gmra.mrb[52].mxu0 %vm748_vm0, %v12605_v22 }
 0x873   : > { %11605 = vmatpush3.bf16.msra.mxu0 %v12606_v24  ;;  %11620 = vmatprep.mubr.msk.bf16.mxu0 %vm13395_vm1, %v13394_v57 }
 0x874   : > { %11606 = vmatprep.subr.bf16.mxu0 %v13394_v57 }
 0x877   : > { %11607 = vmatpush3.bf16.msra.mxu0 %v12607_v45 }
 0x878   : > { %11608 = vmatprep.subr.bf16.mxu0 %v13394_v57 }
 0x87b   : > { %11609 = vmatpush3.bf16.msra.mxu0 %v12608_v26  ;;  %v12640_v26 = vld [vmem:[%s15187_s18 + $0x20] sm:$0xff]  }
 0x87c   : > { %11610 = vmatprep.subr.bf16.mxu0 %v13394_v57 }
 0x87f   : > { %11611 = vmatpush3.bf16.msra.mxu0 %v12609_v25 }
 0x880   : > { %11612 = vmatprep.subr.bf16.mxu0 %v13394_v57 }
 0x883   : > { %11613 = vmatpush3.bf16.msra.mxu0 %v12610_v37 }
 0x884   : > { %11614 = vmatprep.subr.bf16.mxu0 %v13394_v57 }
 0x887   : > { %11615 = vmatpush3.bf16.msra.mxu0 %v12611_v39  ;;  %v12642_v39 = vld [vmem:[#allocation11 + $0x100] sm:$0xff]  }
 0x888   : > { %11616 = vmatprep.subr.bf16.mxu0 %v13394_v57 }
 0x88b   : > { %11617 = vmatpush3.bf16.msra.mxu0 %v12612_v40 }
 0x88c   : > { %11618 = vmatprep.subr.bf16.mxu0 %v13394_v57 }
 0x88f   : > { %11619 = vmatpush3.bf16.msra.mxu0 %v12613_v36  ;;  %v12643_v36 = vld [vmem:[#allocation11 + $0x108] sm:$0xff]  }
 0x890   : > { %11624 = vmatprep.subr.bf16.mxu0 %v13394_v57 }
 0x935   : > { %v4879_v35 = vpop.f32.mrb[48].mxu0 }
 0x936   : > { %v11590_v42 = vpop.f32.mrb[49].mxu0 }
 0x937   : > { %v4882_v43 = vpop.f32.mrb[50].mxu0  ;;  %v12641_v42 = vld [vmem:[%s15187_s18 + $0x28] sm:$0xff]  }
 0x938   : > { %v4886_v44 = vpack.c.bf16 %v4882_v43, %v4879_v35  ;;  %v11591_v47 = vpop.f32.mrb[51].mxu0  ;;  %v12644_v35 = vld [vmem:[#allocation11 + $0x110] sm:$0xff]   ;;  %v12645_v43 = vld [vmem:[#allocation11 + $0x118] sm:$0xff]  }
 0x939   : > { %v12647_v47 = vld [vmem:[#allocation11 + $0x140] sm:$0xff]  }
 0x945   : > { %v4948_v50 = vpop.f32.mrb[52].mxu0 }
 0x946   : > { %v11602_v53 = vpop.f32.mrb[53].mxu0 }
 0x947   : > { %v4951_v55 = vpop.f32.mrb[54].mxu0  ;;  %v12649_v53 = vld [vmem:[#allocation11 + $0x148] sm:$0xff]  }
 0x948   : > { %v4955_v1 = vpack.c.bf16 %v4951_v55, %v4948_v50  ;;  %v11603_v7 = vpop.f32.mrb[55].mxu0  ;;  %v12648_v50 = vld [vmem:[#allocation11 + $0x128] sm:$0xff]   ;;  %v12650_v55 = vld [vmem:[#allocation11 + $0x130] sm:$0xff]  }
 0x949   : > { %v12653_v7 = vld [vmem:[#allocation11 + $0x158] sm:$0xff]  }
 0x94a   : > { %11621 = vmatmul.mubr.bf16.vlgmr.msra.gmra.mrb[56].mxu0 %v4955_v1  ;;  %v12652_v1 = vld [vmem:[#allocation11 + $0x138] sm:$0xff]  }
 0x94b   : > { %11625 = vmatpush3.bf16.msra.mxu0 %v12614_v63  ;;  %11640 = vmatprep.mubr.msk.bf16.mxu0 %vm13395_vm1, %v13394_v57  ;;  %v12651_v63 = vld [vmem:[#allocation11 + $0x150] sm:$0xff]  }
 0x94c   : > { %11626 = vmatprep.subr.bf16.mxu0 %v13394_v57 }
 0x94f   : > { %11627 = vmatpush3.bf16.msra.mxu0 %v12615_v9  ;;  %v12654_v9 = vld [vmem:[#allocation11 + $0x160] sm:$0xff]  }
 0x950   : > { %11628 = vmatprep.subr.bf16.mxu0 %v13394_v57 }
 0x953   : > { %11629 = vmatpush3.bf16.msra.mxu0 %v12616_v15  ;;  %v12655_v15 = vld [vmem:[#allocation11 + $0x168] sm:$0xff]  }
 0x954   : > { %11630 = vmatprep.subr.bf16.mxu0 %v13394_v57 }
 0x957   : > { %11631 = vmatpush3.bf16.msra.mxu0 %v12617_v17  ;;  %v12656_v17 = vld [vmem:[#allocation11 + $0x170] sm:$0xff]  }
 0x958   : > { %11632 = vmatprep.subr.bf16.mxu0 %v13394_v57 }
 0x95b   : > { %11633 = vmatpush3.bf16.msra.mxu0 %v12618_v31  ;;  %v12657_v31 = vld [vmem:[#allocation11 + $0x178] sm:$0xff]  }
 0x95c   : > { %11634 = vmatprep.subr.bf16.mxu0 %v13394_v57 }
 0x95f   : > { %11635 = vmatpush3.bf16.msra.mxu0 %v12619_v34 }
 0x960   : > { %11636 = vmatprep.subr.bf16.mxu0 %v13394_v57 }
 0x963   : > { %11637 = vmatpush3.bf16.msra.mxu0 %v12620_v48 }
 0x964   : > { %11638 = vmatprep.subr.bf16.mxu0 %v13394_v57 }
 0x967   : > { %11639 = vmatpush3.bf16.msra.mxu0 %v12621_v54 }
 0x968   : > { %11644 = vmatprep.subr.bf16.mxu0 %v13394_v57 }
 0x96a   : > { %11641 = vmatmul.mubr.bf16.vlgmr.msra.gmra.mrb[60].mxu0 %v4886_v44  ;;  %v12646_v44 = vld [vmem:[#allocation11 + $0x120] sm:$0xff]  }
 0x96b   : > { %11645 = vmatpush3.bf16.msra.mxu0 %v14499_v30  ;;  %11652 = vmatprep.mubr.msk.bf16.mxu0 %vm13395_vm1, %v13394_v57 }
 0x96c   : > { %11646 = vmatprep.subr.bf16.mxu0 %v13394_v57 }
 0x96f   : > { %11647 = vmatpush3.bf16.msra.mxu0 %v14497_v29 }
 0x970   : > { %11648 = vmatprep.subr.bf16.mxu0 %v13394_v57 }
 0x973   : > { %11649 = vmatpush3.bf16.msra.mxu0 %v14507_v21 }
 0x974   : > { %11650 = vmatprep.subr.bf16.mxu0 %v13394_v57 }
 0x977   : > { %11651 = vmatpush3.bf16.msra.mxu0 %v14504_v20 }
 0x978   : > { %11676 = vmatprep.subr.bf16.mxu0 %v13394_v57 }
 0x97a   : > { %11653 = vmatmul.mubr.msk.bf16.vlgmr.msra.gmra.mrb[64].mxu0 %vm748_vm0, %v12622_v56 }
 0x97b   : > { %11677 = vmatpush3.bf16.msra.mxu0 %v14499_v30  ;;  %11684 = vmatprep.mubr.msk.bf16.mxu0 %vm13395_vm1, %v13394_v57 }
 0x97c   : > { %11678 = vmatprep.subr.bf16.mxu0 %v13394_v57 }
 0x97f   : > { %11679 = vmatpush3.bf16.msra.mxu0 %v14497_v29 }
 0x980   : > { %11680 = vmatprep.subr.bf16.mxu0 %v13394_v57 }
 0x983   : > { %11681 = vmatpush3.bf16.msra.mxu0 %v14507_v21 }
 0x984   : > { %11682 = vmatprep.subr.bf16.mxu0 %v13394_v57 }
 0x987   : > { %11683 = vmatpush3.bf16.msra.mxu0 %v14504_v20 }
 0x988   : > { %11688 = vmatprep.subr.bf16.mxu0 %v13394_v57 }
 0x98a   : > { %11685 = vmatmul.mubr.msk.bf16.vlgmr.msra.gmra.mrb[68].mxu0 %vm748_vm0, %v12623_v49 }
 0x98b   : > { %11704 = vmatprep.mubr.msk.bf16.mxu0 %vm13395_vm1, %v13394_v57  ;;  %11689 = vmatpush3.bf16.msra.mxu0 %v12629_v60 }
 0x98c   : > { %11690 = vmatprep.subr.bf16.mxu0 %v13394_v57 }
 0x98f   : > { %11691 = vmatpush3.bf16.msra.mxu0 %v12631_v0 }
 0x990   : > { %11692 = vmatprep.subr.bf16.mxu0 %v13394_v57 }
 0x993   : > { %11693 = vmatpush3.bf16.msra.mxu0 %v12633_v3 }
 0x994   : > { %11694 = vmatprep.subr.bf16.mxu0 %v13394_v57 }
 0x997   : > { %11695 = vmatpush3.bf16.msra.mxu0 %v12635_v5 }
 0x998   : > { %11696 = vmatprep.subr.bf16.mxu0 %v13394_v57 }
 0x99b   : > { %11697 = vmatpush3.bf16.msra.mxu0 %v12636_v8 }
 0x99c   : > { %11698 = vmatprep.subr.bf16.mxu0 %v13394_v57 }
 0x99f   : > { %11699 = vmatpush3.bf16.msra.mxu0 %v12637_v11 }
 0x9a0   : > { %11700 = vmatprep.subr.bf16.mxu0 %v13394_v57 }
 0x9a3   : > { %11701 = vmatpush3.bf16.msra.mxu0 %v12638_v27  ;;  %v12658_v27 = vld [vmem:[%s15187_s18 + $0x30] sm:$0xff]  }
 0x9a4   : > { %11702 = vmatprep.subr.bf16.mxu0 %v13394_v57 }
 0x9a7   : > { %11703 = vmatpush3.bf16.msra.mxu0 %v12639_v23 }
 0x9a8   : > { %11740 = vmatprep.subr.bf16.mxu0 %v13394_v57 }
 0xa1d   : > { %v5055_v28 = vpop.f32.mrb[56].mxu0 }
 0xa1e   : > { %v11622_v32 = vpop.f32.mrb[57].mxu0 }
 0xa1f   : > { %v5058_v38 = vpop.f32.mrb[58].mxu0  ;;  %v12660_v32 = vld [vmem:[#allocation11 + $0x180] sm:$0xff]  }
 0xa20   : > { %v11623_v46 = vpop.f32.mrb[59].mxu0 }
 0xa21   : > { %v12661_v46 = vld [vmem:[#allocation11 + $0x188] sm:$0xff]  }
 0xa3d   : > { %v5144_v33 = vpop.f32.mrb[60].mxu0 }
 0xa3e   : > { %v14597_v6 = vadd.f32 %v5144_v33, %v5055_v28  ;;  %v11642_v10 = vpop.f32.mrb[61].mxu0  ;;  %v12662_v33 = vld [vmem:[#allocation11 + $0x190] sm:$0xff]  }
 0xa3f   : > { %v5147_v12 = vpop.f32.mrb[62].mxu0  ;;  %v12663_v10 = vld [vmem:[#allocation11 + $0x198] sm:$0xff]  }
 0xa40   : > { %v14599_v13 = vadd.f32 %v5147_v12, %v5058_v38  ;;  %v11643_v14 = vpop.f32.mrb[63].mxu0  ;;  %v12664_v12 = vld [vmem:[#allocation11 + $0x1a0] sm:$0xff]  }
 0xa41   : > { %v12666_v14 = vld [vmem:[#allocation11 + $0x1a8] sm:$0xff]  }
 0xa4d   : > { %v5196_v16 = vpop.f32.mrb[64].mxu0 }
 0xa4e   : > { %v11654_v18 = vpop.f32.mrb[65].mxu0 }
 0xa4f   : > { %v5199_v19 = vpop.f32.mrb[66].mxu0  ;;  %v12668_v18 = vld [vmem:[#allocation11 + $0x1b0] sm:$0xff]  }
 0xa50   : > { %v5203_v41 = vpack.c.bf16 %v5199_v19, %v5196_v16  ;;  %v11655_v22 = vpop.f32.mrb[67].mxu0  ;;  %v12667_v16 = vld [vmem:[#allocation11 + $0x1c8] sm:$0xff]   ;;  %v12669_v19 = vld [vmem:[#allocation11 + $0x1d0] sm:$0xff]  }
 0xa51   : > { %v12671_v22 = vld [vmem:[#allocation11 + $0x1d8] sm:$0xff]  }
 0xa52   : > { %11673 = vmatmul.mubr.bf16.vlgmr.msra.gmra.mrb[112].mxu1 %v5203_v41  ;;  %v12670_v41 = vld [vmem:[#allocation11 + $0x1b8] sm:$0xff]  }
 0xa53   : > { %11709 = vmatpush3.bf16.msra.mxu1 %v14499_v30  ;;  %11716 = vmatprep.mubr.msk.bf16.mxu1 %vm13395_vm1, %v13394_v57 }
 0xa54   : > { %11710 = vmatprep.subr.bf16.mxu1 %v13394_v57 }
 0xa57   : > { %11711 = vmatpush3.bf16.msra.mxu1 %v14497_v29 }
 0xa58   : > { %11712 = vmatprep.subr.bf16.mxu1 %v13394_v57 }
 0xa5b   : > { %11713 = vmatpush3.bf16.msra.mxu1 %v14507_v21 }
 0xa5c   : > { %11714 = vmatprep.subr.bf16.mxu1 %v13394_v57 }
 0xa5d   : > { %v5357_v24 = vpop.f32.mrb[68].mxu0 }
 0xa5e   : > { %v11686_v45 = vpop.f32.mrb[69].mxu0 }
 0xa5f   : > { %11715 = vmatpush3.bf16.msra.mxu1 %v14504_v20  ;;  %v5360_v25 = vpop.f32.mrb[70].mxu0  ;;  %v12673_v45 = vld [vmem:[#allocation11 + $0x1e8] sm:$0xff]  }
 0xa60   : > { %v5364_v37 = vpack.c.bf16 %v5360_v25, %v5357_v24  ;;  %11720 = vmatprep.subr.bf16.mxu1 %v13394_v57  ;;  %v11687_v40 = vpop.f32.mrb[71].mxu0  ;;  %v12672_v24 = vld [vmem:[#allocation11 + $0x1e0] sm:$0xff]   ;;  %v12675_v25 = vld [vmem:[#allocation11 + $0x1f8] sm:$0xff]  }
 0xa62   : > { %11717 = vmatmul.mubr.msk.bf16.vlgmr.msra.gmra.mrb[116].mxu1 %vm748_vm0, %v12640_v26  ;;  %11705 = vmatmul.mubr.bf16.vlgmr.msra.gmra.mrb[72].mxu0 %v5364_v37  ;;  %v12674_v26 = vld [vmem:[#allocation11 + $0x1f0] sm:$0xff]  }
 0xa63   : > { %11741 = vmatpush3.bf16.msra.mxu0 %v14499_v30  ;;  %11748 = vmatprep.mubr.msk.bf16.mxu0 %vm13395_vm1, %v13394_v57 }
 0xa64   : > { %11742 = vmatprep.subr.bf16.mxu0 %v13394_v57  ;;  %11721 = vmatpush3.bf16.msra.mxu1 %v12642_v39 }
 0xa65   : > { %11722 = vmatprep.subr.bf16.mxu1 %v13394_v57  ;;  %11736 = vmatprep.mubr.msk.bf16.mxu1 %vm13395_vm1, %v13394_v57 }
 0xa67   : > { %11743 = vmatpush3.bf16.msra.mxu0 %v14497_v29 }
 0xa68   : > { %11744 = vmatprep.subr.bf16.mxu0 %v13394_v57  ;;  %11723 = vmatpush3.bf16.msra.mxu1 %v12643_v36 }
 0xa69   : > { %11724 = vmatprep.subr.bf16.mxu1 %v13394_v57 }
 0xa6b   : > { %11745 = vmatpush3.bf16.msra.mxu0 %v14507_v21 }
 0xa6c   : > { %11746 = vmatprep.subr.bf16.mxu0 %v13394_v57  ;;  %11725 = vmatpush3.bf16.msra.mxu1 %v12644_v35 }
 0xa6d   : > { %11726 = vmatprep.subr.bf16.mxu1 %v13394_v57 }
 0xa6f   : > { %11747 = vmatpush3.bf16.msra.mxu0 %v14504_v20 }
 0xa70   : > { %11752 = vmatprep.subr.bf16.mxu0 %v13394_v57  ;;  %11727 = vmatpush3.bf16.msra.mxu1 %v12645_v43 }
 0xa71   : > { %11728 = vmatprep.subr.bf16.mxu1 %v13394_v57 }
 0xa72   : > { %11749 = vmatmul.mubr.msk.bf16.vlgmr.msra.gmra.mrb[76].mxu0 %vm748_vm0, %v12641_v42 }
 0xa73   : > { %11768 = vmatprep.mubr.msk.bf16.mxu0 %vm13395_vm1, %v13394_v57  ;;  %11753 = vmatpush3.bf16.msra.mxu0 %v12647_v47 }
 0xa74   : > { %11729 = vmatpush3.bf16.msra.mxu1 %v12646_v44  ;;  %11754 = vmatprep.subr.bf16.mxu0 %v13394_v57 }
 0xa75   : > { %11730 = vmatprep.subr.bf16.mxu1 %v13394_v57 }
 0xa77   : > { %11755 = vmatpush3.bf16.msra.mxu0 %v12649_v53 }
 0xa78   : > { %11731 = vmatpush3.bf16.msra.mxu1 %v12648_v50  ;;  %11756 = vmatprep.subr.bf16.mxu0 %v13394_v57 }
 0xa79   : > { %11732 = vmatprep.subr.bf16.mxu1 %v13394_v57 }
 0xa7b   : > { %11757 = vmatpush3.bf16.msra.mxu0 %v12651_v63 }
 0xa7c   : > { %11733 = vmatpush3.bf16.msra.mxu1 %v12650_v55  ;;  %11758 = vmatprep.subr.bf16.mxu0 %v13394_v57 }
 0xa7d   : > { %11734 = vmatprep.subr.bf16.mxu1 %v13394_v57 }
 0xa7f   : > { %11759 = vmatpush3.bf16.msra.mxu0 %v12653_v7 }
 0xa80   : > { %11735 = vmatpush3.bf16.msra.mxu1 %v12652_v1  ;;  %11760 = vmatprep.subr.bf16.mxu0 %v13394_v57 }
 0xa81   : > { %11772 = vmatprep.subr.bf16.mxu1 %v13394_v57 }
 0xa83   : > { %11761 = vmatpush3.bf16.msra.mxu0 %v12654_v9 }
 0xa84   : > { %11762 = vmatprep.subr.bf16.mxu0 %v13394_v57 }
 0xa87   : > { %11763 = vmatpush3.bf16.msra.mxu0 %v12655_v15 }
 0xa88   : > { %11764 = vmatprep.subr.bf16.mxu0 %v13394_v57 }
 0xa8b   : > { %11765 = vmatpush3.bf16.msra.mxu0 %v12656_v17 }
 0xa8c   : > { %11766 = vmatprep.subr.bf16.mxu0 %v13394_v57 }
 0xa8f   : > { %11767 = vmatpush3.bf16.msra.mxu0 %v12657_v31 }
 0xa90   : > { %11804 = vmatprep.subr.bf16.mxu0 %v13394_v57 }
 0xb25   : > { %v5303_v34 = vpop.f32.mrb[112].mxu1 }
 0xb26   : > { %v5310_v48 = vadd.f32 %v5303_v34, %v14597_v6  ;;  %v11674_v54 = vpop.f32.mrb[113].mxu1  ;;  %v12659_v6 = vld [vmem:[%s15187_s18 + $0x38] sm:$0xff]   ;;  %v12676_v34 = vld [vmem:[%s15187_s18 + $0x40] sm:$0xff]  }
 0xb27   : > { %v5306_v56 = vpop.f32.mrb[114].mxu1 }
 0xb28   : > { %v5311_v49 = vadd.f32 %v5306_v56, %v14599_v13  ;;  %v11675_v51 = vpop.f32.mrb[115].mxu1  ;;  %v12665_v13 = vld [vmem:[#allocation11 + $0x1c0] sm:$0xff]   ;;  %v12680_v56 = vld [vmem:[#allocation11 + $0x218] sm:$0xff]  }
 0xb29   : > { %v12682_v51 = vld [vmem:[#allocation11 + $0x228] sm:$0xff]  }
 0xb35   : > { %v5518_v52 = vpop.f32.mrb[116].mxu1  ;;  %v5464_v58 = vpop.f32.mrb[72].mxu0 }
 0xb36   : > { %v14651_v61 = vadd.f32 %v5464_v58, %v5310_v48  ;;  %v11718_v59 = vpop.f32.mrb[117].mxu1  ;;  %v11706_v60 = vpop.f32.mrb[73].mxu0  ;;  %v12677_v48 = vld [vmem:[#allocation11 + $0x200] sm:$0xff]   ;;  %v12684_v58 = vld [vmem:[#allocation11 + $0x238] sm:$0xff]  }
 0xb37   : > { %v5521_v62 = vpop.f32.mrb[118].mxu1  ;;  %v5467_v0 = vpop.f32.mrb[74].mxu0 }
 0xb38   : > { %v5525_v2 = vpack.c.bf16 %v5521_v62, %v5518_v52  ;;  %v14653_v3 = vadd.f32 %v5467_v0, %v5311_v49  ;;  %v11719_v4 = vpop.f32.mrb[119].mxu1  ;;  %v11707_v5 = vpop.f32.mrb[75].mxu0  ;;  %v12681_v49 = vld [vmem:[#allocation11 + $0x220] sm:$0xff]   ;;  %v12683_v52 = vld [vmem:[#allocation11 + $0x230] sm:$0xff]  }
 0xb3a   : > { %11737 = vmatmul.mubr.bf16.vlgmr.msra.gmra.mrb[120].mxu1 %v5525_v2 }
 0xb3b   : > { %11773 = vmatpush3.bf16.msra.mxu1 %v14499_v30  ;;  %11780 = vmatprep.mubr.msk.bf16.mxu1 %vm13395_vm1, %v13394_v57 }
 0xb3c   : > { %11774 = vmatprep.subr.bf16.mxu1 %v13394_v57 }
 0xb3f   : > { %11775 = vmatpush3.bf16.msra.mxu1 %v14497_v29 }
 0xb40   : > { %11776 = vmatprep.subr.bf16.mxu1 %v13394_v57 }
 0xb43   : > { %11777 = vmatpush3.bf16.msra.mxu1 %v14507_v21 }
 0xb44   : > { %11778 = vmatprep.subr.bf16.mxu1 %v13394_v57 }
 0xb45   : > { %v5679_v8 = vpop.f32.mrb[76].mxu0 }
 0xb46   : > { %v11750_v11 = vpop.f32.mrb[77].mxu0 }
 0xb47   : > { %11779 = vmatpush3.bf16.msra.mxu1 %v14504_v20  ;;  %v5682_v23 = vpop.f32.mrb[78].mxu0 }
 0xb48   : > { %v5686_v28 = vpack.c.bf16 %v5682_v23, %v5679_v8  ;;  %11784 = vmatprep.subr.bf16.mxu1 %v13394_v57  ;;  %v11751_v38 = vpop.f32.mrb[79].mxu0 }
 0xb4a   : > { %11781 = vmatmul.mubr.msk.bf16.vlgmr.msra.gmra.mrb[124].mxu1 %vm748_vm0, %v12658_v27  ;;  %11769 = vmatmul.mubr.bf16.vlgmr.msra.gmra.mrb[80].mxu0 %v5686_v28 }
 0xb4b   : > { %11805 = vmatpush3.bf16.msra.mxu0 %v14499_v30  ;;  %11812 = vmatprep.mubr.msk.bf16.mxu0 %vm13395_vm1, %v13394_v57 }
 0xb4c   : > { %11806 = vmatprep.subr.bf16.mxu0 %v13394_v57  ;;  %11785 = vmatpush3.bf16.msra.mxu1 %v12660_v32 }
 0xb4d   : > { %11786 = vmatprep.subr.bf16.mxu1 %v13394_v57  ;;  %11800 = vmatprep.mubr.msk.bf16.mxu1 %vm13395_vm1, %v13394_v57 }
 0xb4f   : > { %11807 = vmatpush3.bf16.msra.mxu0 %v14497_v29 }
 0xb50   : > { %11808 = vmatprep.subr.bf16.mxu0 %v13394_v57  ;;  %11787 = vmatpush3.bf16.msra.mxu1 %v12661_v46 }
 0xb51   : > { %11788 = vmatprep.subr.bf16.mxu1 %v13394_v57 }
 0xb53   : > { %11809 = vmatpush3.bf16.msra.mxu0 %v14507_v21 }
 0xb54   : > { %11810 = vmatprep.subr.bf16.mxu0 %v13394_v57  ;;  %11789 = vmatpush3.bf16.msra.mxu1 %v12662_v33  ;;  %v12685_v33 = vld [vmem:[#allocation13] sm:$0xff]  }
 0xb55   : > { %11790 = vmatprep.subr.bf16.mxu1 %v13394_v57 }
 0xb57   : > { %11811 = vmatpush3.bf16.msra.mxu0 %v14504_v20 }
 0xb58   : > { %11816 = vmatprep.subr.bf16.mxu0 %v13394_v57  ;;  %11791 = vmatpush3.bf16.msra.mxu1 %v12663_v10  ;;  %v12688_v10 = vld [vmem:[#allocation13 + $0x10] sm:$0xff]  }
 0xb59   : > { %11792 = vmatprep.subr.bf16.mxu1 %v13394_v57 }
 0xb5a   : > { %11813 = vmatmul.mubr.msk.bf16.vlgmr.msra.gmra.mrb[84].mxu0 %vm748_vm0, %v12659_v6  ;;  %v12686_v6 = vld [vmem:[#allocation13 + $0x8] sm:$0xff]  }
 0xb5b   : > { %11832 = vmatprep.mubr.msk.bf16.mxu0 %vm13395_vm1, %v13394_v57  ;;  %11817 = vmatpush3.bf16.msra.mxu0 %v12665_v13  ;;  %v12692_v13 = vld [vmem:[#allocation13 + $0x20] sm:$0xff]  }
 0xb5c   : > { %11793 = vmatpush3.bf16.msra.mxu1 %v12664_v12  ;;  %11818 = vmatprep.subr.bf16.mxu0 %v13394_v57  ;;  %v12690_v12 = vld [vmem:[#allocation13 + $0x18] sm:$0xff]  }
 0xb5d   : > { %11794 = vmatprep.subr.bf16.mxu1 %v13394_v57 }
 0xb5f   : > { %11819 = vmatpush3.bf16.msra.mxu0 %v12667_v16  ;;  %v12696_v16 = vld [vmem:[#allocation13 + $0x30] sm:$0xff]  }
 0xb60   : > { %11795 = vmatpush3.bf16.msra.mxu1 %v12666_v14  ;;  %11820 = vmatprep.subr.bf16.mxu0 %v13394_v57  ;;  %v12694_v14 = vld [vmem:[#allocation13 + $0x28] sm:$0xff]  }
 0xb61   : > { %11796 = vmatprep.subr.bf16.mxu1 %v13394_v57 }
 0xb63   : > { %11821 = vmatpush3.bf16.msra.mxu0 %v12669_v19  ;;  %v10000_v19 = vld [vmem:[%s15188_s5] ss:$0 sm:$0xff]  ;;  %s15191_s5 = sld [smem:[#allocation40_spill]] }
 0xb64   : > { %11797 = vmatpush3.bf16.msra.mxu1 %v12668_v18  ;;  %11822 = vmatprep.subr.bf16.mxu0 %v13394_v57 }
 0xb65   : > { %11798 = vmatprep.subr.bf16.mxu1 %v13394_v57 }
 0xb67   : > { %11823 = vmatpush3.bf16.msra.mxu0 %v12671_v22 }
 0xb68   : > { %11799 = vmatpush3.bf16.msra.mxu1 %v12670_v41  ;;  %11824 = vmatprep.subr.bf16.mxu0 %v13394_v57 }
 0xb69   : > { %11836 = vmatprep.subr.bf16.mxu1 %v13394_v57  ;;  %s14994_s23 = scalar_lea.hbm %s15191_s5, %s10249_s14 }
 0xb6b   : > { %11825 = vmatpush3.bf16.msra.mxu0 %v12672_v24 }
 0xb6c   : > { %11826 = vmatprep.subr.bf16.mxu0 %v13394_v57 }
 0xb6f   : > { %11827 = vmatpush3.bf16.msra.mxu0 %v12673_v45 }
 0xb70   : > { %11828 = vmatprep.subr.bf16.mxu0 %v13394_v57 }
 0xb73   : > { %11829 = vmatpush3.bf16.msra.mxu0 %v12674_v26 }
 0xb74   : > { %11830 = vmatprep.subr.bf16.mxu0 %v13394_v57 }
 0xb77   : > { %11831 = vmatpush3.bf16.msra.mxu0 %v12675_v25 }
 0xb78   : > { %11868 = vmatprep.subr.bf16.mxu0 %v13394_v57 }
 0xc0d   : > { %v5625_v37 = vpop.f32.mrb[120].mxu1 }
 0xc0e   : > { %v5632_v39 = vadd.f32 %v5625_v37, %v14651_v61  ;;  %v11738_v40 = vpop.f32.mrb[121].mxu1 }
 0xc0f   : > { %v5628_v36 = vpop.f32.mrb[122].mxu1 }
 0xc10   : > { %v5633_v35 = vadd.f32 %v5628_v36, %v14653_v3  ;;  %v11739_v42 = vpop.f32.mrb[123].mxu1 }
 0xc11   : > { %v6355_v42 = vld [vmem:[#allocation7 + $0x4] sm:$0xf] }
 0xc1d   : > { %v5840_v43 = vpop.f32.mrb[124].mxu1  ;;  %v5786_v44 = vpop.f32.mrb[80].mxu0 }
 0xc1e   : > { %v5793_v47 = vadd.f32 %v5786_v44, %v5632_v39  ;;  %v11782_v50 = vpop.f32.mrb[125].mxu1  ;;  %v11770_v53 = vpop.f32.mrb[81].mxu0  ;;  %v12689_v44 = vld [vmem:[#allocation13 + $0x48] sm:$0xff]  }
 0xc1f   : > { %v5843_v55 = vpop.f32.mrb[126].mxu1  ;;  %v5789_v63 = vpop.f32.mrb[82].mxu0  ;;  %v12693_v50 = vld [vmem:[#allocation13 + $0x58] sm:$0xff]   ;;  %v12695_v53 = vld [vmem:[#allocation13 + $0x60] sm:$0xff]  }
 0xc20   : > { %v5847_v1 = vpack.c.bf16 %v5843_v55, %v5840_v43  ;;  %v5794_v7 = vadd.f32 %v5789_v63, %v5633_v35  ;;  %v11783_v9 = vpop.f32.mrb[127].mxu1  ;;  %v11771_v15 = vpop.f32.mrb[83].mxu0  ;;  %v6292_v35 = vld [vmem:[#allocation7] sm:$0xf]  ;;  %v12687_v43 = vld [vmem:[#allocation13 + $0x40] sm:$0xff]   ;;  %v12697_v55 = vld [vmem:[#allocation13 + $0x68] sm:$0xff]  }
 0xc21   : > { %v12698_v63 = vld [vmem:[#allocation13 + $0x38] sm:$0xff]   ;;  %v12701_v15 = vld [vmem:[#allocation13 + $0x80] sm:$0xff]  }
 0xc22   : > { %11801 = vmatmul.mubr.bf16.vlgmr.msra.gmra.mrb[128].mxu1 %v5847_v1  ;;  %v12699_v1 = vld [vmem:[#allocation13 + $0x70] sm:$0xff]  }
 0xc23   : > { %11837 = vmatpush3.bf16.msra.mxu1 %v14499_v30  ;;  %11844 = vmatprep.mubr.msk.bf16.mxu1 %vm13395_vm1, %v13394_v57 }
 0xc24   : > { %11838 = vmatprep.subr.bf16.mxu1 %v13394_v57 }
 0xc27   : > { %11839 = vmatpush3.bf16.msra.mxu1 %v14497_v29 }
 0xc28   : > { %11840 = vmatprep.subr.bf16.mxu1 %v13394_v57 }
 0xc2b   : > { %11841 = vmatpush3.bf16.msra.mxu1 %v14507_v21  ;;  %v12678_v21 = vld [vmem:[#allocation11 + $0x208] sm:$0xff]  }
 0xc2c   : > { %11842 = vmatprep.subr.bf16.mxu1 %v13394_v57 }
 0xc2d   : > { %v6001_v17 = vpop.f32.mrb[84].mxu0 }
 0xc2e   : > { %v11814_v31 = vpop.f32.mrb[85].mxu0 }
 0xc2f   : > { %11843 = vmatpush3.bf16.msra.mxu1 %v14504_v20  ;;  %v6004_v30 = vpop.f32.mrb[86].mxu0  ;;  %v12679_v20 = vld [vmem:[#allocation11 + $0x210] sm:$0xff]  }
 0xc30   : > { %v6008_v54 = vpack.c.bf16 %v6004_v30, %v6001_v17  ;;  %11848 = vmatprep.subr.bf16.mxu1 %v13394_v57  ;;  %v11815_v29 = vpop.f32.mrb[87].mxu0 }
 0xc32   : > { %11845 = vmatmul.mubr.msk.bf16.vlgmr.msra.gmra.mrb[132].mxu1 %vm748_vm0, %v12676_v34  ;;  %11833 = vmatmul.mubr.bf16.vlgmr.msra.gmra.mrb[88].mxu0 %v6008_v54 }
 0xc33   : > { %11849 = vmatpush3.bf16.msra.mxu1 %v12677_v48  ;;  %11864 = vmatprep.mubr.msk.bf16.mxu1 %vm13395_vm1, %v13394_v57  ;;  %v12702_v48 = vld [vmem:[#allocation13 + $0x88] sm:$0xff]  }
 0xc34   : > { %11850 = vmatprep.subr.bf16.mxu1 %v13394_v57  ;;  %11870 = vmatprep.mubr.msk.bf16.mxu0 %vm13395_vm1, %v13394_v57 }
 0xc37   : > { %11851 = vmatpush3.bf16.msra.mxu1 %v12678_v21 }
 0xc38   : > { %11852 = vmatprep.subr.bf16.mxu1 %v13394_v57 }
 0xc3b   : > { %11853 = vmatpush3.bf16.msra.mxu1 %v12679_v20  ;;  %v12703_v20 = vld [vmem:[#allocation13 + $0x90] sm:$0xff]  }
 0xc3c   : > { %11854 = vmatprep.subr.bf16.mxu1 %v13394_v57 }
 0xc3f   : > { %11855 = vmatpush3.bf16.msra.mxu1 %v12680_v56 }
 0xc40   : > { %11856 = vmatprep.subr.bf16.mxu1 %v13394_v57 }
 0xc43   : > { %11857 = vmatpush3.bf16.msra.mxu1 %v12681_v49 }
 0xc44   : > { %11858 = vmatprep.subr.bf16.mxu1 %v13394_v57 }
 0xc47   : > { %11859 = vmatpush3.bf16.msra.mxu1 %v12682_v51  ;;  %v12705_v51 = vld [vmem:[#allocation13 + $0x98] sm:$0xff]  }
 0xc48   : > { %11860 = vmatprep.subr.bf16.mxu1 %v13394_v57 }
 0xc4b   : > { %11861 = vmatpush3.bf16.msra.mxu1 %v12683_v52  ;;  %v6594_v52 = vld [vmem:[#allocation7 + $0x8] sm:$0xf] }
 0xc4c   : > { %11862 = vmatprep.subr.bf16.mxu1 %v13394_v57 }
 0xc4f   : > { %11863 = vmatpush3.bf16.msra.mxu1 %v12684_v58  ;;  %v6746_v58 = vld [vmem:[#allocation7 + $0xc] sm:$0xf] }
 0xc50   : > { %11900 = vmatprep.subr.bf16.mxu1 %v13394_v57 }
 0xcf5   : > { %v5947_v61 = vpop.f32.mrb[128].mxu1 }
 0xcf6   : > { %v5954_v59 = vadd.f32 %v5947_v61, %v5793_v47  ;;  %v11802_v60 = vpop.f32.mrb[129].mxu1  ;;  %v12691_v47 = vld [vmem:[#allocation13 + $0x50] sm:$0xff]   ;;  %v12704_v61 = vld [vmem:[#allocation13 + $0xc0] sm:$0xff]  }
 0xcf7   : > { %v5950_v62 = vpop.f32.mrb[130].mxu1  ;;  %v12707_v60 = vld [vmem:[#allocation13 + $0xa0] sm:$0xff]  }
 0xcf8   : > { %v5955_v0 = vadd.f32 %v5950_v62, %v5794_v7  ;;  %v11803_v2 = vpop.f32.mrb[131].mxu1  ;;  %v12700_v7 = vld [vmem:[#allocation13 + $0x78] sm:$0xff]   ;;  %v12708_v62 = vld [vmem:[#allocation13 + $0xd0] sm:$0xff]  }
 0xcf9   : > { %v12710_v2 = vld [vmem:[#allocation13 + $0xd8] sm:$0xff]  }
 0xd05   : > { %v6162_v3 = vpop.f32.mrb[132].mxu1  ;;  %v6108_v4 = vpop.f32.mrb[88].mxu0 }
 0xd06   : > { %v6115_v5 = vadd.f32 %v6108_v4, %v5954_v59  ;;  %v11846_v8 = vpop.f32.mrb[133].mxu1  ;;  %v11834_v11 = vpop.f32.mrb[89].mxu0  ;;  %v12706_v59 = vld [vmem:[#allocation13 + $0xc8] sm:$0xff]   ;;  %v12712_v4 = vld [vmem:[#allocation13 + $0xe0] sm:$0xff]  }
 0xd07   : > { %v6165_v27 = vpop.f32.mrb[134].mxu1  ;;  %v6111_v23 = vpop.f32.mrb[90].mxu0  ;;  %v12714_v8 = vld [vmem:[#allocation13 + $0xe8] sm:$0xff]   ;;  %v12715_v11 = vld [vmem:[#allocation13 + $0xf0] sm:$0xff]  }
 0xd08   : > { %v6169_v28 = vpack.c.bf16 %v6165_v27, %v6162_v3  ;;  %v6116_v32 = vadd.f32 %v6111_v23, %v5955_v0  ;;  %v11847_v38 = vpop.f32.mrb[135].mxu1  ;;  %v11835_v46 = vpop.f32.mrb[91].mxu0  ;;  %v12709_v0 = vld [vmem:[#allocation13 + $0xa8] sm:$0xff]   ;;  %v12711_v3 = vld [vmem:[#allocation13 + $0xb0] sm:$0xff]   ;;  %v12716_v27 = vld [vmem:[#allocation13 + $0xf8] sm:$0xff]  }
 0xd0a   : > { %11865 = vmatmul.mubr.bf16.vlgmr.msra.gmra.mrb[136].mxu1 %v6169_v28 }
 0xd0b   : > { %11916 = vmatprep.mubr.msk.bf16.mxu1 %vm13395_vm1, %v13394_v57  ;;  %11901 = vmatpush3.bf16.msra.mxu1 %v12685_v33 }
 0xd0c   : > { %11902 = vmatprep.subr.bf16.mxu1 %v13394_v57 }
 0xd0f   : > { %11903 = vmatpush3.bf16.msra.mxu1 %v12686_v6 }
 0xd10   : > { %11904 = vmatprep.subr.bf16.mxu1 %v13394_v57 }
 0xd13   : > { %11905 = vmatpush3.bf16.msra.mxu1 %v12688_v10 }
 0xd14   : > { %11906 = vmatprep.subr.bf16.mxu1 %v13394_v57 }
 0xd17   : > { %11907 = vmatpush3.bf16.msra.mxu1 %v12690_v12 }
 0xd18   : > { %11908 = vmatprep.subr.bf16.mxu1 %v13394_v57 }
 0xd1b   : > { %11909 = vmatpush3.bf16.msra.mxu1 %v12692_v13 }
 0xd1c   : > { %11910 = vmatprep.subr.bf16.mxu1 %v13394_v57 }
 0xd1f   : > { %11911 = vmatpush3.bf16.msra.mxu1 %v12694_v14 }
 0xd20   : > { %11912 = vmatprep.subr.bf16.mxu1 %v13394_v57 }
 0xd23   : > { %11913 = vmatpush3.bf16.msra.mxu1 %v12696_v16 }
 0xd24   : > { %11914 = vmatprep.subr.bf16.mxu1 %v13394_v57 }
 0xd27   : > { %11915 = vmatpush3.bf16.msra.mxu1 %v12698_v63  ;;  %v12727_v63 = vld [vmem:[#allocation13 + $0x130] sm:$0xff]  }
 0xd28   : > { %11926 = vmatprep.subr.bf16.mxu1 %v13394_v57 }
 0xddd   : > { %v6269_v18 = vpop.f32.mrb[136].mxu1 }
 0xdde   : > { %v6276_v41 = vadd.f32 %v6269_v18, %v6115_v5  ;;  %v11866_v22 = vpop.f32.mrb[137].mxu1  ;;  %v12713_v5 = vld [vmem:[#allocation13 + $0xb8] sm:$0xff]  }
 0xddf   : > { %v6272_v24 = vpop.f32.mrb[138].mxu1  ;;  %v6898_v22 = vld [vmem:[#allocation7 + $0x10] sm:$0xf] }
 0xde0   : > { %v6285_v45 = vadd.f32 %v10000_v19, %v6276_v41  ;;  %v6277_v26 = vadd.f32 %v6272_v24, %v6116_v32  ;;  %v11867_v25 = vpop.f32.mrb[139].mxu1 }
 0xde2   : > { %v6287_v37 = vmax.f32 %v6285_v45, 0.0  ;;  %v6286_v39 = vadd.f32 %v10000_v19, %v6277_v26  ;;  %v12717_v45 = vld [vmem:[#allocation13 + $0x100] sm:$0xff]  }
 0xde4   : > { %6289 = vst [vmem:[%s14746_s21] sm:$0xff] %v6287_v37  ;;  %v6288_v40 = vmax.f32 %v6286_v39, 0.0  ;;  %v12718_v39 = vld [vmem:[#allocation13 + $0x108] sm:$0xff]  }
 0xde6   : > { %6290 = vst [vmem:[%s14746_s21 + $0x8] sm:$0xff] %v6288_v40  ;;  %v14750_v36 = vpack.c.bf16 %v6288_v40, %v6287_v37  ;;  %v7050_v40 = vld [vmem:[#allocation7 + $0x14] sm:$0xf]  ;;  %s13397_s21 = smov [#allocation17]  }
 0xde7   : > { %s13242_s8 = sshll.u32 %s13397_s21, 4  ;;  %s13243_s8 = int_to_ptr.vmem [resolvable:$false] %s13242_s8 }
 0xde8   : > { %11869 = vmatpush3.bf16.msra.mxu0 %v14750_v36  ;;  %s13244_s10 = scalar_lea.vmem %s13243_s8, 256  ;;  %p13245_p2 = scmp.lt.s32.totalorder %s14997_s1, %s13243_s8 }
 0xde9   : > { %11874 = vmatprep.subr.bf16.mxu0 %v13394_v57  ;;  %p13246_p8 = scmp.lt.s32.totalorder %s13244_s10, %s13238_s7 }
 0xdeb   : > { %11871 = vmatmul.mubr.msk.bf16.vlgmr.msra.gmra.mrb[92].mxu0 %vm6293_vm2, %v6292_v35  ;;  %v12720_v35 = vld [vmem:[#allocation13 + $0x140] sm:$0xff]   ;;  %p13247_p6 = por %p13246_p8, %p13245_p2 }
 0xdec   : > { %11875 = vmatpush3.bf16.msra.mxu0 %v14750_v36  ;;  %11876 = vmatprep.mubr.msk.bf16.mxu0 %vm13395_vm1, %v13394_v57 }
 0xded   : > { %11880 = vmatprep.subr.bf16.mxu0 %v13394_v57  ;;  %p13248_p10 = pnand %p13247_p6, %p13241_p0 }
 0xdf3   : > { %11877 = vmatmul.mubr.msk.bf16.vlgmr.msra.gmra.mrb[96].mxu0 %vm6293_vm2, %v6355_v42  ;;  %v12719_v42 = vld [vmem:[#allocation13 + $0x110] sm:$0xff]  }
 0xdf4   : > { %11881 = vmatpush3.bf16.msra.mxu0 %v12687_v43  ;;  %11896 = vmatprep.mubr.msk.bf16.mxu0 %vm13395_vm1, %v13394_v57  ;;  %v12722_v43 = vld [vmem:[#allocation13 + $0x148] sm:$0xff]  }
 0xdf5   : > { %11882 = vmatprep.subr.bf16.mxu0 %v13394_v57 }
 0xdf8   : > { %11883 = vmatpush3.bf16.msra.mxu0 %v12689_v44  ;;  %v12721_v44 = vld [vmem:[#allocation13 + $0x118] sm:$0xff]  }
 0xdf9   : > { %11884 = vmatprep.subr.bf16.mxu0 %v13394_v57 }
 0xdfc   : > { %11885 = vmatpush3.bf16.msra.mxu0 %v12691_v47  ;;  %v12724_v47 = vld [vmem:[#allocation13 + $0x150] sm:$0xff]  }
 0xdfd   : > { %11886 = vmatprep.subr.bf16.mxu0 %v13394_v57 }
 0xe00   : > { %11887 = vmatpush3.bf16.msra.mxu0 %v12693_v50  ;;  %v12723_v50 = vld [vmem:[#allocation13 + $0x120] sm:$0xff]  }
 0xe01   : > { %11888 = vmatprep.subr.bf16.mxu0 %v13394_v57 }
 0xe04   : > { %11889 = vmatpush3.bf16.msra.mxu0 %v12695_v53  ;;  %v12726_v53 = vld [vmem:[#allocation13 + $0x158] sm:$0xff]  }
 0xe05   : > { %11890 = vmatprep.subr.bf16.mxu0 %v13394_v57 }
 0xe08   : > { %11891 = vmatpush3.bf16.msra.mxu0 %v12697_v55  ;;  %v12725_v55 = vld [vmem:[#allocation13 + $0x128] sm:$0xff]  }
 0xe09   : > { %11892 = vmatprep.subr.bf16.mxu0 %v13394_v57 }
 0xe0c   : > { %11893 = vmatpush3.bf16.msra.mxu0 %v12699_v1  ;;  %v12728_v1 = vld [vmem:[#allocation13 + $0x160] sm:$0xff]  }
 0xe0d   : > { %11894 = vmatprep.subr.bf16.mxu0 %v13394_v57 }
 0xe10   : > { %11895 = vmatpush3.bf16.msra.mxu0 %v12700_v7  ;;  %v12729_v7 = vld [vmem:[#allocation13 + $0x138] sm:$0xff]  }
 0xe11   : > { %11920 = vmatprep.subr.bf16.mxu0 %v13394_v57 }
 0xebe   : > { %v6331_v9 = vpop.f32.mrb[92].mxu0 }
 0xebf   : > { %v6337_v17 = vpack.c.bf16 %v6331_v9, %v6331_v9  ;;  %v11872_v31 = vpop.f32.mrb[93].mxu0  ;;  %v12730_v9 = vld [vmem:[#allocation13 + $0x168] sm:$0xff]  }
 0xec0   : > { %v6334_v34 = vpop.f32.mrb[94].mxu0 }
 0xec1   : > { %v11873_v30 = vpop.f32.mrb[95].mxu0  ;;  %11917 = vmatmul.mubr.bf16.vlgmr.msra.gmra.mrb[140].mxu1 %v6337_v17  ;;  %v12732_v17 = vld [vmem:[#allocation13 + $0x178] sm:$0xff]  }
 0xec2   : > { %11927 = vmatpush3.bf16.msra.mxu1 %v12701_v15  ;;  %11942 = vmatprep.mubr.msk.bf16.mxu1 %vm13395_vm1, %v13394_v57  ;;  %v12731_v15 = vld [vmem:[#allocation13 + $0x170] sm:$0xff]  }
 0xec3   : > { %11928 = vmatprep.subr.bf16.mxu1 %v13394_v57 }
 0xec6   : > { %v6393_v54 = vpop.f32.mrb[96].mxu0  ;;  %11929 = vmatpush3.bf16.msra.mxu1 %v12702_v48 }
 0xec7   : > { %v6399_v29 = vpack.c.bf16 %v6393_v54, %v6393_v54  ;;  %v11878_v21 = vpop.f32.mrb[97].mxu0  ;;  %11930 = vmatprep.subr.bf16.mxu1 %v13394_v57 }
 0xec8   : > { %v6396_v56 = vpop.f32.mrb[98].mxu0 }
 0xec9   : > { %v11879_v49 = vpop.f32.mrb[99].mxu0  ;;  %11897 = vmatmul.mubr.bf16.vlgmr.msra.gmra.mrb[100].mxu0 %v6399_v29 }
 0xeca   : > { %11921 = vmatpush3.bf16.msra.mxu0 %v14750_v36  ;;  %11922 = vmatprep.mubr.msk.bf16.mxu0 %vm13395_vm1, %v13394_v57 }
 0xecb   : > { %11946 = vmatprep.subr.bf16.mxu0 %v13394_v57  ;;  %11931 = vmatpush3.bf16.msra.mxu1 %v12703_v20 }
 0xecc   : > { %11932 = vmatprep.subr.bf16.mxu1 %v13394_v57 }
 0xecf   : > { %11933 = vmatpush3.bf16.msra.mxu1 %v12705_v51 }
 0xed0   : > { %11934 = vmatprep.subr.bf16.mxu1 %v13394_v57 }
 0xed1   : > { %11923 = vmatmul.mubr.msk.bf16.vlgmr.msra.gmra.mrb[104].mxu0 %vm6293_vm2, %v6594_v52 }
 0xed2   : > { %11947 = vmatpush3.bf16.msra.mxu0 %v14750_v36  ;;  %11948 = vmatprep.mubr.msk.bf16.mxu0 %vm13395_vm1, %v13394_v57 }
 0xed3   : > { %11952 = vmatprep.subr.bf16.mxu0 %v13394_v57  ;;  %11935 = vmatpush3.bf16.msra.mxu1 %v12707_v60 }
 0xed4   : > { %11936 = vmatprep.subr.bf16.mxu1 %v13394_v57 }
 0xed7   : > { %11937 = vmatpush3.bf16.msra.mxu1 %v12709_v0 }
 0xed8   : > { %11938 = vmatprep.subr.bf16.mxu1 %v13394_v57 }
 0xed9   : > { %11949 = vmatmul.mubr.msk.bf16.vlgmr.msra.gmra.mrb[108].mxu0 %vm6293_vm2, %v6746_v58 }
 0xeda   : > { %11953 = vmatpush3.bf16.msra.mxu0 %v12704_v61  ;;  %11968 = vmatprep.mubr.msk.bf16.mxu0 %vm13395_vm1, %v13394_v57 }
 0xedb   : > { %11954 = vmatprep.subr.bf16.mxu0 %v13394_v57  ;;  %11939 = vmatpush3.bf16.msra.mxu1 %v12711_v3 }
 0xedc   : > { %11940 = vmatprep.subr.bf16.mxu1 %v13394_v57 }
 0xede   : > { %11955 = vmatpush3.bf16.msra.mxu0 %v12706_v59 }
 0xedf   : > { %11956 = vmatprep.subr.bf16.mxu0 %v13394_v57  ;;  %11941 = vmatpush3.bf16.msra.mxu1 %v12713_v5 }
 0xee0   : > { %11972 = vmatprep.subr.bf16.mxu1 %v13394_v57 }
 0xee2   : > { %11957 = vmatpush3.bf16.msra.mxu0 %v12708_v62  ;;  %v7202_v62 = vld [vmem:[#allocation7 + $0x18] sm:$0xf] }
 0xee3   : > { %11958 = vmatprep.subr.bf16.mxu0 %v13394_v57 }
 0xee6   : > { %11959 = vmatpush3.bf16.msra.mxu0 %v12710_v2  ;;  %v12733_v2 = vld [vmem:[#allocation13 + $0x180] sm:$0xff]  }
 0xee7   : > { %11960 = vmatprep.subr.bf16.mxu0 %v13394_v57 }
 0xeea   : > { %11961 = vmatpush3.bf16.msra.mxu0 %v12712_v4 }
 0xeeb   : > { %11962 = vmatprep.subr.bf16.mxu0 %v13394_v57 }
 0xeee   : > { %11963 = vmatpush3.bf16.msra.mxu0 %v12714_v8  ;;  %v12734_v8 = vld [vmem:[#allocation13 + $0x188] sm:$0xff]  }
 0xeef   : > { %11964 = vmatprep.subr.bf16.mxu0 %v13394_v57 }
 0xef2   : > { %11965 = vmatpush3.bf16.msra.mxu0 %v12715_v11  ;;  %v7354_v11 = vld [vmem:[#allocation7 + $0x1c] sm:$0xf] }
 0xef3   : > { %11966 = vmatprep.subr.bf16.mxu0 %v13394_v57 }
 0xef6   : > { %11967 = vmatpush3.bf16.msra.mxu0 %v12716_v27  ;;  %v12736_v27 = vld [vmem:[#allocation13 + $0x1c0] sm:$0xff]  }
 0xef7   : > { %11998 = vmatprep.subr.bf16.mxu0 %v13394_v57 }
 0xf94   : > { %v6587_v23 = vpop.f32.mrb[140].mxu1 }
 0xf95   : > { %v11918_v28 = vpop.f32.mrb[141].mxu1 }
 0xf96   : > { %v6590_v32 = vpop.f32.mrb[142].mxu1  ;;  %v12738_v28 = vld [vmem:[#allocation13 + $0x1c8] sm:$0xff]  }
 0xf97   : > { %v11919_v38 = vpop.f32.mrb[143].mxu1  ;;  %v12737_v32 = vld [vmem:[#allocation13 + $0x198] sm:$0xff]  }
 0xf98   : > { %v12740_v38 = vld [vmem:[#allocation13 + $0x1d0] sm:$0xff]  }
 0xf9c   : > { %v6499_v46 = vpop.f32.mrb[100].mxu0 }
 0xf9d   : > { %v14801_v33 = vadd.f32 %v6587_v23, %v6499_v46  ;;  %v11898_v6 = vpop.f32.mrb[101].mxu0  ;;  %v12735_v23 = vld [vmem:[#allocation13 + $0x190] sm:$0xff]   ;;  %v12739_v46 = vld [vmem:[#allocation13 + $0x1a0] sm:$0xff]  }
 0xf9e   : > { %v6502_v10 = vpop.f32.mrb[102].mxu0  ;;  %v12742_v6 = vld [vmem:[#allocation13 + $0x1d8] sm:$0xff]  }
 0xf9f   : > { %v11899_v12 = vpop.f32.mrb[103].mxu0  ;;  %v12743_v10 = vld [vmem:[#allocation13 + $0x1b0] sm:$0xff]  }
 0xfa0   : > { %v12744_v12 = vld [vmem:[#allocation13 + $0x1e0] sm:$0xff]  }
 0xfa4   : > { %v6632_v13 = vpop.f32.mrb[104].mxu0 }
 0xfa5   : > { %v6638_v14 = vpack.c.bf16 %v6632_v13, %v6632_v13  ;;  %v11924_v16 = vpop.f32.mrb[105].mxu0  ;;  %v12745_v13 = vld [vmem:[#allocation13 + $0x1b8] sm:$0xff]  }
 0xfa6   : > { %v6635_v18 = vpop.f32.mrb[106].mxu0  ;;  %v12747_v16 = vld [vmem:[#allocation13 + $0x1f0] sm:$0xff]  }
 0xfa7   : > { %v11925_v19 = vpop.f32.mrb[107].mxu0  ;;  %11943 = vmatmul.mubr.bf16.vlgmr.msra.gmra.mrb[144].mxu1 %v6638_v14  ;;  %v12746_v14 = vld [vmem:[#allocation13 + $0x1e8] sm:$0xff]   ;;  %v12748_v18 = vld [vmem:[#allocation13 + $0x1f8] sm:$0xff]  }
 0xfa8   : > { %11973 = vmatpush3.bf16.msra.mxu1 %v14750_v36  ;;  %11974 = vmatprep.mubr.msk.bf16.mxu1 %vm13395_vm1, %v13394_v57 }
 0xfa9   : > { %11978 = vmatprep.subr.bf16.mxu1 %v13394_v57 }
 0xfac   : > { %v6784_v41 = vpop.f32.mrb[108].mxu0 }
 0xfad   : > { %v6790_v24 = vpack.c.bf16 %v6784_v41, %v6784_v41  ;;  %v11950_v26 = vpop.f32.mrb[109].mxu0 }
 0xfae   : > { %v6787_v25 = vpop.f32.mrb[110].mxu0 }
 0xfaf   : > { %11969 = vmatmul.mubr.bf16.vlgmr.msra.gmra.mrb[112].mxu0 %v6790_v24  ;;  %11975 = vmatmul.mubr.msk.bf16.vlgmr.msra.gmra.mrb[148].mxu1 %vm6293_vm2, %v6898_v22  ;;  %v11951_v37 = vpop.f32.mrb[111].mxu0 }
 0xfb0   : > { %11999 = vmatpush3.bf16.msra.mxu0 %v14750_v36  ;;  %12000 = vmatprep.mubr.msk.bf16.mxu0 %vm13395_vm1, %v13394_v57 }
 0xfb1   : > { %11979 = vmatpush3.bf16.msra.mxu1 %v12717_v45  ;;  %12004 = vmatprep.subr.bf16.mxu0 %v13394_v57 }
 0xfb2   : > { %11980 = vmatprep.subr.bf16.mxu1 %v13394_v57  ;;  %11994 = vmatprep.mubr.msk.bf16.mxu1 %vm13395_vm1, %v13394_v57 }
 0xfb5   : > { %11981 = vmatpush3.bf16.msra.mxu1 %v12718_v39 }
 0xfb6   : > { %11982 = vmatprep.subr.bf16.mxu1 %v13394_v57 }
 0xfb7   : > { %12001 = vmatmul.mubr.msk.bf16.vlgmr.msra.gmra.mrb[116].mxu0 %vm6293_vm2, %v7050_v40 }
 0xfb8   : > { %12005 = vmatpush3.bf16.msra.mxu0 %v12720_v35  ;;  %12020 = vmatprep.mubr.msk.bf16.mxu0 %vm13395_vm1, %v13394_v57 }
 0xfb9   : > { %11983 = vmatpush3.bf16.msra.mxu1 %v12719_v42  ;;  %12006 = vmatprep.subr.bf16.mxu0 %v13394_v57 }
 0xfba   : > { %11984 = vmatprep.subr.bf16.mxu1 %v13394_v57 }
 0xfbc   : > { %12007 = vmatpush3.bf16.msra.mxu0 %v12722_v43 }
 0xfbd   : > { %11985 = vmatpush3.bf16.msra.mxu1 %v12721_v44  ;;  %12008 = vmatprep.subr.bf16.mxu0 %v13394_v57 }
 0xfbe   : > { %11986 = vmatprep.subr.bf16.mxu1 %v13394_v57 }
 0xfc0   : > { %12009 = vmatpush3.bf16.msra.mxu0 %v12724_v47 }
 0xfc1   : > { %11987 = vmatpush3.bf16.msra.mxu1 %v12723_v50  ;;  %12010 = vmatprep.subr.bf16.mxu0 %v13394_v57 }
 0xfc2   : > { %11988 = vmatprep.subr.bf16.mxu1 %v13394_v57 }
 0xfc4   : > { %12011 = vmatpush3.bf16.msra.mxu0 %v12726_v53  ;;  %v7506_v53 = vld [vmem:[#allocation7 + $0x20] sm:$0xf] }
 0xfc5   : > { %11989 = vmatpush3.bf16.msra.mxu1 %v12725_v55  ;;  %12012 = vmatprep.subr.bf16.mxu0 %v13394_v57  ;;  %v12749_v55 = vld [vmem:[#allocation13 + $0x200] sm:$0xff]  }
 0xfc6   : > { %11990 = vmatprep.subr.bf16.mxu1 %v13394_v57 }
 0xfc8   : > { %12013 = vmatpush3.bf16.msra.mxu0 %v12728_v1 }
 0xfc9   : > { %11991 = vmatpush3.bf16.msra.mxu1 %v12727_v63  ;;  %12014 = vmatprep.subr.bf16.mxu0 %v13394_v57 }
 0xfca   : > { %11992 = vmatprep.subr.bf16.mxu1 %v13394_v57 }
 0xfcc   : > { %12015 = vmatpush3.bf16.msra.mxu0 %v12730_v9 }
 0xfcd   : > { %11993 = vmatpush3.bf16.msra.mxu1 %v12729_v7  ;;  %12016 = vmatprep.subr.bf16.mxu0 %v13394_v57 }
 0xfce   : > { %12024 = vmatprep.subr.bf16.mxu1 %v13394_v57 }
 0xfd0   : > { %12017 = vmatpush3.bf16.msra.mxu0 %v12731_v15  ;;  %v12750_v15 = vld [vmem:[#allocation13 + $0x208] sm:$0xff]  }
 0xfd1   : > { %12018 = vmatprep.subr.bf16.mxu0 %v13394_v57 }
 0xfd4   : > { %12019 = vmatpush3.bf16.msra.mxu0 %v12732_v17  ;;  %v12752_v17 = vld [vmem:[#allocation13 + $0x218] sm:$0xff]  }
 0xfd5   : > { %12050 = vmatprep.subr.bf16.mxu0 %v13394_v57 }
0x107a   : > { %v6738_v31 = vpop.f32.mrb[144].mxu1 }
0x107b   : > { %v6744_v34 = vadd.f32 %v6738_v31, %v14801_v33  ;;  %v11944_v30 = vpop.f32.mrb[145].mxu1  ;;  %v12741_v33 = vld [vmem:[#allocation13 + $0x1a8] sm:$0xff]   ;;  %v12753_v31 = vld [vmem:[#allocation13 + $0x220] sm:$0xff]  }
0x107c   : > { %v6741_v48 = vpop.f32.mrb[146].mxu1  ;;  %v12755_v30 = vld [vmem:[#allocation13 + $0x230] sm:$0xff]  }
0x107d   : > { %v11945_v54 = vpop.f32.mrb[147].mxu1  ;;  %v12756_v48 = vld [vmem:[#allocation13 + $0x238] sm:$0xff]  }
0x1082   : > { %v6890_v29 = vpop.f32.mrb[112].mxu0  ;;  %v6936_v21 = vpop.f32.mrb[148].mxu1 }
0x1083   : > { %v14834_v20 = vadd.f32 %v6890_v29, %v6744_v34  ;;  %v6942_v56 = vpack.c.bf16 %v6936_v21, %v6936_v21  ;;  %v11976_v49 = vpop.f32.mrb[149].mxu1  ;;  %v11970_v51 = vpop.f32.mrb[113].mxu0  ;;  %v12754_v34 = vld [vmem:[#allocation13 + $0x228] sm:$0xff]  }
0x1084   : > { %v6939_v52 = vpop.f32.mrb[150].mxu1  ;;  %v6893_v58 = vpop.f32.mrb[114].mxu0 }
0x1085   : > { %v11977_v61 = vpop.f32.mrb[151].mxu1  ;;  %11995 = vmatmul.mubr.bf16.vlgmr.msra.gmra.mrb[152].mxu1 %v6942_v56  ;;  %v11971_v59 = vpop.f32.mrb[115].mxu0 }
0x1086   : > { %12025 = vmatpush3.bf16.msra.mxu1 %v14750_v36  ;;  %12026 = vmatprep.mubr.msk.bf16.mxu1 %vm13395_vm1, %v13394_v57 }
0x1087   : > { %12030 = vmatprep.subr.bf16.mxu1 %v13394_v57 }
0x108a   : > { %v7088_v60 = vpop.f32.mrb[116].mxu0 }
0x108b   : > { %v7094_v0 = vpack.c.bf16 %v7088_v60, %v7088_v60  ;;  %v12002_v3 = vpop.f32.mrb[117].mxu0 }
0x108c   : > { %v7091_v4 = vpop.f32.mrb[118].mxu0  ;;  %v12757_v3 = vld [vmem:[#allocation14] ss:$8 sps:$4 sm:$0xff]  }
0x108d   : > { %12021 = vmatmul.mubr.bf16.vlgmr.msra.gmra.mrb[120].mxu0 %v7094_v0  ;;  %12027 = vmatmul.mubr.msk.bf16.vlgmr.msra.gmra.mrb[156].mxu1 %vm6293_vm2, %v7202_v62  ;;  %v12003_v5 = vpop.f32.mrb[119].mxu0  ;;  %v12759_v4 = vld [vmem:[#allocation14 + $0x4] ss:$8 sps:$4 sm:$0xff]  }
0x108e   : > { %12051 = vmatpush3.bf16.msra.mxu0 %v14750_v36  ;;  %12052 = vmatprep.mubr.msk.bf16.mxu0 %vm13395_vm1, %v13394_v57  ;;  %v12762_v5 = vld [vmem:[#allocation14 + $0x14] ss:$8 sps:$4 sm:$0xff]  }
0x108f   : > { %12031 = vmatpush3.bf16.msra.mxu1 %v12733_v2  ;;  %12056 = vmatprep.subr.bf16.mxu0 %v13394_v57 }
0x1090   : > { %12032 = vmatprep.subr.bf16.mxu1 %v13394_v57  ;;  %12046 = vmatprep.mubr.msk.bf16.mxu1 %vm13395_vm1, %v13394_v57 }
0x1093   : > { %12033 = vmatpush3.bf16.msra.mxu1 %v12734_v8  ;;  %v12760_v8 = vld [vmem:[#allocation14 + $0x10] ss:$8 sps:$4 sm:$0xff]  }
0x1094   : > { %12034 = vmatprep.subr.bf16.mxu1 %v13394_v57 }
0x1095   : > { %12053 = vmatmul.mubr.msk.bf16.vlgmr.msra.gmra.mrb[124].mxu0 %vm6293_vm2, %v7354_v11  ;;  %v12768_v11 = vld [vmem:[#allocation14 + $0x24] ss:$8 sps:$4 sm:$0xff]  }
0x1096   : > { %12057 = vmatpush3.bf16.msra.mxu0 %v12736_v27  ;;  %12072 = vmatprep.mubr.msk.bf16.mxu0 %vm13395_vm1, %v13394_v57  ;;  %v12766_v27 = vld [vmem:[#allocation14 + $0x20] ss:$8 sps:$4 sm:$0xff]  }
0x1097   : > { %12035 = vmatpush3.bf16.msra.mxu1 %v12735_v23  ;;  %12058 = vmatprep.subr.bf16.mxu0 %v13394_v57  ;;  %v12774_v23 = vld [vmem:[#allocation14 + $0x34] ss:$8 sps:$4 sm:$0xff]  }
0x1098   : > { %12036 = vmatprep.subr.bf16.mxu1 %v13394_v57 }
0x109a   : > { %12059 = vmatpush3.bf16.msra.mxu0 %v12738_v28  ;;  %v12772_v28 = vld [vmem:[#allocation14 + $0x30] ss:$8 sps:$4 sm:$0xff]  }
0x109b   : > { %12037 = vmatpush3.bf16.msra.mxu1 %v12737_v32  ;;  %12060 = vmatprep.subr.bf16.mxu0 %v13394_v57  ;;  %v12780_v32 = vld [vmem:[#allocation14 + $0x44] ss:$8 sps:$4 sm:$0xff]  }
0x109c   : > { %12038 = vmatprep.subr.bf16.mxu1 %v13394_v57 }
0x109e   : > { %12061 = vmatpush3.bf16.msra.mxu0 %v12740_v38  ;;  %v12778_v38 = vld [vmem:[#allocation14 + $0x40] ss:$8 sps:$4 sm:$0xff]  }
0x109f   : > { %12039 = vmatpush3.bf16.msra.mxu1 %v12739_v46  ;;  %12062 = vmatprep.subr.bf16.mxu0 %v13394_v57  ;;  %v12786_v46 = vld [vmem:[#allocation14 + $0x54] ss:$8 sps:$4 sm:$0xff]  }
0x10a0   : > { %12040 = vmatprep.subr.bf16.mxu1 %v13394_v57 }
0x10a2   : > { %12063 = vmatpush3.bf16.msra.mxu0 %v12742_v6  ;;  %v12792_v6 = vld [vmem:[#allocation14 + $0x64] ss:$8 sps:$4 sm:$0xff]  }
0x10a3   : > { %12041 = vmatpush3.bf16.msra.mxu1 %v12741_v33  ;;  %12064 = vmatprep.subr.bf16.mxu0 %v13394_v57  ;;  %v12784_v33 = vld [vmem:[#allocation14 + $0x50] ss:$8 sps:$4 sm:$0xff]  }
0x10a4   : > { %12042 = vmatprep.subr.bf16.mxu1 %v13394_v57 }
0x10a6   : > { %12065 = vmatpush3.bf16.msra.mxu0 %v12744_v12  ;;  %v12798_v12 = vld [vmem:[#allocation14 + $0x74] ss:$8 sps:$4 sm:$0xff]  }
0x10a7   : > { %12043 = vmatpush3.bf16.msra.mxu1 %v12743_v10  ;;  %12066 = vmatprep.subr.bf16.mxu0 %v13394_v57  ;;  %v12790_v10 = vld [vmem:[#allocation14 + $0x60] ss:$8 sps:$4 sm:$0xff]  }
0x10a8   : > { %12044 = vmatprep.subr.bf16.mxu1 %v13394_v57 }
0x10aa   : > { %12067 = vmatpush3.bf16.msra.mxu0 %v12746_v14 }
0x10ab   : > { %12045 = vmatpush3.bf16.msra.mxu1 %v12745_v13  ;;  %12068 = vmatprep.subr.bf16.mxu0 %v13394_v57  ;;  %v12796_v13 = vld [vmem:[#allocation14 + $0x70] ss:$8 sps:$4 sm:$0xff]  }
0x10ac   : > { %12076 = vmatprep.subr.bf16.mxu1 %v13394_v57 }
0x10ae   : > { %12069 = vmatpush3.bf16.msra.mxu0 %v12747_v16  ;;  %v10082_v16 = vld [vmem:[%s15189_s2] ss:$0 sm:$0xff]  ;;  %s9364_s2 = sand.u32 1, %s13513_s0  }
0x10af   : > { %12070 = vmatprep.subr.bf16.mxu0 %v13394_v57  ;;  %s15000_s6 = scalar_lea.sflag [#allocation18], %s9364_s2 }
0x10b2   : > { %12071 = vmatpush3.bf16.msra.mxu0 %v12748_v18 }
0x10b3   : > { %12102 = vmatprep.subr.bf16.mxu0 %v13394_v57 }
0x1158   : > { %v7042_v19 = vpop.f32.mrb[152].mxu1 }
0x1159   : > { %v7048_v41 = vadd.f32 %v7042_v19, %v14834_v20  ;;  %v11996_v22 = vpop.f32.mrb[153].mxu1 }
0x115a   : > { %v7045_v24 = vpop.f32.mrb[154].mxu1 }
0x115b   : > { %v11997_v45 = vpop.f32.mrb[155].mxu1 }
0x1160   : > { %v7194_v26 = vpop.f32.mrb[120].mxu0  ;;  %v7240_v25 = vpop.f32.mrb[156].mxu1 }
0x1161   : > { %v7200_v37 = vadd.f32 %v7194_v26, %v7048_v41  ;;  %v7246_v39 = vpack.c.bf16 %v7240_v25, %v7240_v25  ;;  %v12028_v40 = vpop.f32.mrb[157].mxu1  ;;  %v12022_v35 = vpop.f32.mrb[121].mxu0 }
0x1162   : > { %v7243_v42 = vpop.f32.mrb[158].mxu1  ;;  %v7197_v43 = vpop.f32.mrb[122].mxu0  ;;  %v10084_v40 = vld [vmem:[%s15190_s15 + $0x4] sm:$0xf] }
0x1163   : > { %v12029_v44 = vpop.f32.mrb[159].mxu1  ;;  %12047 = vmatmul.mubr.bf16.vlgmr.msra.gmra.mrb[160].mxu1 %v7246_v39  ;;  %v12023_v47 = vpop.f32.mrb[123].mxu0  ;;  %v12765_v39 = vld [vmem:[#allocation14 + $0x84] ss:$8 sps:$4 sm:$0xff]   ;;  %v12763_v35 = vld [vmem:[#allocation14 + $0x80] ss:$8 sps:$4 sm:$0xff]  }
0x1164   : > { %12077 = vmatpush3.bf16.msra.mxu1 %v14750_v36  ;;  %12078 = vmatprep.mubr.msk.bf16.mxu1 %vm13395_vm1, %v13394_v57  ;;  %v12751_v36 = vld [vmem:[#allocation13 + $0x210] sm:$0xff]   ;;  %v12777_v44 = vld [vmem:[#allocation14 + $0xa4] ss:$8 sps:$4 sm:$0xff]   ;;  %v12775_v47 = vld [vmem:[#allocation14 + $0xa0] ss:$8 sps:$4 sm:$0xff]  }
0x1165   : > { %12082 = vmatprep.subr.bf16.mxu1 %v13394_v57  ;;  %v12771_v42 = vld [vmem:[#allocation14 + $0x94] ss:$8 sps:$4 sm:$0xff]   ;;  %v12769_v43 = vld [vmem:[#allocation14 + $0x90] ss:$8 sps:$4 sm:$0xff]  }
0x1168   : > { %v7392_v50 = vpop.f32.mrb[124].mxu0 }
0x1169   : > { %v7398_v63 = vpack.c.bf16 %v7392_v50, %v7392_v50  ;;  %v12054_v1 = vpop.f32.mrb[125].mxu0  ;;  %v12783_v50 = vld [vmem:[#allocation14 + $0xb4] ss:$8 sps:$4 sm:$0xff]  }
0x116a   : > { %v7395_v7 = vpop.f32.mrb[126].mxu0  ;;  %v12795_v1 = vld [vmem:[#allocation14 + $0xd4] ss:$8 sps:$4 sm:$0xff]  }
0x116b   : > { %12073 = vmatmul.mubr.bf16.vlgmr.msra.gmra.mrb[128].mxu0 %v7398_v63  ;;  %12079 = vmatmul.mubr.msk.bf16.vlgmr.msra.gmra.mrb[164].mxu1 %vm6293_vm2, %v7506_v53  ;;  %v12055_v9 = vpop.f32.mrb[127].mxu0  ;;  %v12781_v53 = vld [vmem:[#allocation14 + $0xb0] ss:$8 sps:$4 sm:$0xff]   ;;  %v12787_v63 = vld [vmem:[#allocation14 + $0xc0] ss:$8 sps:$4 sm:$0xff]  }
0x116c   : > { %12083 = vmatpush3.bf16.msra.mxu1 %v12749_v55  ;;  %12098 = vmatprep.mubr.msk.bf16.mxu1 %vm13395_vm1, %v13394_v57  ;;  %v12789_v55 = vld [vmem:[#allocation14 + $0xc4] ss:$8 sps:$4 sm:$0xff]   ;;  %v12793_v7 = vld [vmem:[#allocation14 + $0xd0] ss:$8 sps:$4 sm:$0xff]   ;;  %v12799_v9 = vld [vmem:[#allocation14 + $0xe0] ss:$8 sps:$4 sm:$0xff]  }
0x116d   : > { %12084 = vmatprep.subr.bf16.mxu1 %v13394_v57  ;;  %12104 = vmatprep.mubr.msk.bf16.mxu0 %vm13395_vm1, %v13394_v57 }
0x1170   : > { %12085 = vmatpush3.bf16.msra.mxu1 %v12750_v15  ;;  %v12801_v15 = vld [vmem:[#allocation14 + $0xe4] ss:$8 sps:$4 sm:$0xff]  }
0x1171   : > { %12086 = vmatprep.subr.bf16.mxu1 %v13394_v57 }
0x1174   : > { %12087 = vmatpush3.bf16.msra.mxu1 %v12751_v36  ;;  %v13396_v36 = vmov 0  }
0x1175   : > { %12088 = vmatprep.subr.bf16.mxu1 %v13394_v57 }
0x1178   : > { %12089 = vmatpush3.bf16.msra.mxu1 %v12752_v17  ;;  %v12802_v17 = vld [vmem:[#allocation14 + $0xf0] ss:$8 sps:$4 sm:$0xff]  }
0x1179   : > { %12090 = vmatprep.subr.bf16.mxu1 %v13394_v57 }
0x117c   : > { %12091 = vmatpush3.bf16.msra.mxu1 %v12753_v31  ;;  %v12804_v31 = vld [vmem:[#allocation14 + $0xf4] ss:$8 sps:$4 sm:$0xff]  }
0x117d   : > { %12092 = vmatprep.subr.bf16.mxu1 %v13394_v57 }
0x1180   : > { %12093 = vmatpush3.bf16.msra.mxu1 %v12754_v34 }
0x1181   : > { %12094 = vmatprep.subr.bf16.mxu1 %v13394_v57 }
0x1184   : > { %12095 = vmatpush3.bf16.msra.mxu1 %v12755_v30 }
0x1185   : > { %12096 = vmatprep.subr.bf16.mxu1 %v13394_v57 }
0x1188   : > { %12097 = vmatpush3.bf16.msra.mxu1 %v12756_v48 }
0x1189   : > { %7998 = vmatprep.subr.bf16.mxu1 %v12759_v4  ;;  %v12814_v4 = vld [vmem:[#allocation14 + $0x1a0] ss:$8 sps:$4 sm:$0xff]  }
0x1236   : > { %v7346_v54 = vpop.f32.mrb[160].mxu1 }
0x1237   : > { %v7352_v29 = vadd.f32 %v7346_v54, %v7200_v37  ;;  %v12048_v21 = vpop.f32.mrb[161].mxu1  ;;  %v7668_v37 = vld [vmem:[%s15190_s15] sm:$0xf]  ;;  %v12807_v54 = vld [vmem:[#allocation14 + $0x184] ss:$8 sps:$4 sm:$0xff]  }
0x1238   : > { %v7349_v20 = vpop.f32.mrb[162].mxu1 }
0x1239   : > { %v12049_v56 = vpop.f32.mrb[163].mxu1 }
0x123a   : > { %v10136_v56 = vld [vmem:[%s15190_s15 + $0xc] sm:$0xf] }
0x123e   : > { %v7498_v49 = vpop.f32.mrb[128].mxu0  ;;  %v7544_v51 = vpop.f32.mrb[164].mxu1 }
0x123f   : > { %v7504_v52 = vadd.f32 %v7498_v49, %v7352_v29  ;;  %v7550_v58 = vpack.c.bf16 %v7544_v51, %v7544_v51  ;;  %v12080_v61 = vpop.f32.mrb[165].mxu1  ;;  %v12074_v59 = vpop.f32.mrb[129].mxu0 }
0x1240   : > { %v7547_v60 = vpop.f32.mrb[166].mxu1  ;;  %v7501_v62 = vpop.f32.mrb[130].mxu0  ;;  %v12810_v59 = vld [vmem:[#allocation14 + $0x194] ss:$8 sps:$4 sm:$0xff]  }
0x1241   : > { %v12081_v0 = vpop.f32.mrb[167].mxu1  ;;  %12099 = vmatmul.mubr.bf16.vlgmr.msra.gmra.mrb[168].mxu1 %v7550_v58  ;;  %v12075_v2 = vpop.f32.mrb[131].mxu0  ;;  %v12813_v58 = vld [vmem:[#allocation14 + $0x104] ss:$8 sps:$4 sm:$0xff]   ;;  %v12808_v62 = vld [vmem:[#allocation14 + $0x190] ss:$8 sps:$4 sm:$0xff]  }
0x1242   : > { %7999 = vmatpush1.bf16.msra.mxu1 %v12757_v3  ;;  %8030 = vmatprep.mubr.bf16.mxu1 %v13396_v36  ;;  %v12816_v0 = vld [vmem:[#allocation14 + $0x1a4] ss:$8 sps:$4 sm:$0xff]   ;;  %v12811_v3 = vld [vmem:[#allocation14 + $0x100] ss:$8 sps:$4 sm:$0xff]  }
0x1243   : > { %8000 = vmatprep.subr.bf16.mxu1 %v12762_v5  ;;  %v10118_v2 = vld [vmem:[%s15190_s15 + $0x8] sm:$0xf]  ;;  %v12819_v5 = vld [vmem:[#allocation14 + $0x114] ss:$8 sps:$4 sm:$0xff]  }
0x1246   : > { %8001 = vmatpush1.bf16.msra.mxu1 %v12760_v8  ;;  %v12822_v8 = vld [vmem:[#allocation14 + $0x1b4] ss:$8 sps:$4 sm:$0xff]  }
0x1247   : > { %8002 = vmatprep.subr.bf16.mxu1 %v12768_v11  ;;  %v12817_v11 = vld [vmem:[#allocation14 + $0x110] ss:$8 sps:$4 sm:$0xff]  }
0x124a   : > { %8003 = vmatpush1.bf16.msra.mxu1 %v12766_v27  ;;  %v12820_v27 = vld [vmem:[#allocation14 + $0x1b0] ss:$8 sps:$4 sm:$0xff]  }
0x124b   : > { %8004 = vmatprep.subr.bf16.mxu1 %v12774_v23  ;;  %v12825_v23 = vld [vmem:[#allocation14 + $0x124] ss:$8 sps:$4 sm:$0xff]  }
0x124e   : > { %8005 = vmatpush1.bf16.msra.mxu1 %v12772_v28  ;;  %v12828_v28 = vld [vmem:[#allocation14 + $0x1c4] ss:$8 sps:$4 sm:$0xff]  }
0x124f   : > { %8006 = vmatprep.subr.bf16.mxu1 %v12780_v32  ;;  %v12823_v32 = vld [vmem:[#allocation14 + $0x120] ss:$8 sps:$4 sm:$0xff]  }
0x1252   : > { %8007 = vmatpush1.bf16.msra.mxu1 %v12778_v38  ;;  %v12826_v38 = vld [vmem:[#allocation14 + $0x1c0] ss:$8 sps:$4 sm:$0xff]  }
0x1253   : > { %8008 = vmatprep.subr.bf16.mxu1 %v12786_v46  ;;  %v12831_v46 = vld [vmem:[#allocation14 + $0x134] ss:$8 sps:$4 sm:$0xff]  }
0x1256   : > { %8009 = vmatpush1.bf16.msra.mxu1 %v12784_v33  ;;  %v12834_v33 = vld [vmem:[#allocation14 + $0x1d4] ss:$8 sps:$4 sm:$0xff]  }
0x1257   : > { %8010 = vmatprep.subr.bf16.mxu1 %v12792_v6  ;;  %v12829_v6 = vld [vmem:[#allocation14 + $0x130] ss:$8 sps:$4 sm:$0xff]  }
0x125a   : > { %8011 = vmatpush1.bf16.msra.mxu1 %v12790_v10  ;;  %v12832_v10 = vld [vmem:[#allocation14 + $0x1d0] ss:$8 sps:$4 sm:$0xff]  }
0x125b   : > { %8012 = vmatprep.subr.bf16.mxu1 %v12798_v12  ;;  %v12835_v12 = vld [vmem:[#allocation14 + $0x140] ss:$8 sps:$4 sm:$0xff]  }
0x125e   : > { %8013 = vmatpush1.bf16.msra.mxu1 %v12796_v13  ;;  %v12837_v13 = vld [vmem:[#allocation14 + $0x144] ss:$8 sps:$4 sm:$0xff]  }
0x125f   : > { %12120 = vmatprep.subr.bf16.mxu1 %v13394_v57 }
0x1314   : > { %v7650_v14 = vpop.f32.mrb[168].mxu1 }
0x1315   : > { %v7656_v18 = vadd.f32 %v7650_v14, %v7504_v52  ;;  %v12100_v19 = vpop.f32.mrb[169].mxu1  ;;  %v12805_v52 = vld [vmem:[#allocation14 + $0x180] ss:$8 sps:$4 sm:$0xff]  }
0x1316   : > { %v7653_v41 = vpop.f32.mrb[170].mxu1  ;;  %v12838_v14 = vld [vmem:[#allocation14 + $0x1e0] ss:$8 sps:$4 sm:$0xff]   ;;  %v12843_v19 = vld [vmem:[#allocation14 + $0x154] ss:$8 sps:$4 sm:$0xff]  }
0x1317   : > { %v7664_v22 = vadd.f32 %v10082_v16, %v7656_v18  ;;  %v12101_v24 = vpop.f32.mrb[171].mxu1  ;;  %v12840_v16 = vld [vmem:[#allocation14 + $0x1e4] ss:$8 sps:$4 sm:$0xff]   ;;  %v12841_v18 = vld [vmem:[#allocation14 + $0x150] ss:$8 sps:$4 sm:$0xff]  }
0x1318   : > { %v12844_v41 = vld [vmem:[#allocation14 + $0x1f0] ss:$8 sps:$4 sm:$0xff]   ;;  %v12849_v24 = vld [vmem:[#allocation14 + $0x164] ss:$8 sps:$4 sm:$0xff]  }
0x1319   : > { %v7665_v45 = vmax.f32 %v7664_v22, 0.0  ;;  %v12846_v22 = vld [vmem:[#allocation14 + $0x1f4] ss:$8 sps:$4 sm:$0xff]  }
0x131b   : > { %v7667_v26 = vpack.c.bf16 %v7665_v45, %v7665_v45  ;;  %7666 = vst [vmem:[%s14888_s29] sm:$0xff] %v7665_v45  ;;  %v12847_v45 = vld [vmem:[#allocation14 + $0x160] ss:$8 sps:$4 sm:$0xff]  }
0x131d   : > { %v14891_v25 = vsel %vm7673_vm3, %v7667_v26, 0  ;;  %v12850_v26 = vld [vmem:[#allocation14 + $0x170] ss:$8 sps:$4 sm:$0xff]  }
0x131e   : > { %12103 = vmatpush3.bf16.msra.mxu0 %v14891_v25 }
0x131f   : > { %12108 = vmatprep.subr.bf16.mxu0 %v13394_v57 }
0x1321   : > { %12105 = vmatmul.mubr.msk.bf16.vlgmr.msra.gmra.mrb[132].mxu0 %vm7669_vm4, %v7668_v37  ;;  %v12852_v37 = vld [vmem:[#allocation14 + $0x174] ss:$8 sps:$4 sm:$0xff]  }
0x1322   : > { %12109 = vmatpush3.bf16.msra.mxu0 %v14891_v25  ;;  %12110 = vmatprep.mubr.msk.bf16.mxu0 %vm13395_vm1, %v13394_v57 }
0x1323   : > { %7877 = vmatprep.subr.bf16.mxu0 %v12765_v39 }
0x1329   : > { %12111 = vmatmul.mubr.msk.bf16.vlgmr.msra.gmra.mrb[136].mxu0 %vm7669_vm4, %v10084_v40 }
0x132a   : > { %7878 = vmatpush1.bf16.msra.mxu0 %v12763_v35  ;;  %7909 = vmatprep.mubr.bf16.mxu0 %v13396_v36 }
0x132b   : > { %7879 = vmatprep.subr.bf16.mxu0 %v12771_v42 }
0x132e   : > { %7880 = vmatpush1.bf16.msra.mxu0 %v12769_v43 }
0x132f   : > { %7881 = vmatprep.subr.bf16.mxu0 %v12777_v44 }
0x1332   : > { %7882 = vmatpush1.bf16.msra.mxu0 %v12775_v47 }
0x1333   : > { %7883 = vmatprep.subr.bf16.mxu0 %v12783_v50 }
0x1336   : > { %7884 = vmatpush1.bf16.msra.mxu0 %v12781_v53 }
0x1337   : > { %7885 = vmatprep.subr.bf16.mxu0 %v12789_v55  ;;  %v12855_v55 = vld [vmem:[#allocation14 + $0x284] ss:$8 sps:$4 sm:$0xff]  }
0x133a   : > { %7886 = vmatpush1.bf16.msra.mxu0 %v12787_v63 }
0x133b   : > { %7887 = vmatprep.subr.bf16.mxu0 %v12795_v1 }
0x133e   : > { %7888 = vmatpush1.bf16.msra.mxu0 %v12793_v7 }
0x133f   : > { %7889 = vmatprep.subr.bf16.mxu0 %v12801_v15 }
0x1342   : > { %7890 = vmatpush1.bf16.msra.mxu0 %v12799_v9 }
0x1343   : > { %7891 = vmatprep.subr.bf16.mxu0 %v12804_v31 }
0x1346   : > { %7892 = vmatpush1.bf16.msra.mxu0 %v12802_v17 }
0x1347   : > { %12114 = vmatprep.subr.bf16.mxu0 %v13394_v57 }
0x13f4   : > { %v7711_v34 = vpop.f32.mrb[132].mxu0 }
0x13f5   : > { %v7717_v30 = vpack.c.bf16 %v7711_v34, %v7711_v34  ;;  %v12106_v48 = vpop.f32.mrb[133].mxu0  ;;  %v10172_v34 = vld [vmem:[%s15190_s15 + $0x14] sm:$0xf] }
0x13f6   : > { %v7714_v29 = vpop.f32.mrb[134].mxu0 }
0x13f7   : > { %8031 = vmatmul.mubr.bf16.vlgmr.msra.gmra.mrb[172].mxu1 %v7717_v30  ;;  %v12107_v21 = vpop.f32.mrb[135].mxu0  ;;  %v12861_v29 = vld [vmem:[#allocation14 + $0x204] ss:$8 sps:$4 sm:$0xff]  }
0x13f8   : > { %12121 = vmatpush3.bf16.msra.mxu1 %v14891_v25  ;;  %12122 = vmatprep.mubr.msk.bf16.mxu1 %vm13395_vm1, %v13394_v57 }
0x13f9   : > { %8368 = vmatprep.subr.bf16.mxu1 %v12807_v54  ;;  %v12853_v54 = vld [vmem:[#allocation14 + $0x280] ss:$8 sps:$4 sm:$0xff]  }
0x13fc   : > { %v7773_v20 = vpop.f32.mrb[136].mxu0 }
0x13fd   : > { %v7779_v49 = vpack.c.bf16 %v7773_v20, %v7773_v20  ;;  %v12112_v51 = vpop.f32.mrb[137].mxu0  ;;  %v12858_v20 = vld [vmem:[#allocation14 + $0x294] ss:$8 sps:$4 sm:$0xff]  }
0x13fe   : > { %v7776_v61 = vpop.f32.mrb[138].mxu0  ;;  %v12864_v51 = vld [vmem:[#allocation14 + $0x2a4] ss:$8 sps:$4 sm:$0xff]  }
0x13ff   : > { %7910 = vmatmul.mubr.bf16.vlgmr.msra.gmra.mrb[140].mxu0 %v7779_v49  ;;  %12123 = vmatmul.mubr.msk.bf16.vlgmr.msra.gmra.mrb[176].mxu1 %vm7669_vm4, %v10136_v56  ;;  %v12113_v60 = vpop.f32.mrb[139].mxu0  ;;  %v12856_v49 = vld [vmem:[#allocation14 + $0x290] ss:$8 sps:$4 sm:$0xff]   ;;  %v12862_v61 = vld [vmem:[#allocation14 + $0x2a0] ss:$8 sps:$4 sm:$0xff]  }
0x1400   : > { %12115 = vmatpush3.bf16.msra.mxu0 %v14891_v25  ;;  %12116 = vmatprep.mubr.msk.bf16.mxu0 %vm13395_vm1, %v13394_v57  ;;  %v12870_v60 = vld [vmem:[#allocation14 + $0x2b4] ss:$8 sps:$4 sm:$0xff]  }
0x1401   : > { %8369 = vmatpush1.bf16.msra.mxu1 %v12805_v52  ;;  %8182 = vmatprep.subr.bf16.mxu0 %v12813_v58  ;;  %v10154_v52 = vld [vmem:[%s15190_s15 + $0x10] sm:$0xf]  ;;  %v12859_v58 = vld [vmem:[#allocation14 + $0x200] ss:$8 sps:$4 sm:$0xff]  }
0x1402   : > { %8370 = vmatprep.subr.bf16.mxu1 %v12810_v59  ;;  %8400 = vmatprep.mubr.bf16.mxu1 %v13396_v36  ;;  %v12867_v59 = vld [vmem:[#allocation14 + $0x214] ss:$8 sps:$4 sm:$0xff]  }
0x1405   : > { %8371 = vmatpush1.bf16.msra.mxu1 %v12808_v62  ;;  %v12865_v62 = vld [vmem:[#allocation14 + $0x210] ss:$8 sps:$4 sm:$0xff]  }
0x1406   : > { %8372 = vmatprep.subr.bf16.mxu1 %v12816_v0  ;;  %v12868_v0 = vld [vmem:[#allocation14 + $0x2b0] ss:$8 sps:$4 sm:$0xff]  }
0x1407   : > { %12117 = vmatmul.mubr.msk.bf16.vlgmr.msra.gmra.mrb[144].mxu0 %vm7669_vm4, %v10118_v2  ;;  %v12873_v2 = vld [vmem:[#allocation14 + $0x224] ss:$8 sps:$4 sm:$0xff]  }
0x1408   : > { %8183 = vmatpush1.bf16.msra.mxu0 %v12811_v3  ;;  %8214 = vmatprep.mubr.bf16.mxu0 %v13396_v36  ;;  %v12876_v3 = vld [vmem:[#allocation14 + $0x2c4] ss:$8 sps:$4 sm:$0xff]  }
0x1409   : > { %8373 = vmatpush1.bf16.msra.mxu1 %v12814_v4  ;;  %8184 = vmatprep.subr.bf16.mxu0 %v12819_v5  ;;  %v12871_v4 = vld [vmem:[#allocation14 + $0x220] ss:$8 sps:$4 sm:$0xff]  }
0x140a   : > { %8374 = vmatprep.subr.bf16.mxu1 %v12822_v8  ;;  %v12874_v5 = vld [vmem:[#allocation14 + $0x2c0] ss:$8 sps:$4 sm:$0xff]   ;;  %v12879_v8 = vld [vmem:[#allocation14 + $0x234] ss:$8 sps:$4 sm:$0xff]  }
0x140c   : > { %8185 = vmatpush1.bf16.msra.mxu0 %v12817_v11  ;;  %v12882_v11 = vld [vmem:[#allocation14 + $0x2d4] ss:$8 sps:$4 sm:$0xff]  }
0x140d   : > { %8375 = vmatpush1.bf16.msra.mxu1 %v12820_v27  ;;  %8186 = vmatprep.subr.bf16.mxu0 %v12825_v23  ;;  %v12877_v27 = vld [vmem:[#allocation14 + $0x230] ss:$8 sps:$4 sm:$0xff]  }
0x140e   : > { %8376 = vmatprep.subr.bf16.mxu1 %v12828_v28  ;;  %v12880_v23 = vld [vmem:[#allocation14 + $0x2d0] ss:$8 sps:$4 sm:$0xff]   ;;  %v12885_v28 = vld [vmem:[#allocation14 + $0x244] ss:$8 sps:$4 sm:$0xff]  }
0x1410   : > { %8187 = vmatpush1.bf16.msra.mxu0 %v12823_v32  ;;  %v12888_v32 = vld [vmem:[#allocation14 + $0x2e4] ss:$8 sps:$4 sm:$0xff]  }
0x1411   : > { %8377 = vmatpush1.bf16.msra.mxu1 %v12826_v38  ;;  %8188 = vmatprep.subr.bf16.mxu0 %v12831_v46  ;;  %v12883_v38 = vld [vmem:[#allocation14 + $0x240] ss:$8 sps:$4 sm:$0xff]  }
0x1412   : > { %8378 = vmatprep.subr.bf16.mxu1 %v12834_v33  ;;  %v12886_v46 = vld [vmem:[#allocation14 + $0x2e0] ss:$8 sps:$4 sm:$0xff]   ;;  %v12889_v33 = vld [vmem:[#allocation14 + $0x250] ss:$8 sps:$4 sm:$0xff]  }
0x1414   : > { %8189 = vmatpush1.bf16.msra.mxu0 %v12829_v6  ;;  %v12891_v6 = vld [vmem:[#allocation14 + $0x254] ss:$8 sps:$4 sm:$0xff]  }
0x1415   : > { %8379 = vmatpush1.bf16.msra.mxu1 %v12832_v10  ;;  %8190 = vmatprep.subr.bf16.mxu0 %v12837_v13  ;;  %v12892_v10 = vld [vmem:[#allocation14 + $0x2f0] ss:$8 sps:$4 sm:$0xff]   ;;  %v12897_v13 = vld [vmem:[#allocation14 + $0x264] ss:$8 sps:$4 sm:$0xff]  }
0x1416   : > { %8380 = vmatprep.subr.bf16.mxu1 %v12840_v16  ;;  %v12898_v16 = vld [vmem:[#allocation14 + $0x270] ss:$8 sps:$4 sm:$0xff]  }
0x1418   : > { %8191 = vmatpush1.bf16.msra.mxu0 %v12835_v12  ;;  %v12894_v12 = vld [vmem:[#allocation14 + $0x2f4] ss:$8 sps:$4 sm:$0xff]  }
0x1419   : > { %8381 = vmatpush1.bf16.msra.mxu1 %v12838_v14  ;;  %8192 = vmatprep.subr.bf16.mxu0 %v12843_v19  ;;  %v12895_v14 = vld [vmem:[#allocation14 + $0x260] ss:$8 sps:$4 sm:$0xff]  }
0x141a   : > { %8382 = vmatprep.subr.bf16.mxu1 %v12846_v22 }
0x141c   : > { %8193 = vmatpush1.bf16.msra.mxu0 %v12841_v18  ;;  %v12900_v18 = vld [vmem:[#allocation14 + $0x274] ss:$8 sps:$4 sm:$0xff]  }
0x141d   : > { %8383 = vmatpush1.bf16.msra.mxu1 %v12844_v41  ;;  %8194 = vmatprep.subr.bf16.mxu0 %v12849_v24 }
0x141e   : > { %12132 = vmatprep.subr.bf16.mxu1 %v13394_v57 }
0x1420   : > { %8195 = vmatpush1.bf16.msra.mxu0 %v12847_v45 }
0x1421   : > { %8196 = vmatprep.subr.bf16.mxu0 %v12852_v37 }
0x1424   : > { %8197 = vmatpush1.bf16.msra.mxu0 %v12850_v26 }
0x1425   : > { %12126 = vmatprep.subr.bf16.mxu0 %v13394_v57 }
0x14ca   : > { %v8032_v39 = vpop.f32.mrb[172].mxu1 }
0x14cb   : > { %v8034_v40 = vpop.f32.mrb[173].mxu1 }
0x14cc   : > { %v8036_v35 = vpop.f32.mrb[174].mxu1 }
0x14cd   : > { %v8037_v42 = vpop.f32.mrb[175].mxu1  ;;  %v12906_v35 = vld [vmem:[#allocation14 + $0x384] ss:$8 sps:$4 sm:$0xff]  }
0x14d2   : > { %v7911_v43 = vpop.f32.mrb[140].mxu0  ;;  %v8264_v44 = vpop.f32.mrb[176].mxu1 }
0x14d3   : > { %v14927_v47 = vadd.f32 %v8032_v39, %v7911_v43  ;;  %v8270_v50 = vpack.c.bf16 %v8264_v44, %v8264_v44  ;;  %v7913_v53 = vpop.f32.mrb[141].mxu0  ;;  %v12124_v63 = vpop.f32.mrb[177].mxu1 }
0x14d4   : > { %v14929_v1 = vadd.f32 %v8034_v40, %v7913_v53  ;;  %v7915_v7 = vpop.f32.mrb[142].mxu0  ;;  %v8267_v9 = vpop.f32.mrb[178].mxu1 }
0x14d5   : > { %8401 = vmatmul.mubr.bf16.vlgmr.msra.gmra.mrb[180].mxu1 %v8270_v50  ;;  %v7916_v15 = vpop.f32.mrb[143].mxu0  ;;  %v12125_v17 = vpop.f32.mrb[179].mxu1 }
0x14d6   : > { %12133 = vmatpush3.bf16.msra.mxu1 %v14891_v25  ;;  %12134 = vmatprep.mubr.msk.bf16.mxu1 %vm13395_vm1, %v13394_v57  ;;  %v12903_v17 = vld [vmem:[#allocation14 + $0x304] ss:$8 sps:$4 sm:$0xff]  }
0x14d7   : > { %8740 = vmatprep.subr.bf16.mxu1 %v12855_v55 }
0x14da   : > { %v8078_v31 = vpop.f32.mrb[144].mxu0 }
0x14db   : > { %v8084_v30 = vpack.c.bf16 %v8078_v31, %v8078_v31  ;;  %v12118_v48 = vpop.f32.mrb[145].mxu0  ;;  %v12904_v31 = vld [vmem:[#allocation14 + $0x380] ss:$8 sps:$4 sm:$0xff]  }
0x14dc   : > { %v8081_v21 = vpop.f32.mrb[146].mxu0 }
0x14dd   : > { %8215 = vmatmul.mubr.bf16.vlgmr.msra.gmra.mrb[148].mxu0 %v8084_v30  ;;  %12135 = vmatmul.mubr.msk.bf16.vlgmr.msra.gmra.mrb[184].mxu1 %vm7669_vm4, %v10172_v34  ;;  %v12119_v56 = vpop.f32.mrb[147].mxu0  ;;  %v12912_v30 = vld [vmem:[#allocation14 + $0x394] ss:$8 sps:$4 sm:$0xff]  }
0x14de   : > { %12127 = vmatpush3.bf16.msra.mxu0 %v14891_v25  ;;  %12128 = vmatprep.mubr.msk.bf16.mxu0 %vm13395_vm1, %v13394_v57  ;;  %v10190_v21 = vld [vmem:[%s15190_s15 + $0x18] sm:$0xf] }
0x14df   : > { %8741 = vmatpush1.bf16.msra.mxu1 %v12853_v54  ;;  %8554 = vmatprep.subr.bf16.mxu0 %v12861_v29  ;;  %v12910_v54 = vld [vmem:[#allocation14 + $0x390] ss:$8 sps:$4 sm:$0xff]   ;;  %v12918_v29 = vld [vmem:[#allocation14 + $0x3a4] ss:$8 sps:$4 sm:$0xff]   ;;  %v12909_v56 = vld [vmem:[#allocation14 + $0x314] ss:$8 sps:$4 sm:$0xff]  }
0x14e0   : > { %8742 = vmatprep.subr.bf16.mxu1 %v12858_v20  ;;  %8772 = vmatprep.mubr.bf16.mxu1 %v13396_v36  ;;  %v12901_v20 = vld [vmem:[#allocation14 + $0x300] ss:$8 sps:$4 sm:$0xff]  }
0x14e3   : > { %8743 = vmatpush1.bf16.msra.mxu1 %v12856_v49  ;;  %v12916_v49 = vld [vmem:[#allocation14 + $0x3a0] ss:$8 sps:$4 sm:$0xff]  }
0x14e4   : > { %8744 = vmatprep.subr.bf16.mxu1 %v12864_v51  ;;  %v12924_v51 = vld [vmem:[#allocation14 + $0x3b4] ss:$8 sps:$4 sm:$0xff]  }
0x14e5   : > { %12129 = vmatmul.mubr.msk.bf16.vlgmr.msra.gmra.mrb[152].mxu0 %vm7669_vm4, %v10154_v52  ;;  %v12907_v52 = vld [vmem:[#allocation14 + $0x310] ss:$8 sps:$4 sm:$0xff]  }
0x14e6   : > { %8555 = vmatpush1.bf16.msra.mxu0 %v12859_v58  ;;  %8586 = vmatprep.mubr.bf16.mxu0 %v13396_v36  ;;  %v12915_v58 = vld [vmem:[#allocation14 + $0x324] ss:$8 sps:$4 sm:$0xff]  }
0x14e7   : > { %8745 = vmatpush1.bf16.msra.mxu1 %v12862_v61  ;;  %8556 = vmatprep.subr.bf16.mxu0 %v12867_v59  ;;  %v12922_v61 = vld [vmem:[#allocation14 + $0x3b0] ss:$8 sps:$4 sm:$0xff]   ;;  %v12930_v59 = vld [vmem:[#allocation14 + $0x3c4] ss:$8 sps:$4 sm:$0xff]  }
0x14e8   : > { %8746 = vmatprep.subr.bf16.mxu1 %v12870_v60  ;;  %v12913_v60 = vld [vmem:[#allocation14 + $0x320] ss:$8 sps:$4 sm:$0xff]  }
0x14ea   : > { %8557 = vmatpush1.bf16.msra.mxu0 %v12865_v62  ;;  %v12921_v62 = vld [vmem:[#allocation14 + $0x334] ss:$8 sps:$4 sm:$0xff]  }
0x14eb   : > { %8747 = vmatpush1.bf16.msra.mxu1 %v12868_v0  ;;  %8558 = vmatprep.subr.bf16.mxu0 %v12873_v2  ;;  %v12928_v0 = vld [vmem:[#allocation14 + $0x3c0] ss:$8 sps:$4 sm:$0xff]   ;;  %v12919_v2 = vld [vmem:[#allocation14 + $0x330] ss:$8 sps:$4 sm:$0xff]  }
0x14ec   : > { %8748 = vmatprep.subr.bf16.mxu1 %v12876_v3  ;;  %v12927_v3 = vld [vmem:[#allocation14 + $0x344] ss:$8 sps:$4 sm:$0xff]  }
0x14ee   : > { %8559 = vmatpush1.bf16.msra.mxu0 %v12871_v4  ;;  %v12925_v4 = vld [vmem:[#allocation14 + $0x340] ss:$8 sps:$4 sm:$0xff]  }
0x14ef   : > { %8749 = vmatpush1.bf16.msra.mxu1 %v12874_v5  ;;  %8560 = vmatprep.subr.bf16.mxu0 %v12879_v8  ;;  %v12933_v5 = vld [vmem:[#allocation14 + $0x354] ss:$8 sps:$4 sm:$0xff]   ;;  %v12931_v8 = vld [vmem:[#allocation14 + $0x350] ss:$8 sps:$4 sm:$0xff]  }
0x14f0   : > { %8750 = vmatprep.subr.bf16.mxu1 %v12882_v11  ;;  %v12936_v11 = vld [vmem:[#allocation14 + $0x3d4] ss:$8 sps:$4 sm:$0xff]  }
0x14f2   : > { %8561 = vmatpush1.bf16.msra.mxu0 %v12877_v27  ;;  %v12934_v27 = vld [vmem:[#allocation14 + $0x3d0] ss:$8 sps:$4 sm:$0xff]  }
0x14f3   : > { %8751 = vmatpush1.bf16.msra.mxu1 %v12880_v23  ;;  %8562 = vmatprep.subr.bf16.mxu0 %v12885_v28  ;;  %v12939_v23 = vld [vmem:[#allocation14 + $0x364] ss:$8 sps:$4 sm:$0xff]   ;;  %v12937_v28 = vld [vmem:[#allocation14 + $0x360] ss:$8 sps:$4 sm:$0xff]  }
0x14f4   : > { %8752 = vmatprep.subr.bf16.mxu1 %v12888_v32  ;;  %v12940_v32 = vld [vmem:[#allocation14 + $0x3e0] ss:$8 sps:$4 sm:$0xff]  }
0x14f6   : > { %8563 = vmatpush1.bf16.msra.mxu0 %v12883_v38  ;;  %v12942_v38 = vld [vmem:[#allocation14 + $0x3e4] ss:$8 sps:$4 sm:$0xff]  }
0x14f7   : > { %8753 = vmatpush1.bf16.msra.mxu1 %v12886_v46  ;;  %8564 = vmatprep.subr.bf16.mxu0 %v12891_v6  ;;  %v12943_v46 = vld [vmem:[#allocation14 + $0x370] ss:$8 sps:$4 sm:$0xff]   ;;  %v12948_v6 = vld [vmem:[#allocation14 + $0x3f4] ss:$8 sps:$4 sm:$0xff]  }
0x14f8   : > { %8754 = vmatprep.subr.bf16.mxu1 %v12894_v12 }
0x14fa   : > { %8565 = vmatpush1.bf16.msra.mxu0 %v12889_v33  ;;  %v12945_v33 = vld [vmem:[#allocation14 + $0x374] ss:$8 sps:$4 sm:$0xff]  }
0x14fb   : > { %8755 = vmatpush1.bf16.msra.mxu1 %v12892_v10  ;;  %8566 = vmatprep.subr.bf16.mxu0 %v12897_v13  ;;  %v12946_v10 = vld [vmem:[#allocation14 + $0x3f0] ss:$8 sps:$4 sm:$0xff]  }
0x14fc   : > { %12144 = vmatprep.subr.bf16.mxu1 %v13394_v57 }
0x14fe   : > { %8567 = vmatpush1.bf16.msra.mxu0 %v12895_v14 }
0x14ff   : > { %8568 = vmatprep.subr.bf16.mxu0 %v12900_v18 }
0x1502   : > { %8569 = vmatpush1.bf16.msra.mxu0 %v12898_v16 }
0x1503   : > { %12138 = vmatprep.subr.bf16.mxu0 %v13394_v57 }
0x15a8   : > { %v8402_v19 = vpop.f32.mrb[180].mxu1 }
0x15a9   : > { %v8404_v41 = vpop.f32.mrb[181].mxu1 }
0x15aa   : > { %v8406_v22 = vpop.f32.mrb[182].mxu1 }
0x15ab   : > { %v8407_v24 = vpop.f32.mrb[183].mxu1 }
0x15b0   : > { %v8216_v45 = vpop.f32.mrb[148].mxu0  ;;  %v8636_v26 = vpop.f32.mrb[184].mxu1 }
0x15b1   : > { %v8223_v37 = vadd.f32 %v8216_v45, %v14927_v47  ;;  %v8642_v39 = vpack.c.bf16 %v8636_v26, %v8636_v26  ;;  %v8218_v40 = vpop.f32.mrb[149].mxu0  ;;  %v12136_v42 = vpop.f32.mrb[185].mxu1 }
0x15b2   : > { %v8224_v43 = vadd.f32 %v8218_v40, %v14929_v1  ;;  %v8220_v44 = vpop.f32.mrb[150].mxu0  ;;  %v8639_v50 = vpop.f32.mrb[186].mxu1  ;;  %v10208_v1 = vld [vmem:[%s15190_s15 + $0x1c] sm:$0xf] }
0x15b3   : > { %8773 = vmatmul.mubr.bf16.vlgmr.msra.gmra.mrb[188].mxu1 %v8642_v39  ;;  %v8221_v53 = vpop.f32.mrb[151].mxu0  ;;  %v14951_v55 = vadd.f32 %v8402_v19, %v8223_v37  ;;  %v12137_v63 = vpop.f32.mrb[187].mxu1 }
0x15b4   : > { %12145 = vmatpush3.bf16.msra.mxu1 %v14891_v25  ;;  %12146 = vmatprep.mubr.msk.bf16.mxu1 %vm13395_vm1, %v13394_v57  ;;  %v14956_v7 = vadd.f32 %v8404_v41, %v8224_v43  ;;  %v12951_v63 = vld [vmem:[#allocation14 + $0x404] ss:$8 sps:$4 sm:$0xff]  }
0x15b5   : > { %9112 = vmatprep.subr.bf16.mxu1 %v12906_v35 }
0x15b8   : > { %v8450_v47 = vpop.f32.mrb[152].mxu0 }
0x15b9   : > { %v8456_v9 = vpack.c.bf16 %v8450_v47, %v8450_v47  ;;  %v12130_v15 = vpop.f32.mrb[153].mxu0 }
0x15ba   : > { %v8453_v34 = vpop.f32.mrb[154].mxu0  ;;  %v12952_v15 = vld [vmem:[#allocation14 + $0x410] ss:$8 sps:$4 sm:$0xff]  }
0x15bb   : > { %8587 = vmatmul.mubr.bf16.vlgmr.msra.gmra.mrb[156].mxu0 %v8456_v9  ;;  %v12131_v48 = vpop.f32.mrb[155].mxu0  ;;  %12147 = vmatmul.mubr.msk.bf16.vlgmr.msra.gmra.mrb[192].mxu1 %vm7669_vm4, %v10208_v1  ;;  %v12954_v9 = vld [vmem:[#allocation14 + $0x414] ss:$8 sps:$4 sm:$0xff]   ;;  %v12963_v34 = vld [vmem:[#allocation14 + $0x444] ss:$8 sps:$4 sm:$0xff]  }
0x15bc   : > { %12139 = vmatpush3.bf16.msra.mxu0 %v14891_v25  ;;  %12140 = vmatprep.mubr.msk.bf16.mxu0 %vm13395_vm1, %v13394_v57  ;;  %v12966_v48 = vld [vmem:[#allocation14 + $0x454] ss:$8 sps:$4 sm:$0xff]  }
0x15bd   : > { %8926 = vmatprep.subr.bf16.mxu0 %v12903_v17  ;;  %9113 = vmatpush1.bf16.msra.mxu1 %v12904_v31  ;;  %v12957_v17 = vld [vmem:[#allocation14 + $0x424] ss:$8 sps:$4 sm:$0xff]   ;;  %v12960_v31 = vld [vmem:[#allocation14 + $0x434] ss:$8 sps:$4 sm:$0xff]  }
0x15be   : > { %9114 = vmatprep.subr.bf16.mxu1 %v12912_v30  ;;  %9144 = vmatprep.mubr.bf16.mxu1 %v13396_v36  ;;  %v12961_v30 = vld [vmem:[#allocation14 + $0x440] ss:$8 sps:$4 sm:$0xff]  }
0x15c1   : > { %9115 = vmatpush1.bf16.msra.mxu1 %v12910_v54  ;;  %v12964_v54 = vld [vmem:[#allocation14 + $0x450] ss:$8 sps:$4 sm:$0xff]  }
0x15c2   : > { %9116 = vmatprep.subr.bf16.mxu1 %v12918_v29  ;;  %v12969_v29 = vld [vmem:[#allocation14 + $0x464] ss:$8 sps:$4 sm:$0xff]  }
0x15c3   : > { %12141 = vmatmul.mubr.msk.bf16.vlgmr.msra.gmra.mrb[160].mxu0 %vm7669_vm4, %v10190_v21  ;;  %v12972_v21 = vld [vmem:[#allocation14 + $0x474] ss:$8 sps:$4 sm:$0xff]  }
0x15c4   : > { %8927 = vmatpush1.bf16.msra.mxu0 %v12901_v20  ;;  %8958 = vmatprep.mubr.bf16.mxu0 %v13396_v36  ;;  %v12970_v20 = vld [vmem:[#allocation14 + $0x470] ss:$8 sps:$4 sm:$0xff]  }
0x15c5   : > { %8928 = vmatprep.subr.bf16.mxu0 %v12909_v56  ;;  %9117 = vmatpush1.bf16.msra.mxu1 %v12916_v49 }
0x15c6   : > { %9118 = vmatprep.subr.bf16.mxu1 %v12924_v51 }
0x15c8   : > { %8929 = vmatpush1.bf16.msra.mxu0 %v12907_v52 }
0x15c9   : > { %8930 = vmatprep.subr.bf16.mxu0 %v12915_v58  ;;  %9119 = vmatpush1.bf16.msra.mxu1 %v12922_v61 }
0x15ca   : > { %9120 = vmatprep.subr.bf16.mxu1 %v12930_v59 }
0x15cc   : > { %8931 = vmatpush1.bf16.msra.mxu0 %v12913_v60 }
0x15cd   : > { %8932 = vmatprep.subr.bf16.mxu0 %v12921_v62  ;;  %9121 = vmatpush1.bf16.msra.mxu1 %v12928_v0 }
0x15ce   : > { %9122 = vmatprep.subr.bf16.mxu1 %v12936_v11 }
0x15d0   : > { %8933 = vmatpush1.bf16.msra.mxu0 %v12919_v2 }
0x15d1   : > { %8934 = vmatprep.subr.bf16.mxu0 %v12927_v3  ;;  %9123 = vmatpush1.bf16.msra.mxu1 %v12934_v27 }
0x15d2   : > { %9124 = vmatprep.subr.bf16.mxu1 %v12942_v38 }
0x15d4   : > { %8935 = vmatpush1.bf16.msra.mxu0 %v12925_v4 }
0x15d5   : > { %8936 = vmatprep.subr.bf16.mxu0 %v12933_v5  ;;  %9125 = vmatpush1.bf16.msra.mxu1 %v12940_v32 }
0x15d6   : > { %9126 = vmatprep.subr.bf16.mxu1 %v12948_v6 }
0x15d8   : > { %8937 = vmatpush1.bf16.msra.mxu0 %v12931_v8 }
0x15d9   : > { %8938 = vmatprep.subr.bf16.mxu0 %v12939_v23  ;;  %9127 = vmatpush1.bf16.msra.mxu1 %v12946_v10 }
0x15dc   : > { %8939 = vmatpush1.bf16.msra.mxu0 %v12937_v28 }
0x15dd   : > { %8940 = vmatprep.subr.bf16.mxu0 %v12945_v33 }
0x15e0   : > { %8941 = vmatpush1.bf16.msra.mxu0 %v12943_v46 }
0x15e1   : > { %12150 = vmatprep.subr.bf16.mxu0 %v13394_v57 }
0x1686   : > { %v8774_v12 = vpop.f32.mrb[188].mxu1 }
0x1687   : > { %v8776_v13 = vpop.f32.mrb[189].mxu1 }
0x1688   : > { %v8778_v14 = vpop.f32.mrb[190].mxu1 }
0x1689   : > { %v8779_v16 = vpop.f32.mrb[191].mxu1 }
0x168e   : > { %v8588_v18 = vpop.f32.mrb[156].mxu0  ;;  %v9008_v19 = vpop.f32.mrb[192].mxu1 }
0x168f   : > { %v8595_v41 = vadd.f32 %v8588_v18, %v14951_v55  ;;  %v8590_v22 = vpop.f32.mrb[157].mxu0  ;;  %v9014_v24 = vpack.c.bf16 %v9008_v19, %v9008_v19  ;;  %v12148_v45 = vpop.f32.mrb[193].mxu1  ;;  %v10226_v55 = vld [vmem:[%s15190_s15 + $0x20] sm:$0xf] }
0x1690   : > { %v8596_v26 = vadd.f32 %v8590_v22, %v14956_v7  ;;  %v8592_v37 = vpop.f32.mrb[158].mxu0  ;;  %v9011_v39 = vpop.f32.mrb[194].mxu1  ;;  %v12949_v7 = vld [vmem:[#allocation14 + $0x400] ss:$8 sps:$4 sm:$0xff]  }
0x1691   : > { %v8781_v40 = vadd.f32 %v8774_v12, %v8595_v41  ;;  %v8593_v35 = vpop.f32.mrb[159].mxu0  ;;  %9145 = vmatmul.mubr.bf16.vlgmr.msra.gmra.mrb[196].mxu1 %v9014_v24  ;;  %v12149_v42 = vpop.f32.mrb[195].mxu1 }
0x1692   : > { %v8782_v43 = vadd.f32 %v8776_v13, %v8596_v26 }
0x1696   : > { %v8822_v44 = vpop.f32.mrb[160].mxu0 }
0x1697   : > { %v8828_v50 = vpack.c.bf16 %v8822_v44, %v8822_v44  ;;  %v12142_v53 = vpop.f32.mrb[161].mxu0 }
0x1698   : > { %v8825_v47 = vpop.f32.mrb[162].mxu0 }
0x1699   : > { %8959 = vmatmul.mubr.bf16.vlgmr.msra.gmra.mrb[164].mxu0 %v8828_v50  ;;  %v12143_v1 = vpop.f32.mrb[163].mxu0 }
0x169a   : > { %12151 = vmatpush3.bf16.msra.mxu0 %v14891_v25  ;;  %12152 = vmatprep.mubr.msk.bf16.mxu0 %vm13395_vm1, %v13394_v57  ;;  %v12955_v25 = vld [vmem:[#allocation14 + $0x420] ss:$8 sps:$4 sm:$0xff]   ;;  %v12958_v57 = vld [vmem:[#allocation14 + $0x430] ss:$8 sps:$4 sm:$0xff]  }
0x169b   : > { %9298 = vmatprep.subr.bf16.mxu0 %v12951_v63 }
0x16a1   : > { %12153 = vmatmul.mubr.msk.bf16.vlgmr.msra.gmra.mrb[168].mxu0 %vm7669_vm4, %v10226_v55 }
0x16a2   : > { %9299 = vmatpush1.bf16.msra.mxu0 %v12949_v7  ;;  %9330 = vmatprep.mubr.bf16.mxu0 %v13396_v36  ;;  %v12967_v36 = vld [vmem:[#allocation14 + $0x460] ss:$8 sps:$4 sm:$0xff]  }
0x16a3   : > { %9300 = vmatprep.subr.bf16.mxu0 %v12954_v9 }
0x16a6   : > { %9301 = vmatpush1.bf16.msra.mxu0 %v12952_v15 }
0x16a7   : > { %9302 = vmatprep.subr.bf16.mxu0 %v12957_v17 }
0x16aa   : > { %9303 = vmatpush1.bf16.msra.mxu0 %v12955_v25 }
0x16ab   : > { %9304 = vmatprep.subr.bf16.mxu0 %v12960_v31 }
0x16ae   : > { %9305 = vmatpush1.bf16.msra.mxu0 %v12958_v57 }
0x16af   : > { %9306 = vmatprep.subr.bf16.mxu0 %v12963_v34 }
0x16b2   : > { %9307 = vmatpush1.bf16.msra.mxu0 %v12961_v30 }
0x16b3   : > { %9308 = vmatprep.subr.bf16.mxu0 %v12966_v48 }
0x16b6   : > { %9309 = vmatpush1.bf16.msra.mxu0 %v12964_v54 }
0x16b7   : > { %9310 = vmatprep.subr.bf16.mxu0 %v12969_v29 }
0x16ba   : > { %9311 = vmatpush1.bf16.msra.mxu0 %v12967_v36 }
0x16bb   : > { %9312 = vmatprep.subr.bf16.mxu0 %v12972_v21 }
0x16be   : > { %9313 = vmatpush1.bf16.msra.mxu0 %v12970_v20 }
0x1764   : > { %v9146_v56 = vpop.f32.mrb[196].mxu1 }
0x1765   : > { %v9148_v49 = vpop.f32.mrb[197].mxu1 }
0x1766   : > { %v9150_v51 = vpop.f32.mrb[198].mxu1 }
0x1767   : > { %v9151_v52 = vpop.f32.mrb[199].mxu1 }
0x176c   : > { %v8960_v58 = vpop.f32.mrb[164].mxu0 }
0x176d   : > { %v8967_v61 = vadd.f32 %v8960_v58, %v8781_v40  ;;  %v8962_v59 = vpop.f32.mrb[165].mxu0 }
0x176e   : > { %v8968_v60 = vadd.f32 %v8962_v59, %v8782_v43  ;;  %v8964_v62 = vpop.f32.mrb[166].mxu0 }
0x176f   : > { %v14982_v0 = vadd.f32 %v9146_v56, %v8967_v61  ;;  %v8965_v2 = vpop.f32.mrb[167].mxu0 }
0x1770   : > { %v14984_v3 = vadd.f32 %v9148_v49, %v8968_v60 }
0x1774   : > { %v9194_v4 = vpop.f32.mrb[168].mxu0 }
0x1775   : > { %v9200_v5 = vpack.c.bf16 %v9194_v4, %v9194_v4  ;;  %v12154_v8 = vpop.f32.mrb[169].mxu0 }
0x1776   : > { %v9197_v11 = vpop.f32.mrb[170].mxu0 }
0x1777   : > { %9331 = vmatmul.mubr.bf16.vlgmr.msra.gmra.mrb[172].mxu0 %v9200_v5  ;;  %v12155_v27 = vpop.f32.mrb[171].mxu0 }
0x1778   : > { %13251 = shalt.err (!%p13248_p10)
}
0x1779   : > { %s13252_s29 = scalar_lea.hbm %s14994_s23, 128  ;;  %s13256_s30 = scalar_lea.hbm %s15191_s5, 256 }
0x177a   : > { %p13253_p11 = scmp.ne.s32.totalorder %s14994_s23, %s13252_s29  ;;  %p13257_p9 = scmp.lt.u32.totalorder %s14994_s23, %s15191_s5 }
0x177b   : > { %p13258_p7 = scmp.lt.u32.totalorder %s13256_s30, %s13252_s29  ;;  %p13260_p12 = scmp.lt.u32.totalorder %s13252_s29, %s14994_s23 }
0x177c   : > { %p13254_p3 = pnand %p13253_p11, %p15192_p1 }
0x177d   : > { %p13259_p4 = por %p13258_p7, %p13257_p9 }
0x177e   : > { %p13255_p5 = pneg %p13254_p3 }
0x177f   : > { %p13261_p13 = por %p13260_p12, %p13259_p4 }
0x1781   : > { %p13262_p0 = pnand %p13261_p13, %p13255_p5 }
0x1783   : > { %13265 = shalt.err (!%p13262_p0)
}
0x1784   : > { %12315 = dma.vmem_to_hbm [thread:$0]  (%p15192_p1), %s14997_s1, 128, %s14994_s23, %s15000_s6  }
0x1785   : > { %s15193_s2 = sld [smem:[#allocation39_spill]]  ;;  %s9360_s14 = scalar_lea.sflag [#allocation4], %s13782_s22 }
0x1786   : > { %s13266_s30 = scalar_lea.vmem %s14987_s16, 256  ;;  %s13398_s21 = smov [#allocation16]  }
0x1787   : > { %p13267_p2 = scmp.ne.s32.totalorder %s14987_s16, %s13266_s30  ;;  %s13270_s8 = sshll.u32 %s13398_s21, 4  ;;  %s13271_s8 = int_to_ptr.vmem [resolvable:$false] %s13270_s8 }
0x1788   : > { %s13272_s5 = scalar_lea.vmem %s13271_s8, 512  ;;  %p13273_p10 = scmp.lt.s32.totalorder %s14987_s16, %s13271_s8 }
0x1789   : > { %p13268_p8 = pnand %p13267_p2, %p15192_p1  ;;  %p13274_p11 = scmp.lt.s32.totalorder %s13272_s5, %s13266_s30 }
0x178b   : > { %s15029_s29 = scalar_lea.hbm %s15193_s2, %s10255_s3  ;;  %p13269_p6 = pneg %p13268_p8 }
0x178c   : > { %p13275_p3 = por %p13274_p11, %p13273_p10 }
0x178e   : > { %p13276_p5 = pnand %p13275_p3, %p13269_p6 }
0x1790   : > { %13279 = shalt.err (!%p13276_p5)
}
0x1791   : > { %s13280_s1 = scalar_lea.hbm %s15029_s29, 256  ;;  %s13284_s10 = scalar_lea.hbm %s15193_s2, 512 }
0x1792   : > { %p13281_p9 = scmp.ne.s32.totalorder %s15029_s29, %s13280_s1  ;;  %p13285_p12 = scmp.lt.u32.totalorder %s15029_s29, %s15193_s2 }
0x1793   : > { %p13286_p13 = scmp.lt.u32.totalorder %s13284_s10, %s13280_s1  ;;  %p13288_p2 = scmp.lt.u32.totalorder %s13280_s1, %s15029_s29 }
0x1794   : > { %p13282_p7 = pnand %p13281_p9, %p15192_p1 }
0x1795   : > { %p13287_p0 = por %p13286_p13, %p13285_p12 }
0x1796   : > { %p13283_p4 = pneg %p13282_p7 }
0x1797   : > { %p13289_p8 = por %p13288_p2, %p13287_p0 }
0x1799   : > { %p13290_p6 = pnand %p13289_p8, %p13283_p4 }
0x179b   : > { %13293 = shalt.err (!%p13290_p6)
}
0x179c   : > { %s13399_s5 = smov 128   ;;  %s13400_s30 = smov 8   ;;  %v9343_v23 = vlaneseq }
0x179d   : > { %12314 = dma.vmem_to_hbm [thread:$0]  (%p15192_p1), %s14987_s16, 256, %s15029_s29, %s9360_s14, %s13399_s5, %s13399_s5, %s13400_s30  }
0x179e   : > { %v9344_v28 = vshrl.u32 %v9343_v23, 7  ;;  %s15194_s10 = sld [smem:[#allocation38_spill]]  ;;  %s15195_s16 = sshll.u32 %s13782_s22, 4 }
0x179f   : > { %s686_s29 = scalar_lea.vmem [#allocation19], %s15195_s16  ;;  %s15196_s8 = sld [smem:[#allocation41_spill]] }
0x17a0   : > { %v9345_v32 = vsub.s32 0, %v9344_v28  ;;  %v9349_v46 = vsub.s32 1, %v9344_v28  ;;  %s9413_s14 = sshll.u32 %s686_s29, 4  ;;  %s13401_s22 = smov [#allocation19]   ;;  %s15069_s14 = int_to_ptr.vmem [resolvable:$true] %s9413_s14 }
0x17a1   : > { %s13294_s30 = scalar_lea.vmem %s15069_s14, 256  ;;  %s13298_s23 = sshll.u32 %s13401_s22, 4  ;;  %s13299_s23 = int_to_ptr.vmem [resolvable:$false] %s13298_s23 }
0x17a2   : > { %p13295_p10 = scmp.ne.s32.totalorder %s15069_s14, %s13294_s30  ;;  %s13300_s0 = scalar_lea.vmem %s13299_s23, 512 }
0x17a3   : > { %p13301_p5 = scmp.lt.s32.totalorder %s15069_s14, %s13299_s23  ;;  %p13302_p9 = scmp.lt.s32.totalorder %s13300_s0, %s13294_s30 }
0x17a4   : > { %v9341_v38 = vld [vmem:[%s15194_s10] sm:$0x3]  ;;  %p13296_p11 = pnand %p13295_p10, %p15192_p1 }
0x17a5   : > { %v9346_v33 = vrot.slane %v9341_v38, %v9345_v32  ;;  %v9350_v10 = vrot.slane %v9341_v38, %v9349_v46  ;;  %s15067_s5 = scalar_lea.hbm %s15196_s8, %s10255_s3  ;;  %p13303_p7 = por %p13302_p9, %p13301_p5 }
0x17a6   : > { %p13297_p3 = pneg %p13296_p11 }
0x17a8   : > { %p13304_p4 = pnand %p13303_p7, %p13297_p3 }
0x184a   : > { %v9332_v6 = vpop.f32.mrb[172].mxu0 }
0x184b   : > { %v9339_v12 = vadd.f32 %v9332_v6, %v14982_v0  ;;  %v9334_v13 = vpop.f32.mrb[173].mxu0 }
0x184c   : > { %v9340_v14 = vadd.f32 %v9334_v13, %v14984_v3  ;;  %v9336_v16 = vpop.f32.mrb[174].mxu0 }
0x184d   : > { %v9353_v18 = vadd.f32 %v9346_v33, %v9339_v12  ;;  %v9337_v19 = vpop.f32.mrb[175].mxu0 }
0x184e   : > { %v9354_v41 = vadd.f32 %v9350_v10, %v9340_v14 }
0x184f   : > { %v9355_v22 = vmax.f32 %v9353_v18, 0.0 }
0x1850   : > { %v9356_v24 = vmax.f32 %v9354_v41, 0.0 }
0x1851   : > { %9357 = vst [vmem:[%s686_s29] sm:$0xff] %v9355_v22 }
0x1852   : > { %9358 = vst [vmem:[%s686_s29 + $0x8] sm:$0xff] %v9356_v24 }
0x1853   : > { %13307 = shalt.err (!%p13304_p4)
}
0x1854   : > { %s13308_s3 = scalar_lea.hbm %s15067_s5, 256  ;;  %s13312_s16 = scalar_lea.hbm %s15196_s8, 512 }
0x1855   : > { %p13309_p12 = scmp.ne.s32.totalorder %s15067_s5, %s13308_s3  ;;  %p13313_p2 = scmp.lt.u32.totalorder %s15067_s5, %s15196_s8 }
0x1856   : > { %p13314_p8 = scmp.lt.u32.totalorder %s13312_s16, %s13308_s3  ;;  %p13316_p10 = scmp.lt.u32.totalorder %s13308_s3, %s15067_s5 }
0x1857   : > { %p13310_p13 = pnand %p13309_p12, %p15192_p1 }
0x1858   : > { %p13315_p6 = por %p13314_p8, %p13313_p2 }
0x1859   : > { %p13311_p0 = pneg %p13310_p13 }
0x185a   : > { %p13317_p11 = por %p13316_p10, %p13315_p6 }
0x185c   : > { %p13318_p3 = pnand %p13317_p11, %p13311_p0 }
0x185e   : > { %13321 = shalt.err (!%p13318_p3)
}
0x185f   : > { %12316 = dma.vmem_to_hbm [thread:$0]  (%p15192_p1), %s15069_s14, 256, %s15067_s5, %s15000_s6  }
0x1860 PF: > { %s9425_s21 = sand.u32 1, %s13368_s24   ;;  %p15197_p5 = scmp.ne.s32.totalorder %s15171_s19, 0 }
0x1861   : > { %p15198_p9 = scmp.ge.s32.totalorder %s13380_s27, 2  ;;  %s9426_s30 = scalar_lea.sflag [#allocation4], %s9425_s21 }
0x1863   : > { %p12347_p7 = pnand %p15198_p9, %p15197_p5 }
0x1865   : > { %13359 = dma.done.wait (!%p12347_p7), %s9426_s30, 256  }
0x1866   : > { %13361 = vsyncadd (!%p12347_p7), %s9426_s30, 4294967040  ;;  %s15199_s22 = sadd.s32 4294967294, %s13380_s27  }
0x1867   : > { %s9434_s23 = sand.u32 1, %s15199_s22  }
0x1868   : > { %s9435_s0 = scalar_lea.sflag [#allocation18], %s9434_s23 }
0x1869   : > { %13363 = dma.done.wait (!%p12347_p7), %s9435_s0, 384  }
0x186a   : > { %13365 = vsyncadd (!%p12347_p7), %s9435_s0, 4294966912  ;;  %p38_p1 = scmp.ge.s32.totalorder %s13704_s4, 4   ;;  %s15200_s24 = smov %s13372_s25 }
0x186b   : > { %s15201_s25 = smov %s13376_s26  ;;  %s15202_s26 = smov %s13716_s20 }
0x186c   : > { %s15203_s27 = smov %s13704_s4  ;;  %40 = sbr.rel (!%p38_p1) target bundleno = 27 (0x1b), region = 257 }
0x1873   :  { %9449 = vsyncpa [#allocation3], 1 }
0x1874   :  { %9451 = vsyncpa [#allocation3 + $0x1], 1 }
0x1875   :  { %9452 = vsyncpa [#allocation6], 1 }
0x1876   :  { %9453 = vsyncpa [#allocation9], 1 }
0x1877   :  { %9454 = vsyncpa [#allocation12], 1 }
0x1878   :  { %9455 = vsyncpa [#allocation15], 1 }
0x1879   :  { %9456 = vsyncpa [#allocation4], 1 }
0x187a   :  { %9458 = vsyncpa [#allocation4 + $0x1], 1 }
0x187b   :  { %9459 = vsyncpa [#allocation18], 1 }
0x187c   :  { %9461 = vsyncpa [#allocation18 + $0x1], 1 }

</bundles_post_ra>
